<compile_context>
chip_gen: v6e
topology: v6e:2x2x1
jax: 0.10.0
libtpu: 0.0.40
codegen_flags: <defaults>
</compile_context>

<pallas_src>
import functools

import jax
import jax.numpy as jnp
import numpy as np
from jax import lax
from jax.experimental import pallas as pl
from jax.experimental.pallas import tpu as pltpu

_SUB = 8  # batch rows per register-resident sub-tile (one f32 sublane tile)


def scm_kernel(x_ref, params_ref, mask_ref, out_ref, *, C, H, W, sub):
    """One batch block in channel-major-on-lanes layout.

    x_ref     : (Bblk, C*H*W)   lanes hold [c0 image | c1 image | ...]
    params_ref: (2*C*C + C + 9*C*C,) f32 in SMEM
                [ wfc(o*C+i) | bfc(o) | w1(o*C+i) | w3((t*C+o)*C+i) ]
    mask_ref  : (9, 1, H*W)     f32 border-validity mask per 3x3 tap
    out_ref   : (Bblk, C*H*W)
    """
    HW = H * W
    bblk = x_ref.shape[0]
    nsub = bblk // sub
    inv_hw = 1.0 / HW

    OFF_WFC = 0
    OFF_BFC = C * C
    OFF_W1 = C * C + C
    OFF_W3 = 2 * C * C + C

    def wfc_s(o, i):
        return params_ref[OFF_WFC + o * C + i]

    def bfc_s(o):
        return params_ref[OFF_BFC + o]

    def w1_s(o, i):
        return params_ref[OFF_W1 + o * C + i]

    def w3_s(t, o, i):
        return params_ref[OFF_W3 + (t * C + o) * C + i]

    def body(s, carry):
        row = pl.multiple_of(s * sub, sub)
        xs = x_ref[pl.ds(row, sub), :].astype(jnp.float32)        # (sub, C*HW)
        # Per-channel slabs: static lane slices at multiples of HW (lane-tile
        # aligned for HW % 128 == 0) -> no relayout, fully dense vregs.
        xch = [xs[:, i * HW:(i + 1) * HW] for i in range(C)]       # (sub, HW)

        # ---- AdaptiveAvgPool2d(1): per-channel lane reduction (XLU) --------
        gap = [jnp.sum(xch[i], axis=1, keepdims=True) * inv_hw
               for i in range(C)]                                   # (sub, 1)

        # ---- Linear(C, C): bias folded into the first term -----------------
        fc = []
        for o in range(C):
            v = gap[0] * wfc_s(o, 0) + bfc_s(o)
            for i in range(1, C):
                v = v + gap[i] * wfc_s(o, i)
            fc.append(v)                                            # (sub, 1)

        # ---- channel rescale fused into the 1x1 inputs (no `mul` array) ----
        sx = [xch[i] * fc[i] for i in range(C)]                     # (sub, HW)

        # ---- 1x1 conv (no bias): scalar-weight FMAs on dense slabs ---------
        y1 = []
        for o in range(C):
            v = sx[0] * w1_s(o, 0)
            for i in range(1, C):
                v = v + sx[i] * w1_s(o, i)
            y1.append(v)                                            # (sub, HW)

        # ---- 3x3 conv, padding=1 (no bias): lane rolls + border masks ------
        # out[h, w] += w3[o, i, kh, kw] * y1[i, h+kh-1, w+kw-1]; a spatial
        # shift (dh, dw) is a lane roll by -(dh*W + dw); image-border wrap is
        # zeroed with the precomputed tap mask.
        acc = [None] * C
        for t in range(9):
            dh, dw = t // 3 - 1, t % 3 - 1
            shift = (-(dh * W + dw)) % HW
            if shift == 0:                                          # center tap
                sh = y1
            else:
                m = mask_ref[t]                                     # (1, HW)
                sh = [pltpu.roll(y1[i], shift, axis=1) * m for i in range(C)]
            for o in range(C):
                contrib = sh[0] * w3_s(t, o, 0)
                for i in range(1, C):
                    contrib = contrib + sh[i] * w3_s(t, o, i)
                acc[o] = contrib if acc[o] is None else acc[o] + contrib

        for o in range(C):
            out_ref[pl.ds(row, sub), o * HW:(o + 1) * HW] = (
                acc[o].astype(out_ref.dtype))
        return carry

    # Rolled loop: bounds vreg live ranges to one 8-row sub-tile.
    lax.fori_loop(0, nsub, body, 0)


def _tap_masks(H, W):
    """(9, 1, H*W) f32 masks: 1 where y1[h+dh, w+dw] is in-bounds for tap t."""
    HW = H * W
    hh = np.arange(HW) // W
    ww = np.arange(HW) % W
    m = np.zeros((9, 1, HW), np.float32)
    for t in range(9):
        dh, dw = t // 3 - 1, t % 3 - 1
        valid = ((hh + dh >= 0) & (hh + dh < H) &
                 (ww + dw >= 0) & (ww + dw < W))
        m[t, 0] = valid.astype(np.float32)
    return m


def _pack_params(wfc, bfc, w1, w3, C):
    """Single flat f32 param vector (goes to SMEM, read as scalars)."""
    return jnp.concatenate([
        wfc.reshape(-1),                                  # [o*C + i]
        bfc.reshape(-1),                                  # [o]
        w1[:, :, 0, 0].reshape(-1),                       # [o*C + i]
        jnp.transpose(w3, (2, 3, 0, 1)).reshape(-1),      # [((kh*3+kw)*C+o)*C+i]
    ]).astype(jnp.float32)


def _choose_batch_block(B, C, HW, requested):
    if requested is not None:
        return max(_SUB, -(-int(requested) // _SUB) * _SUB)
    # <= ~512 KiB input block (v5e friendly, pipeline-deep), multiple of the
    # 8-row sub-tile, and small enough that B yields >= 2-4 grid steps so the
    # "parallel" batch axis feeds both TensorCores on v7x.
    cap_rows = max(_SUB, ((512 * 1024) // (C * HW * 4)) // _SUB * _SUB)
    cap_rows = min(cap_rows, 128)
    target = max(_SUB, -(--(-B // 4) // _SUB) * -_SUB * -1)  # ceil(B/4) -> mult of 8
    # (written plainly:)
    target = -(-B // 4)
    target = max(_SUB, -(-target // _SUB) * _SUB)
    return min(cap_rows, target)


def scm_forward(x_nchw, wfc, bfc, w1, w3, *, batch_block=None):
    """x_nchw: (B, C, H, W).  wfc: (C, C) torch Linear weight, bfc: (C,),
    w1: (C, C, 1, 1) OIHW, w3: (C, C, 3, 3) OIHW (both bias-free)."""
    B, C, H, W = x_nchw.shape
    HW = H * W
    CHW = C * HW

    params = _pack_params(wfc, bfc, w1, w3, C)             # (2C^2 + C + 9C^2,)
    masks = jnp.asarray(_tap_masks(H, W))                  # (9, 1, HW)

    x = x_nchw.reshape(B, CHW)                             # free reshape (NCHW contiguous)

    bb = _choose_batch_block(B, C, HW, batch_block)
    B_pad = -(-B // bb) * bb
    if B_pad != B:
        x = jnp.pad(x, ((0, B_pad - B), (0, 0)))           # padded tail, sliced off below
    grid = (B_pad // bb,)

    itemsize = jnp.dtype(x_nchw.dtype).itemsize
    block_bytes = bb * CHW * itemsize
    vmem_limit = int(min(32 << 20, max(8 << 20, 8 * block_bytes)))

    flops = B * HW * (2 * C * C * 10) + 2 * B * C * C + B * C * HW
    bytes_accessed = 2 * B_pad * CHW * itemsize + 4 * (params.size + masks.size)

    out = pl.pallas_call(
        functools.partial(scm_kernel, C=C, H=H, W=W, sub=_SUB),
        out_shape=jax.ShapeDtypeStruct((B_pad, CHW), x_nchw.dtype),
        grid=grid,
        in_specs=[
            pl.BlockSpec((bb, CHW), lambda b: (b, 0)),
            pl.BlockSpec(memory_space=pltpu.MemorySpace.SMEM),   # packed params
            pl.BlockSpec((9, 1, HW), lambda b: (0, 0, 0)),       # tap masks
        ],
        out_specs=pl.BlockSpec((bb, CHW), lambda b: (b, 0)),
        compiler_params=pltpu.CompilerParams(
            dimension_semantics=("parallel",),
            vmem_limit_bytes=vmem_limit),
        cost_estimate=pl.CostEstimate(
            flops=flops, transcendentals=0, bytes_accessed=bytes_accessed),
    )(x, params, masks)

    if B_pad != B:
        out = out[:B]
    return out.reshape(B, C, H, W)


def scm_reference(x_nchw, wfc, bfc, w1, w3):
    """Pure-JAX reference matching the PyTorch forward."""
    gap = jnp.mean(x_nchw, axis=(2, 3))                        # (B, C)
    fc = gap @ wfc.T + bfc                                     # (B, C)
    mul = x_nchw * fc[:, :, None, None]
    dn = ("NCHW", "OIHW", "NCHW")
    y1 = jax.lax.conv_general_dilated(mul, w1, (1, 1), "SAME",
                                      dimension_numbers=dn)
    y3 = jax.lax.conv_general_dilated(y1, w3, (1, 1), "SAME",
                                      dimension_numbers=dn)
    return y3


if __name__ == "__main__":
    B, C, H, W = 2, 4, 16, 16

    key = jax.random.PRNGKey(0)
    kx, kw_fc, kb_fc, kw1, kw3 = jax.random.split(key, 5)

    x = jax.random.normal(kx, (B, C, H, W), dtype=jnp.float32)
    # Deterministic synthetic parameters (shapes from the module __init__).
    wfc = jax.random.normal(kw_fc, (C, C), dtype=jnp.float32) * 0.1
    bfc = jax.random.normal(kb_fc, (C,), dtype=jnp.float32) * 0.1
    w1 = jax.random.normal(kw1, (C, C, 1, 1), dtype=jnp.float32) * 0.1
    w3 = jax.random.normal(kw3, (C, C, 3, 3), dtype=jnp.float32) * 0.1

    out = scm_forward(x, wfc, bfc, w1, w3)
    out = jax.block_until_ready(out)

    ref = jax.block_until_ready(scm_reference(x, wfc, bfc, w1, w3))
    assert out.shape == (B, C, H, W)
    assert jnp.allclose(out, ref, rtol=1e-4, atol=1e-4), \
        f"max abs diff = {jnp.max(jnp.abs(out - ref))}"

    print("KERNEL_OK")
</pallas_src>

<mosaic_0001>
module attributes {stable_mosaic.version = 11 : i64} {
  func.func @scm_kernel(%arg0: i32, %arg1: memref<8x1024xf32, #tpu.memory_space<vmem>>, %arg2: memref<180xf32, #tpu.memory_space<smem>>, %arg3: memref<9x1x256xf32, #tpu.memory_space<vmem>>, %arg4: memref<8x1024xf32, #tpu.memory_space<vmem>>) attributes {dimension_semantics = [#tpu.dimension_semantics<parallel>], iteration_bounds = array<i64: 1>, scalar_prefetch = 0 : i64, scratch_operands = 0 : i64, tpu.core_type = #tpu.core_type<tc>, window_params = [{transform_indices = @transform_0, window_bounds = array<i64: 8, 1024>}, {transform_indices = @transform_1, window_bounds = array<i64: 180>}, {pipeline_mode = #tpu.pipeline_mode<synchronous>, transform_indices = @transform_2, window_bounds = array<i64: 9, 1, 256>}, {transform_indices = @transform_3, window_bounds = array<i64: 8, 1024>}]} {
    %c0_i32 = arith.constant 0 : i32
    %c8_i32 = arith.constant 8 : i32
    %0 = arith.muli %c0_i32, %c8_i32 : i32
    %1 = tpu.assume_multiple %0, 8 : i32
    %2 = arith.index_cast %1 : i32 to index
    %c0 = arith.constant 0 : index
    %3 = vector.load %arg1[%2, %c0] : memref<8x1024xf32, #tpu.memory_space<vmem>>, vector<8x1024xf32>
    %4 = vector.extract_strided_slice %3 {offsets = [0, 0], sizes = [8, 256], strides = [1, 1]} : vector<8x1024xf32> to vector<8x256xf32>
    %5 = vector.extract_strided_slice %3 {offsets = [0, 256], sizes = [8, 256], strides = [1, 1]} : vector<8x1024xf32> to vector<8x256xf32>
    %6 = vector.extract_strided_slice %3 {offsets = [0, 512], sizes = [8, 256], strides = [1, 1]} : vector<8x1024xf32> to vector<8x256xf32>
    %7 = vector.extract_strided_slice %3 {offsets = [0, 768], sizes = [8, 256], strides = [1, 1]} : vector<8x1024xf32> to vector<8x256xf32>
    %cst = arith.constant dense<0.000000e+00> : vector<8xf32>
    %8 = vector.multi_reduction <add>, %4, %cst [1] : vector<8x256xf32> to vector<8xf32>
    %9 = vector.shape_cast %8 : vector<8xf32> to vector<8x1xf32>
    %cst_0 = arith.constant 3.906250e-03 : f32
    %10 = vector.broadcast %cst_0 : f32 to vector<8x1xf32>
    %11 = arith.mulf %9, %10 : vector<8x1xf32>
    %cst_1 = arith.constant dense<0.000000e+00> : vector<8xf32>
    %12 = vector.multi_reduction <add>, %5, %cst_1 [1] : vector<8x256xf32> to vector<8xf32>
    %13 = vector.shape_cast %12 : vector<8xf32> to vector<8x1xf32>
    %cst_2 = arith.constant 3.906250e-03 : f32
    %14 = vector.broadcast %cst_2 : f32 to vector<8x1xf32>
    %15 = arith.mulf %13, %14 : vector<8x1xf32>
    %cst_3 = arith.constant dense<0.000000e+00> : vector<8xf32>
    %16 = vector.multi_reduction <add>, %6, %cst_3 [1] : vector<8x256xf32> to vector<8xf32>
    %17 = vector.shape_cast %16 : vector<8xf32> to vector<8x1xf32>
    %cst_4 = arith.constant 3.906250e-03 : f32
    %18 = vector.broadcast %cst_4 : f32 to vector<8x1xf32>
    %19 = arith.mulf %17, %18 : vector<8x1xf32>
    %cst_5 = arith.constant dense<0.000000e+00> : vector<8xf32>
    %20 = vector.multi_reduction <add>, %7, %cst_5 [1] : vector<8x256xf32> to vector<8xf32>
    %21 = vector.shape_cast %20 : vector<8xf32> to vector<8x1xf32>
    %cst_6 = arith.constant 3.906250e-03 : f32
    %22 = vector.broadcast %cst_6 : f32 to vector<8x1xf32>
    %23 = arith.mulf %21, %22 : vector<8x1xf32>
    %c0_7 = arith.constant 0 : index
    %24 = memref.load %arg2[%c0_7] : memref<180xf32, #tpu.memory_space<smem>>
    %25 = vector.broadcast %24 : f32 to vector<8x1xf32>
    %26 = arith.mulf %11, %25 : vector<8x1xf32>
    %c16 = arith.constant 16 : index
    %27 = memref.load %arg2[%c16] : memref<180xf32, #tpu.memory_space<smem>>
    %28 = vector.broadcast %27 : f32 to vector<8x1xf32>
    %29 = arith.addf %26, %28 : vector<8x1xf32>
    %c1 = arith.constant 1 : index
    %30 = memref.load %arg2[%c1] : memref<180xf32, #tpu.memory_space<smem>>
    %31 = vector.broadcast %30 : f32 to vector<8x1xf32>
    %32 = arith.mulf %15, %31 : vector<8x1xf32>
    %33 = arith.addf %29, %32 : vector<8x1xf32>
    %c2 = arith.constant 2 : index
    %34 = memref.load %arg2[%c2] : memref<180xf32, #tpu.memory_space<smem>>
    %35 = vector.broadcast %34 : f32 to vector<8x1xf32>
    %36 = arith.mulf %19, %35 : vector<8x1xf32>
    %37 = arith.addf %33, %36 : vector<8x1xf32>
    %c3 = arith.constant 3 : index
    %38 = memref.load %arg2[%c3] : memref<180xf32, #tpu.memory_space<smem>>
    %39 = vector.broadcast %38 : f32 to vector<8x1xf32>
    %40 = arith.mulf %23, %39 : vector<8x1xf32>
    %41 = arith.addf %37, %40 : vector<8x1xf32>
    %c4 = arith.constant 4 : index
    %42 = memref.load %arg2[%c4] : memref<180xf32, #tpu.memory_space<smem>>
    %43 = vector.broadcast %42 : f32 to vector<8x1xf32>
    %44 = arith.mulf %11, %43 : vector<8x1xf32>
    %c17 = arith.constant 17 : index
    %45 = memref.load %arg2[%c17] : memref<180xf32, #tpu.memory_space<smem>>
    %46 = vector.broadcast %45 : f32 to vector<8x1xf32>
    %47 = arith.addf %44, %46 : vector<8x1xf32>
    %c5 = arith.constant 5 : index
    %48 = memref.load %arg2[%c5] : memref<180xf32, #tpu.memory_space<smem>>
    %49 = vector.broadcast %48 : f32 to vector<8x1xf32>
    %50 = arith.mulf %15, %49 : vector<8x1xf32>
    %51 = arith.addf %47, %50 : vector<8x1xf32>
    %c6 = arith.constant 6 : index
    %52 = memref.load %arg2[%c6] : memref<180xf32, #tpu.memory_space<smem>>
    %53 = vector.broadcast %52 : f32 to vector<8x1xf32>
    %54 = arith.mulf %19, %53 : vector<8x1xf32>
    %55 = arith.addf %51, %54 : vector<8x1xf32>
    %c7 = arith.constant 7 : index
    %56 = memref.load %arg2[%c7] : memref<180xf32, #tpu.memory_space<smem>>
    %57 = vector.broadcast %56 : f32 to vector<8x1xf32>
    %58 = arith.mulf %23, %57 : vector<8x1xf32>
    %59 = arith.addf %55, %58 : vector<8x1xf32>
    %c8 = arith.constant 8 : index
    %60 = memref.load %arg2[%c8] : memref<180xf32, #tpu.memory_space<smem>>
    %61 = vector.broadcast %60 : f32 to vector<8x1xf32>
    %62 = arith.mulf %11, %61 : vector<8x1xf32>
    %c18 = arith.constant 18 : index
    %63 = memref.load %arg2[%c18] : memref<180xf32, #tpu.memory_space<smem>>
    %64 = vector.broadcast %63 : f32 to vector<8x1xf32>
    %65 = arith.addf %62, %64 : vector<8x1xf32>
    %c9 = arith.constant 9 : index
    %66 = memref.load %arg2[%c9] : memref<180xf32, #tpu.memory_space<smem>>
    %67 = vector.broadcast %66 : f32 to vector<8x1xf32>
    %68 = arith.mulf %15, %67 : vector<8x1xf32>
    %69 = arith.addf %65, %68 : vector<8x1xf32>
    %c10 = arith.constant 10 : index
    %70 = memref.load %arg2[%c10] : memref<180xf32, #tpu.memory_space<smem>>
    %71 = vector.broadcast %70 : f32 to vector<8x1xf32>
    %72 = arith.mulf %19, %71 : vector<8x1xf32>
    %73 = arith.addf %69, %72 : vector<8x1xf32>
    %c11 = arith.constant 11 : index
    %74 = memref.load %arg2[%c11] : memref<180xf32, #tpu.memory_space<smem>>
    %75 = vector.broadcast %74 : f32 to vector<8x1xf32>
    %76 = arith.mulf %23, %75 : vector<8x1xf32>
    %77 = arith.addf %73, %76 : vector<8x1xf32>
    %c12 = arith.constant 12 : index
    %78 = memref.load %arg2[%c12] : memref<180xf32, #tpu.memory_space<smem>>
    %79 = vector.broadcast %78 : f32 to vector<8x1xf32>
    %80 = arith.mulf %11, %79 : vector<8x1xf32>
    %c19 = arith.constant 19 : index
    %81 = memref.load %arg2[%c19] : memref<180xf32, #tpu.memory_space<smem>>
    %82 = vector.broadcast %81 : f32 to vector<8x1xf32>
    %83 = arith.addf %80, %82 : vector<8x1xf32>
    %c13 = arith.constant 13 : index
    %84 = memref.load %arg2[%c13] : memref<180xf32, #tpu.memory_space<smem>>
    %85 = vector.broadcast %84 : f32 to vector<8x1xf32>
    %86 = arith.mulf %15, %85 : vector<8x1xf32>
    %87 = arith.addf %83, %86 : vector<8x1xf32>
    %c14 = arith.constant 14 : index
    %88 = memref.load %arg2[%c14] : memref<180xf32, #tpu.memory_space<smem>>
    %89 = vector.broadcast %88 : f32 to vector<8x1xf32>
    %90 = arith.mulf %19, %89 : vector<8x1xf32>
    %91 = arith.addf %87, %90 : vector<8x1xf32>
    %c15 = arith.constant 15 : index
    %92 = memref.load %arg2[%c15] : memref<180xf32, #tpu.memory_space<smem>>
    %93 = vector.broadcast %92 : f32 to vector<8x1xf32>
    %94 = arith.mulf %23, %93 : vector<8x1xf32>
    %95 = arith.addf %91, %94 : vector<8x1xf32>
    %96 = vector.broadcast %41 : vector<8x1xf32> to vector<8x256xf32>
    %97 = arith.mulf %4, %96 : vector<8x256xf32>
    %98 = vector.broadcast %59 : vector<8x1xf32> to vector<8x256xf32>
    %99 = arith.mulf %5, %98 : vector<8x256xf32>
    %100 = vector.broadcast %77 : vector<8x1xf32> to vector<8x256xf32>
    %101 = arith.mulf %6, %100 : vector<8x256xf32>
    %102 = vector.broadcast %95 : vector<8x1xf32> to vector<8x256xf32>
    %103 = arith.mulf %7, %102 : vector<8x256xf32>
    %c20 = arith.constant 20 : index
    %104 = memref.load %arg2[%c20] : memref<180xf32, #tpu.memory_space<smem>>
    %105 = vector.broadcast %104 : f32 to vector<8x256xf32>
    %106 = arith.mulf %97, %105 : vector<8x256xf32>
    %c21 = arith.constant 21 : index
    %107 = memref.load %arg2[%c21] : memref<180xf32, #tpu.memory_space<smem>>
    %108 = vector.broadcast %107 : f32 to vector<8x256xf32>
    %109 = arith.mulf %99, %108 : vector<8x256xf32>
    %110 = arith.addf %106, %109 : vector<8x256xf32>
    %c22 = arith.constant 22 : index
    %111 = memref.load %arg2[%c22] : memref<180xf32, #tpu.memory_space<smem>>
    %112 = vector.broadcast %111 : f32 to vector<8x256xf32>
    %113 = arith.mulf %101, %112 : vector<8x256xf32>
    %114 = arith.addf %110, %113 : vector<8x256xf32>
    %c23 = arith.constant 23 : index
    %115 = memref.load %arg2[%c23] : memref<180xf32, #tpu.memory_space<smem>>
    %116 = vector.broadcast %115 : f32 to vector<8x256xf32>
    %117 = arith.mulf %103, %116 : vector<8x256xf32>
    %118 = arith.addf %114, %117 : vector<8x256xf32>
    %c24 = arith.constant 24 : index
    %119 = memref.load %arg2[%c24] : memref<180xf32, #tpu.memory_space<smem>>
    %120 = vector.broadcast %119 : f32 to vector<8x256xf32>
    %121 = arith.mulf %97, %120 : vector<8x256xf32>
    %c25 = arith.constant 25 : index
    %122 = memref.load %arg2[%c25] : memref<180xf32, #tpu.memory_space<smem>>
    %123 = vector.broadcast %122 : f32 to vector<8x256xf32>
    %124 = arith.mulf %99, %123 : vector<8x256xf32>
    %125 = arith.addf %121, %124 : vector<8x256xf32>
    %c26 = arith.constant 26 : index
    %126 = memref.load %arg2[%c26] : memref<180xf32, #tpu.memory_space<smem>>
    %127 = vector.broadcast %126 : f32 to vector<8x256xf32>
    %128 = arith.mulf %101, %127 : vector<8x256xf32>
    %129 = arith.addf %125, %128 : vector<8x256xf32>
    %c27 = arith.constant 27 : index
    %130 = memref.load %arg2[%c27] : memref<180xf32, #tpu.memory_space<smem>>
    %131 = vector.broadcast %130 : f32 to vector<8x256xf32>
    %132 = arith.mulf %103, %131 : vector<8x256xf32>
    %133 = arith.addf %129, %132 : vector<8x256xf32>
    %c28 = arith.constant 28 : index
    %134 = memref.load %arg2[%c28] : memref<180xf32, #tpu.memory_space<smem>>
    %135 = vector.broadcast %134 : f32 to vector<8x256xf32>
    %136 = arith.mulf %97, %135 : vector<8x256xf32>
    %c29 = arith.constant 29 : index
    %137 = memref.load %arg2[%c29] : memref<180xf32, #tpu.memory_space<smem>>
    %138 = vector.broadcast %137 : f32 to vector<8x256xf32>
    %139 = arith.mulf %99, %138 : vector<8x256xf32>
    %140 = arith.addf %136, %139 : vector<8x256xf32>
    %c30 = arith.constant 30 : index
    %141 = memref.load %arg2[%c30] : memref<180xf32, #tpu.memory_space<smem>>
    %142 = vector.broadcast %141 : f32 to vector<8x256xf32>
    %143 = arith.mulf %101, %142 : vector<8x256xf32>
    %144 = arith.addf %140, %143 : vector<8x256xf32>
    %c31 = arith.constant 31 : index
    %145 = memref.load %arg2[%c31] : memref<180xf32, #tpu.memory_space<smem>>
    %146 = vector.broadcast %145 : f32 to vector<8x256xf32>
    %147 = arith.mulf %103, %146 : vector<8x256xf32>
    %148 = arith.addf %144, %147 : vector<8x256xf32>
    %c32 = arith.constant 32 : index
    %149 = memref.load %arg2[%c32] : memref<180xf32, #tpu.memory_space<smem>>
    %150 = vector.broadcast %149 : f32 to vector<8x256xf32>
    %151 = arith.mulf %97, %150 : vector<8x256xf32>
    %c33 = arith.constant 33 : index
    %152 = memref.load %arg2[%c33] : memref<180xf32, #tpu.memory_space<smem>>
    %153 = vector.broadcast %152 : f32 to vector<8x256xf32>
    %154 = arith.mulf %99, %153 : vector<8x256xf32>
    %155 = arith.addf %151, %154 : vector<8x256xf32>
    %c34 = arith.constant 34 : index
    %156 = memref.load %arg2[%c34] : memref<180xf32, #tpu.memory_space<smem>>
    %157 = vector.broadcast %156 : f32 to vector<8x256xf32>
    %158 = arith.mulf %101, %157 : vector<8x256xf32>
    %159 = arith.addf %155, %158 : vector<8x256xf32>
    %c35 = arith.constant 35 : index
    %160 = memref.load %arg2[%c35] : memref<180xf32, #tpu.memory_space<smem>>
    %161 = vector.broadcast %160 : f32 to vector<8x256xf32>
    %162 = arith.mulf %103, %161 : vector<8x256xf32>
    %163 = arith.addf %159, %162 : vector<8x256xf32>
    %c0_8 = arith.constant 0 : index
    %c0_9 = arith.constant 0 : index
    %c0_10 = arith.constant 0 : index
    %164 = vector.load %arg3[%c0_8, %c0_9, %c0_10] : memref<9x1x256xf32, #tpu.memory_space<vmem>>, vector<1x1x256xf32>
    %165 = vector.shape_cast %164 : vector<1x1x256xf32> to vector<1x256xf32>
    %c17_i32 = arith.constant 17 : i32
    %166 = tpu.dynamic_rotate %118 by %c17_i32 dim 1 : vector<8x256xf32>, i32 -> vector<8x256xf32>
    %167 = vector.broadcast %165 : vector<1x256xf32> to vector<8x256xf32>
    %168 = arith.mulf %166, %167 : vector<8x256xf32>
    %c17_i32_11 = arith.constant 17 : i32
    %169 = tpu.dynamic_rotate %133 by %c17_i32_11 dim 1 : vector<8x256xf32>, i32 -> vector<8x256xf32>
    %170 = vector.broadcast %165 : vector<1x256xf32> to vector<8x256xf32>
    %171 = arith.mulf %169, %170 : vector<8x256xf32>
    %c17_i32_12 = arith.constant 17 : i32
    %172 = tpu.dynamic_rotate %148 by %c17_i32_12 dim 1 : vector<8x256xf32>, i32 -> vector<8x256xf32>
    %173 = vector.broadcast %165 : vector<1x256xf32> to vector<8x256xf32>
    %174 = arith.mulf %172, %173 : vector<8x256xf32>
    %c17_i32_13 = arith.constant 17 : i32
    %175 = tpu.dynamic_rotate %163 by %c17_i32_13 dim 1 : vector<8x256xf32>, i32 -> vector<8x256xf32>
    %176 = vector.broadcast %165 : vector<1x256xf32> to vector<8x256xf32>
    %177 = arith.mulf %175, %176 : vector<8x256xf32>
    %c36 = arith.constant 36 : index
    %178 = memref.load %arg2[%c36] : memref<180xf32, #tpu.memory_space<smem>>
    %179 = vector.broadcast %178 : f32 to vector<8x256xf32>
    %180 = arith.mulf %168, %179 : vector<8x256xf32>
    %c37 = arith.constant 37 : index
    %181 = memref.load %arg2[%c37] : memref<180xf32, #tpu.memory_space<smem>>
    %182 = vector.broadcast %181 : f32 to vector<8x256xf32>
    %183 = arith.mulf %171, %182 : vector<8x256xf32>
    %184 = arith.addf %180, %183 : vector<8x256xf32>
    %c38 = arith.constant 38 : index
    %185 = memref.load %arg2[%c38] : memref<180xf32, #tpu.memory_space<smem>>
    %186 = vector.broadcast %185 : f32 to vector<8x256xf32>
    %187 = arith.mulf %174, %186 : vector<8x256xf32>
    %188 = arith.addf %184, %187 : vector<8x256xf32>
    %c39 = arith.constant 39 : index
    %189 = memref.load %arg2[%c39] : memref<180xf32, #tpu.memory_space<smem>>
    %190 = vector.broadcast %189 : f32 to vector<8x256xf32>
    %191 = arith.mulf %177, %190 : vector<8x256xf32>
    %192 = arith.addf %188, %191 : vector<8x256xf32>
    %c40 = arith.constant 40 : index
    %193 = memref.load %arg2[%c40] : memref<180xf32, #tpu.memory_space<smem>>
    %194 = vector.broadcast %193 : f32 to vector<8x256xf32>
    %195 = arith.mulf %168, %194 : vector<8x256xf32>
    %c41 = arith.constant 41 : index
    %196 = memref.load %arg2[%c41] : memref<180xf32, #tpu.memory_space<smem>>
    %197 = vector.broadcast %196 : f32 to vector<8x256xf32>
    %198 = arith.mulf %171, %197 : vector<8x256xf32>
    %199 = arith.addf %195, %198 : vector<8x256xf32>
    %c42 = arith.constant 42 : index
    %200 = memref.load %arg2[%c42] : memref<180xf32, #tpu.memory_space<smem>>
    %201 = vector.broadcast %200 : f32 to vector<8x256xf32>
    %202 = arith.mulf %174, %201 : vector<8x256xf32>
    %203 = arith.addf %199, %202 : vector<8x256xf32>
    %c43 = arith.constant 43 : index
    %204 = memref.load %arg2[%c43] : memref<180xf32, #tpu.memory_space<smem>>
    %205 = vector.broadcast %204 : f32 to vector<8x256xf32>
    %206 = arith.mulf %177, %205 : vector<8x256xf32>
    %207 = arith.addf %203, %206 : vector<8x256xf32>
    %c44 = arith.constant 44 : index
    %208 = memref.load %arg2[%c44] : memref<180xf32, #tpu.memory_space<smem>>
    %209 = vector.broadcast %208 : f32 to vector<8x256xf32>
    %210 = arith.mulf %168, %209 : vector<8x256xf32>
    %c45 = arith.constant 45 : index
    %211 = memref.load %arg2[%c45] : memref<180xf32, #tpu.memory_space<smem>>
    %212 = vector.broadcast %211 : f32 to vector<8x256xf32>
    %213 = arith.mulf %171, %212 : vector<8x256xf32>
    %214 = arith.addf %210, %213 : vector<8x256xf32>
    %c46 = arith.constant 46 : index
    %215 = memref.load %arg2[%c46] : memref<180xf32, #tpu.memory_space<smem>>
    %216 = vector.broadcast %215 : f32 to vector<8x256xf32>
    %217 = arith.mulf %174, %216 : vector<8x256xf32>
    %218 = arith.addf %214, %217 : vector<8x256xf32>
    %c47 = arith.constant 47 : index
    %219 = memref.load %arg2[%c47] : memref<180xf32, #tpu.memory_space<smem>>
    %220 = vector.broadcast %219 : f32 to vector<8x256xf32>
    %221 = arith.mulf %177, %220 : vector<8x256xf32>
    %222 = arith.addf %218, %221 : vector<8x256xf32>
    %c48 = arith.constant 48 : index
    %223 = memref.load %arg2[%c48] : memref<180xf32, #tpu.memory_space<smem>>
    %224 = vector.broadcast %223 : f32 to vector<8x256xf32>
    %225 = arith.mulf %168, %224 : vector<8x256xf32>
    %c49 = arith.constant 49 : index
    %226 = memref.load %arg2[%c49] : memref<180xf32, #tpu.memory_space<smem>>
    %227 = vector.broadcast %226 : f32 to vector<8x256xf32>
    %228 = arith.mulf %171, %227 : vector<8x256xf32>
    %229 = arith.addf %225, %228 : vector<8x256xf32>
    %c50 = arith.constant 50 : index
    %230 = memref.load %arg2[%c50] : memref<180xf32, #tpu.memory_space<smem>>
    %231 = vector.broadcast %230 : f32 to vector<8x256xf32>
    %232 = arith.mulf %174, %231 : vector<8x256xf32>
    %233 = arith.addf %229, %232 : vector<8x256xf32>
    %c51 = arith.constant 51 : index
    %234 = memref.load %arg2[%c51] : memref<180xf32, #tpu.memory_space<smem>>
    %235 = vector.broadcast %234 : f32 to vector<8x256xf32>
    %236 = arith.mulf %177, %235 : vector<8x256xf32>
    %237 = arith.addf %233, %236 : vector<8x256xf32>
    %c1_14 = arith.constant 1 : index
    %c0_15 = arith.constant 0 : index
    %c0_16 = arith.constant 0 : index
    %238 = vector.load %arg3[%c1_14, %c0_15, %c0_16] : memref<9x1x256xf32, #tpu.memory_space<vmem>>, vector<1x1x256xf32>
    %239 = vector.shape_cast %238 : vector<1x1x256xf32> to vector<1x256xf32>
    %c16_i32 = arith.constant 16 : i32
    %240 = tpu.dynamic_rotate %118 by %c16_i32 dim 1 : vector<8x256xf32>, i32 -> vector<8x256xf32>
    %241 = vector.broadcast %239 : vector<1x256xf32> to vector<8x256xf32>
    %242 = arith.mulf %240, %241 : vector<8x256xf32>
    %c16_i32_17 = arith.constant 16 : i32
    %243 = tpu.dynamic_rotate %133 by %c16_i32_17 dim 1 : vector<8x256xf32>, i32 -> vector<8x256xf32>
    %244 = vector.broadcast %239 : vector<1x256xf32> to vector<8x256xf32>
    %245 = arith.mulf %243, %244 : vector<8x256xf32>
    %c16_i32_18 = arith.constant 16 : i32
    %246 = tpu.dynamic_rotate %148 by %c16_i32_18 dim 1 : vector<8x256xf32>, i32 -> vector<8x256xf32>
    %247 = vector.broadcast %239 : vector<1x256xf32> to vector<8x256xf32>
    %248 = arith.mulf %246, %247 : vector<8x256xf32>
    %c16_i32_19 = arith.constant 16 : i32
    %249 = tpu.dynamic_rotate %163 by %c16_i32_19 dim 1 : vector<8x256xf32>, i32 -> vector<8x256xf32>
    %250 = vector.broadcast %239 : vector<1x256xf32> to vector<8x256xf32>
    %251 = arith.mulf %249, %250 : vector<8x256xf32>
    %c52 = arith.constant 52 : index
    %252 = memref.load %arg2[%c52] : memref<180xf32, #tpu.memory_space<smem>>
    %253 = vector.broadcast %252 : f32 to vector<8x256xf32>
    %254 = arith.mulf %242, %253 : vector<8x256xf32>
    %c53 = arith.constant 53 : index
    %255 = memref.load %arg2[%c53] : memref<180xf32, #tpu.memory_space<smem>>
    %256 = vector.broadcast %255 : f32 to vector<8x256xf32>
    %257 = arith.mulf %245, %256 : vector<8x256xf32>
    %258 = arith.addf %254, %257 : vector<8x256xf32>
    %c54 = arith.constant 54 : index
    %259 = memref.load %arg2[%c54] : memref<180xf32, #tpu.memory_space<smem>>
    %260 = vector.broadcast %259 : f32 to vector<8x256xf32>
    %261 = arith.mulf %248, %260 : vector<8x256xf32>
    %262 = arith.addf %258, %261 : vector<8x256xf32>
    %c55 = arith.constant 55 : index
    %263 = memref.load %arg2[%c55] : memref<180xf32, #tpu.memory_space<smem>>
    %264 = vector.broadcast %263 : f32 to vector<8x256xf32>
    %265 = arith.mulf %251, %264 : vector<8x256xf32>
    %266 = arith.addf %262, %265 : vector<8x256xf32>
    %267 = arith.addf %192, %266 : vector<8x256xf32>
    %c56 = arith.constant 56 : index
    %268 = memref.load %arg2[%c56] : memref<180xf32, #tpu.memory_space<smem>>
    %269 = vector.broadcast %268 : f32 to vector<8x256xf32>
    %270 = arith.mulf %242, %269 : vector<8x256xf32>
    %c57 = arith.constant 57 : index
    %271 = memref.load %arg2[%c57] : memref<180xf32, #tpu.memory_space<smem>>
    %272 = vector.broadcast %271 : f32 to vector<8x256xf32>
    %273 = arith.mulf %245, %272 : vector<8x256xf32>
    %274 = arith.addf %270, %273 : vector<8x256xf32>
    %c58 = arith.constant 58 : index
    %275 = memref.load %arg2[%c58] : memref<180xf32, #tpu.memory_space<smem>>
    %276 = vector.broadcast %275 : f32 to vector<8x256xf32>
    %277 = arith.mulf %248, %276 : vector<8x256xf32>
    %278 = arith.addf %274, %277 : vector<8x256xf32>
    %c59 = arith.constant 59 : index
    %279 = memref.load %arg2[%c59] : memref<180xf32, #tpu.memory_space<smem>>
    %280 = vector.broadcast %279 : f32 to vector<8x256xf32>
    %281 = arith.mulf %251, %280 : vector<8x256xf32>
    %282 = arith.addf %278, %281 : vector<8x256xf32>
    %283 = arith.addf %207, %282 : vector<8x256xf32>
    %c60 = arith.constant 60 : index
    %284 = memref.load %arg2[%c60] : memref<180xf32, #tpu.memory_space<smem>>
    %285 = vector.broadcast %284 : f32 to vector<8x256xf32>
    %286 = arith.mulf %242, %285 : vector<8x256xf32>
    %c61 = arith.constant 61 : index
    %287 = memref.load %arg2[%c61] : memref<180xf32, #tpu.memory_space<smem>>
    %288 = vector.broadcast %287 : f32 to vector<8x256xf32>
    %289 = arith.mulf %245, %288 : vector<8x256xf32>
    %290 = arith.addf %286, %289 : vector<8x256xf32>
    %c62 = arith.constant 62 : index
    %291 = memref.load %arg2[%c62] : memref<180xf32, #tpu.memory_space<smem>>
    %292 = vector.broadcast %291 : f32 to vector<8x256xf32>
    %293 = arith.mulf %248, %292 : vector<8x256xf32>
    %294 = arith.addf %290, %293 : vector<8x256xf32>
    %c63 = arith.constant 63 : index
    %295 = memref.load %arg2[%c63] : memref<180xf32, #tpu.memory_space<smem>>
    %296 = vector.broadcast %295 : f32 to vector<8x256xf32>
    %297 = arith.mulf %251, %296 : vector<8x256xf32>
    %298 = arith.addf %294, %297 : vector<8x256xf32>
    %299 = arith.addf %222, %298 : vector<8x256xf32>
    %c64 = arith.constant 64 : index
    %300 = memref.load %arg2[%c64] : memref<180xf32, #tpu.memory_space<smem>>
    %301 = vector.broadcast %300 : f32 to vector<8x256xf32>
    %302 = arith.mulf %242, %301 : vector<8x256xf32>
    %c65 = arith.constant 65 : index
    %303 = memref.load %arg2[%c65] : memref<180xf32, #tpu.memory_space<smem>>
    %304 = vector.broadcast %303 : f32 to vector<8x256xf32>
    %305 = arith.mulf %245, %304 : vector<8x256xf32>
    %306 = arith.addf %302, %305 : vector<8x256xf32>
    %c66 = arith.constant 66 : index
    %307 = memref.load %arg2[%c66] : memref<180xf32, #tpu.memory_space<smem>>
    %308 = vector.broadcast %307 : f32 to vector<8x256xf32>
    %309 = arith.mulf %248, %308 : vector<8x256xf32>
    %310 = arith.addf %306, %309 : vector<8x256xf32>
    %c67 = arith.constant 67 : index
    %311 = memref.load %arg2[%c67] : memref<180xf32, #tpu.memory_space<smem>>
    %312 = vector.broadcast %311 : f32 to vector<8x256xf32>
    %313 = arith.mulf %251, %312 : vector<8x256xf32>
    %314 = arith.addf %310, %313 : vector<8x256xf32>
    %315 = arith.addf %237, %314 : vector<8x256xf32>
    %c2_20 = arith.constant 2 : index
    %c0_21 = arith.constant 0 : index
    %c0_22 = arith.constant 0 : index
    %316 = vector.load %arg3[%c2_20, %c0_21, %c0_22] : memref<9x1x256xf32, #tpu.memory_space<vmem>>, vector<1x1x256xf32>
    %317 = vector.shape_cast %316 : vector<1x1x256xf32> to vector<1x256xf32>
    %c15_i32 = arith.constant 15 : i32
    %318 = tpu.dynamic_rotate %118 by %c15_i32 dim 1 : vector<8x256xf32>, i32 -> vector<8x256xf32>
    %319 = vector.broadcast %317 : vector<1x256xf32> to vector<8x256xf32>
    %320 = arith.mulf %318, %319 : vector<8x256xf32>
    %c15_i32_23 = arith.constant 15 : i32
    %321 = tpu.dynamic_rotate %133 by %c15_i32_23 dim 1 : vector<8x256xf32>, i32 -> vector<8x256xf32>
    %322 = vector.broadcast %317 : vector<1x256xf32> to vector<8x256xf32>
    %323 = arith.mulf %321, %322 : vector<8x256xf32>
    %c15_i32_24 = arith.constant 15 : i32
    %324 = tpu.dynamic_rotate %148 by %c15_i32_24 dim 1 : vector<8x256xf32>, i32 -> vector<8x256xf32>
    %325 = vector.broadcast %317 : vector<1x256xf32> to vector<8x256xf32>
    %326 = arith.mulf %324, %325 : vector<8x256xf32>
    %c15_i32_25 = arith.constant 15 : i32
    %327 = tpu.dynamic_rotate %163 by %c15_i32_25 dim 1 : vector<8x256xf32>, i32 -> vector<8x256xf32>
    %328 = vector.broadcast %317 : vector<1x256xf32> to vector<8x256xf32>
    %329 = arith.mulf %327, %328 : vector<8x256xf32>
    %c68 = arith.constant 68 : index
    %330 = memref.load %arg2[%c68] : memref<180xf32, #tpu.memory_space<smem>>
    %331 = vector.broadcast %330 : f32 to vector<8x256xf32>
    %332 = arith.mulf %320, %331 : vector<8x256xf32>
    %c69 = arith.constant 69 : index
    %333 = memref.load %arg2[%c69] : memref<180xf32, #tpu.memory_space<smem>>
    %334 = vector.broadcast %333 : f32 to vector<8x256xf32>
    %335 = arith.mulf %323, %334 : vector<8x256xf32>
    %336 = arith.addf %332, %335 : vector<8x256xf32>
    %c70 = arith.constant 70 : index
    %337 = memref.load %arg2[%c70] : memref<180xf32, #tpu.memory_space<smem>>
    %338 = vector.broadcast %337 : f32 to vector<8x256xf32>
    %339 = arith.mulf %326, %338 : vector<8x256xf32>
    %340 = arith.addf %336, %339 : vector<8x256xf32>
    %c71 = arith.constant 71 : index
    %341 = memref.load %arg2[%c71] : memref<180xf32, #tpu.memory_space<smem>>
    %342 = vector.broadcast %341 : f32 to vector<8x256xf32>
    %343 = arith.mulf %329, %342 : vector<8x256xf32>
    %344 = arith.addf %340, %343 : vector<8x256xf32>
    %345 = arith.addf %267, %344 : vector<8x256xf32>
    %c72 = arith.constant 72 : index
    %346 = memref.load %arg2[%c72] : memref<180xf32, #tpu.memory_space<smem>>
    %347 = vector.broadcast %346 : f32 to vector<8x256xf32>
    %348 = arith.mulf %320, %347 : vector<8x256xf32>
    %c73 = arith.constant 73 : index
    %349 = memref.load %arg2[%c73] : memref<180xf32, #tpu.memory_space<smem>>
    %350 = vector.broadcast %349 : f32 to vector<8x256xf32>
    %351 = arith.mulf %323, %350 : vector<8x256xf32>
    %352 = arith.addf %348, %351 : vector<8x256xf32>
    %c74 = arith.constant 74 : index
    %353 = memref.load %arg2[%c74] : memref<180xf32, #tpu.memory_space<smem>>
    %354 = vector.broadcast %353 : f32 to vector<8x256xf32>
    %355 = arith.mulf %326, %354 : vector<8x256xf32>
    %356 = arith.addf %352, %355 : vector<8x256xf32>
    %c75 = arith.constant 75 : index
    %357 = memref.load %arg2[%c75] : memref<180xf32, #tpu.memory_space<smem>>
    %358 = vector.broadcast %357 : f32 to vector<8x256xf32>
    %359 = arith.mulf %329, %358 : vector<8x256xf32>
    %360 = arith.addf %356, %359 : vector<8x256xf32>
    %361 = arith.addf %283, %360 : vector<8x256xf32>
    %c76 = arith.constant 76 : index
    %362 = memref.load %arg2[%c76] : memref<180xf32, #tpu.memory_space<smem>>
    %363 = vector.broadcast %362 : f32 to vector<8x256xf32>
    %364 = arith.mulf %320, %363 : vector<8x256xf32>
    %c77 = arith.constant 77 : index
    %365 = memref.load %arg2[%c77] : memref<180xf32, #tpu.memory_space<smem>>
    %366 = vector.broadcast %365 : f32 to vector<8x256xf32>
    %367 = arith.mulf %323, %366 : vector<8x256xf32>
    %368 = arith.addf %364, %367 : vector<8x256xf32>
    %c78 = arith.constant 78 : index
    %369 = memref.load %arg2[%c78] : memref<180xf32, #tpu.memory_space<smem>>
    %370 = vector.broadcast %369 : f32 to vector<8x256xf32>
    %371 = arith.mulf %326, %370 : vector<8x256xf32>
    %372 = arith.addf %368, %371 : vector<8x256xf32>
    %c79 = arith.constant 79 : index
    %373 = memref.load %arg2[%c79] : memref<180xf32, #tpu.memory_space<smem>>
    %374 = vector.broadcast %373 : f32 to vector<8x256xf32>
    %375 = arith.mulf %329, %374 : vector<8x256xf32>
    %376 = arith.addf %372, %375 : vector<8x256xf32>
    %377 = arith.addf %299, %376 : vector<8x256xf32>
    %c80 = arith.constant 80 : index
    %378 = memref.load %arg2[%c80] : memref<180xf32, #tpu.memory_space<smem>>
    %379 = vector.broadcast %378 : f32 to vector<8x256xf32>
    %380 = arith.mulf %320, %379 : vector<8x256xf32>
    %c81 = arith.constant 81 : index
    %381 = memref.load %arg2[%c81] : memref<180xf32, #tpu.memory_space<smem>>
    %382 = vector.broadcast %381 : f32 to vector<8x256xf32>
    %383 = arith.mulf %323, %382 : vector<8x256xf32>
    %384 = arith.addf %380, %383 : vector<8x256xf32>
    %c82 = arith.constant 82 : index
    %385 = memref.load %arg2[%c82] : memref<180xf32, #tpu.memory_space<smem>>
    %386 = vector.broadcast %385 : f32 to vector<8x256xf32>
    %387 = arith.mulf %326, %386 : vector<8x256xf32>
    %388 = arith.addf %384, %387 : vector<8x256xf32>
    %c83 = arith.constant 83 : index
    %389 = memref.load %arg2[%c83] : memref<180xf32, #tpu.memory_space<smem>>
    %390 = vector.broadcast %389 : f32 to vector<8x256xf32>
    %391 = arith.mulf %329, %390 : vector<8x256xf32>
    %392 = arith.addf %388, %391 : vector<8x256xf32>
    %393 = arith.addf %315, %392 : vector<8x256xf32>
    %c3_26 = arith.constant 3 : index
    %c0_27 = arith.constant 0 : index
    %c0_28 = arith.constant 0 : index
    %394 = vector.load %arg3[%c3_26, %c0_27, %c0_28] : memref<9x1x256xf32, #tpu.memory_space<vmem>>, vector<1x1x256xf32>
    %395 = vector.shape_cast %394 : vector<1x1x256xf32> to vector<1x256xf32>
    %c1_i32 = arith.constant 1 : i32
    %396 = tpu.dynamic_rotate %118 by %c1_i32 dim 1 : vector<8x256xf32>, i32 -> vector<8x256xf32>
    %397 = vector.broadcast %395 : vector<1x256xf32> to vector<8x256xf32>
    %398 = arith.mulf %396, %397 : vector<8x256xf32>
    %c1_i32_29 = arith.constant 1 : i32
    %399 = tpu.dynamic_rotate %133 by %c1_i32_29 dim 1 : vector<8x256xf32>, i32 -> vector<8x256xf32>
    %400 = vector.broadcast %395 : vector<1x256xf32> to vector<8x256xf32>
    %401 = arith.mulf %399, %400 : vector<8x256xf32>
    %c1_i32_30 = arith.constant 1 : i32
    %402 = tpu.dynamic_rotate %148 by %c1_i32_30 dim 1 : vector<8x256xf32>, i32 -> vector<8x256xf32>
    %403 = vector.broadcast %395 : vector<1x256xf32> to vector<8x256xf32>
    %404 = arith.mulf %402, %403 : vector<8x256xf32>
    %c1_i32_31 = arith.constant 1 : i32
    %405 = tpu.dynamic_rotate %163 by %c1_i32_31 dim 1 : vector<8x256xf32>, i32 -> vector<8x256xf32>
    %406 = vector.broadcast %395 : vector<1x256xf32> to vector<8x256xf32>
    %407 = arith.mulf %405, %406 : vector<8x256xf32>
    %c84 = arith.constant 84 : index
    %408 = memref.load %arg2[%c84] : memref<180xf32, #tpu.memory_space<smem>>
    %409 = vector.broadcast %408 : f32 to vector<8x256xf32>
    %410 = arith.mulf %398, %409 : vector<8x256xf32>
    %c85 = arith.constant 85 : index
    %411 = memref.load %arg2[%c85] : memref<180xf32, #tpu.memory_space<smem>>
    %412 = vector.broadcast %411 : f32 to vector<8x256xf32>
    %413 = arith.mulf %401, %412 : vector<8x256xf32>
    %414 = arith.addf %410, %413 : vector<8x256xf32>
    %c86 = arith.constant 86 : index
    %415 = memref.load %arg2[%c86] : memref<180xf32, #tpu.memory_space<smem>>
    %416 = vector.broadcast %415 : f32 to vector<8x256xf32>
    %417 = arith.mulf %404, %416 : vector<8x256xf32>
    %418 = arith.addf %414, %417 : vector<8x256xf32>
    %c87 = arith.constant 87 : index
    %419 = memref.load %arg2[%c87] : memref<180xf32, #tpu.memory_space<smem>>
    %420 = vector.broadcast %419 : f32 to vector<8x256xf32>
    %421 = arith.mulf %407, %420 : vector<8x256xf32>
    %422 = arith.addf %418, %421 : vector<8x256xf32>
    %423 = arith.addf %345, %422 : vector<8x256xf32>
    %c88 = arith.constant 88 : index
    %424 = memref.load %arg2[%c88] : memref<180xf32, #tpu.memory_space<smem>>
    %425 = vector.broadcast %424 : f32 to vector<8x256xf32>
    %426 = arith.mulf %398, %425 : vector<8x256xf32>
    %c89 = arith.constant 89 : index
    %427 = memref.load %arg2[%c89] : memref<180xf32, #tpu.memory_space<smem>>
    %428 = vector.broadcast %427 : f32 to vector<8x256xf32>
    %429 = arith.mulf %401, %428 : vector<8x256xf32>
    %430 = arith.addf %426, %429 : vector<8x256xf32>
    %c90 = arith.constant 90 : index
    %431 = memref.load %arg2[%c90] : memref<180xf32, #tpu.memory_space<smem>>
    %432 = vector.broadcast %431 : f32 to vector<8x256xf32>
    %433 = arith.mulf %404, %432 : vector<8x256xf32>
    %434 = arith.addf %430, %433 : vector<8x256xf32>
    %c91 = arith.constant 91 : index
    %435 = memref.load %arg2[%c91] : memref<180xf32, #tpu.memory_space<smem>>
    %436 = vector.broadcast %435 : f32 to vector<8x256xf32>
    %437 = arith.mulf %407, %436 : vector<8x256xf32>
    %438 = arith.addf %434, %437 : vector<8x256xf32>
    %439 = arith.addf %361, %438 : vector<8x256xf32>
    %c92 = arith.constant 92 : index
    %440 = memref.load %arg2[%c92] : memref<180xf32, #tpu.memory_space<smem>>
    %441 = vector.broadcast %440 : f32 to vector<8x256xf32>
    %442 = arith.mulf %398, %441 : vector<8x256xf32>
    %c93 = arith.constant 93 : index
    %443 = memref.load %arg2[%c93] : memref<180xf32, #tpu.memory_space<smem>>
    %444 = vector.broadcast %443 : f32 to vector<8x256xf32>
    %445 = arith.mulf %401, %444 : vector<8x256xf32>
    %446 = arith.addf %442, %445 : vector<8x256xf32>
    %c94 = arith.constant 94 : index
    %447 = memref.load %arg2[%c94] : memref<180xf32, #tpu.memory_space<smem>>
    %448 = vector.broadcast %447 : f32 to vector<8x256xf32>
    %449 = arith.mulf %404, %448 : vector<8x256xf32>
    %450 = arith.addf %446, %449 : vector<8x256xf32>
    %c95 = arith.constant 95 : index
    %451 = memref.load %arg2[%c95] : memref<180xf32, #tpu.memory_space<smem>>
    %452 = vector.broadcast %451 : f32 to vector<8x256xf32>
    %453 = arith.mulf %407, %452 : vector<8x256xf32>
    %454 = arith.addf %450, %453 : vector<8x256xf32>
    %455 = arith.addf %377, %454 : vector<8x256xf32>
    %c96 = arith.constant 96 : index
    %456 = memref.load %arg2[%c96] : memref<180xf32, #tpu.memory_space<smem>>
    %457 = vector.broadcast %456 : f32 to vector<8x256xf32>
    %458 = arith.mulf %398, %457 : vector<8x256xf32>
    %c97 = arith.constant 97 : index
    %459 = memref.load %arg2[%c97] : memref<180xf32, #tpu.memory_space<smem>>
    %460 = vector.broadcast %459 : f32 to vector<8x256xf32>
    %461 = arith.mulf %401, %460 : vector<8x256xf32>
    %462 = arith.addf %458, %461 : vector<8x256xf32>
    %c98 = arith.constant 98 : index
    %463 = memref.load %arg2[%c98] : memref<180xf32, #tpu.memory_space<smem>>
    %464 = vector.broadcast %463 : f32 to vector<8x256xf32>
    %465 = arith.mulf %404, %464 : vector<8x256xf32>
    %466 = arith.addf %462, %465 : vector<8x256xf32>
    %c99 = arith.constant 99 : index
    %467 = memref.load %arg2[%c99] : memref<180xf32, #tpu.memory_space<smem>>
    %468 = vector.broadcast %467 : f32 to vector<8x256xf32>
    %469 = arith.mulf %407, %468 : vector<8x256xf32>
    %470 = arith.addf %466, %469 : vector<8x256xf32>
    %471 = arith.addf %393, %470 : vector<8x256xf32>
    %c100 = arith.constant 100 : index
    %472 = memref.load %arg2[%c100] : memref<180xf32, #tpu.memory_space<smem>>
    %473 = vector.broadcast %472 : f32 to vector<8x256xf32>
    %474 = arith.mulf %118, %473 : vector<8x256xf32>
    %c101 = arith.constant 101 : index
    %475 = memref.load %arg2[%c101] : memref<180xf32, #tpu.memory_space<smem>>
    %476 = vector.broadcast %475 : f32 to vector<8x256xf32>
    %477 = arith.mulf %133, %476 : vector<8x256xf32>
    %478 = arith.addf %474, %477 : vector<8x256xf32>
    %c102 = arith.constant 102 : index
    %479 = memref.load %arg2[%c102] : memref<180xf32, #tpu.memory_space<smem>>
    %480 = vector.broadcast %479 : f32 to vector<8x256xf32>
    %481 = arith.mulf %148, %480 : vector<8x256xf32>
    %482 = arith.addf %478, %481 : vector<8x256xf32>
    %c103 = arith.constant 103 : index
    %483 = memref.load %arg2[%c103] : memref<180xf32, #tpu.memory_space<smem>>
    %484 = vector.broadcast %483 : f32 to vector<8x256xf32>
    %485 = arith.mulf %163, %484 : vector<8x256xf32>
    %486 = arith.addf %482, %485 : vector<8x256xf32>
    %487 = arith.addf %423, %486 : vector<8x256xf32>
    %c104 = arith.constant 104 : index
    %488 = memref.load %arg2[%c104] : memref<180xf32, #tpu.memory_space<smem>>
    %489 = vector.broadcast %488 : f32 to vector<8x256xf32>
    %490 = arith.mulf %118, %489 : vector<8x256xf32>
    %c105 = arith.constant 105 : index
    %491 = memref.load %arg2[%c105] : memref<180xf32, #tpu.memory_space<smem>>
    %492 = vector.broadcast %491 : f32 to vector<8x256xf32>
    %493 = arith.mulf %133, %492 : vector<8x256xf32>
    %494 = arith.addf %490, %493 : vector<8x256xf32>
    %c106 = arith.constant 106 : index
    %495 = memref.load %arg2[%c106] : memref<180xf32, #tpu.memory_space<smem>>
    %496 = vector.broadcast %495 : f32 to vector<8x256xf32>
    %497 = arith.mulf %148, %496 : vector<8x256xf32>
    %498 = arith.addf %494, %497 : vector<8x256xf32>
    %c107 = arith.constant 107 : index
    %499 = memref.load %arg2[%c107] : memref<180xf32, #tpu.memory_space<smem>>
    %500 = vector.broadcast %499 : f32 to vector<8x256xf32>
    %501 = arith.mulf %163, %500 : vector<8x256xf32>
    %502 = arith.addf %498, %501 : vector<8x256xf32>
    %503 = arith.addf %439, %502 : vector<8x256xf32>
    %c108 = arith.constant 108 : index
    %504 = memref.load %arg2[%c108] : memref<180xf32, #tpu.memory_space<smem>>
    %505 = vector.broadcast %504 : f32 to vector<8x256xf32>
    %506 = arith.mulf %118, %505 : vector<8x256xf32>
    %c109 = arith.constant 109 : index
    %507 = memref.load %arg2[%c109] : memref<180xf32, #tpu.memory_space<smem>>
    %508 = vector.broadcast %507 : f32 to vector<8x256xf32>
    %509 = arith.mulf %133, %508 : vector<8x256xf32>
    %510 = arith.addf %506, %509 : vector<8x256xf32>
    %c110 = arith.constant 110 : index
    %511 = memref.load %arg2[%c110] : memref<180xf32, #tpu.memory_space<smem>>
    %512 = vector.broadcast %511 : f32 to vector<8x256xf32>
    %513 = arith.mulf %148, %512 : vector<8x256xf32>
    %514 = arith.addf %510, %513 : vector<8x256xf32>
    %c111 = arith.constant 111 : index
    %515 = memref.load %arg2[%c111] : memref<180xf32, #tpu.memory_space<smem>>
    %516 = vector.broadcast %515 : f32 to vector<8x256xf32>
    %517 = arith.mulf %163, %516 : vector<8x256xf32>
    %518 = arith.addf %514, %517 : vector<8x256xf32>
    %519 = arith.addf %455, %518 : vector<8x256xf32>
    %c112 = arith.constant 112 : index
    %520 = memref.load %arg2[%c112] : memref<180xf32, #tpu.memory_space<smem>>
    %521 = vector.broadcast %520 : f32 to vector<8x256xf32>
    %522 = arith.mulf %118, %521 : vector<8x256xf32>
    %c113 = arith.constant 113 : index
    %523 = memref.load %arg2[%c113] : memref<180xf32, #tpu.memory_space<smem>>
    %524 = vector.broadcast %523 : f32 to vector<8x256xf32>
    %525 = arith.mulf %133, %524 : vector<8x256xf32>
    %526 = arith.addf %522, %525 : vector<8x256xf32>
    %c114 = arith.constant 114 : index
    %527 = memref.load %arg2[%c114] : memref<180xf32, #tpu.memory_space<smem>>
    %528 = vector.broadcast %527 : f32 to vector<8x256xf32>
    %529 = arith.mulf %148, %528 : vector<8x256xf32>
    %530 = arith.addf %526, %529 : vector<8x256xf32>
    %c115 = arith.constant 115 : index
    %531 = memref.load %arg2[%c115] : memref<180xf32, #tpu.memory_space<smem>>
    %532 = vector.broadcast %531 : f32 to vector<8x256xf32>
    %533 = arith.mulf %163, %532 : vector<8x256xf32>
    %534 = arith.addf %530, %533 : vector<8x256xf32>
    %535 = arith.addf %471, %534 : vector<8x256xf32>
    %c5_32 = arith.constant 5 : index
    %c0_33 = arith.constant 0 : index
    %c0_34 = arith.constant 0 : index
    %536 = vector.load %arg3[%c5_32, %c0_33, %c0_34] : memref<9x1x256xf32, #tpu.memory_space<vmem>>, vector<1x1x256xf32>
    %537 = vector.shape_cast %536 : vector<1x1x256xf32> to vector<1x256xf32>
    %c255_i32 = arith.constant 255 : i32
    %538 = tpu.dynamic_rotate %118 by %c255_i32 dim 1 : vector<8x256xf32>, i32 -> vector<8x256xf32>
    %539 = vector.broadcast %537 : vector<1x256xf32> to vector<8x256xf32>
    %540 = arith.mulf %538, %539 : vector<8x256xf32>
    %c255_i32_35 = arith.constant 255 : i32
    %541 = tpu.dynamic_rotate %133 by %c255_i32_35 dim 1 : vector<8x256xf32>, i32 -> vector<8x256xf32>
    %542 = vector.broadcast %537 : vector<1x256xf32> to vector<8x256xf32>
    %543 = arith.mulf %541, %542 : vector<8x256xf32>
    %c255_i32_36 = arith.constant 255 : i32
    %544 = tpu.dynamic_rotate %148 by %c255_i32_36 dim 1 : vector<8x256xf32>, i32 -> vector<8x256xf32>
    %545 = vector.broadcast %537 : vector<1x256xf32> to vector<8x256xf32>
    %546 = arith.mulf %544, %545 : vector<8x256xf32>
    %c255_i32_37 = arith.constant 255 : i32
    %547 = tpu.dynamic_rotate %163 by %c255_i32_37 dim 1 : vector<8x256xf32>, i32 -> vector<8x256xf32>
    %548 = vector.broadcast %537 : vector<1x256xf32> to vector<8x256xf32>
    %549 = arith.mulf %547, %548 : vector<8x256xf32>
    %c116 = arith.constant 116 : index
    %550 = memref.load %arg2[%c116] : memref<180xf32, #tpu.memory_space<smem>>
    %551 = vector.broadcast %550 : f32 to vector<8x256xf32>
    %552 = arith.mulf %540, %551 : vector<8x256xf32>
    %c117 = arith.constant 117 : index
    %553 = memref.load %arg2[%c117] : memref<180xf32, #tpu.memory_space<smem>>
    %554 = vector.broadcast %553 : f32 to vector<8x256xf32>
    %555 = arith.mulf %543, %554 : vector<8x256xf32>
    %556 = arith.addf %552, %555 : vector<8x256xf32>
    %c118 = arith.constant 118 : index
    %557 = memref.load %arg2[%c118] : memref<180xf32, #tpu.memory_space<smem>>
    %558 = vector.broadcast %557 : f32 to vector<8x256xf32>
    %559 = arith.mulf %546, %558 : vector<8x256xf32>
    %560 = arith.addf %556, %559 : vector<8x256xf32>
    %c119 = arith.constant 119 : index
    %561 = memref.load %arg2[%c119] : memref<180xf32, #tpu.memory_space<smem>>
    %562 = vector.broadcast %561 : f32 to vector<8x256xf32>
    %563 = arith.mulf %549, %562 : vector<8x256xf32>
    %564 = arith.addf %560, %563 : vector<8x256xf32>
    %565 = arith.addf %487, %564 : vector<8x256xf32>
    %c120 = arith.constant 120 : index
    %566 = memref.load %arg2[%c120] : memref<180xf32, #tpu.memory_space<smem>>
    %567 = vector.broadcast %566 : f32 to vector<8x256xf32>
    %568 = arith.mulf %540, %567 : vector<8x256xf32>
    %c121 = arith.constant 121 : index
    %569 = memref.load %arg2[%c121] : memref<180xf32, #tpu.memory_space<smem>>
    %570 = vector.broadcast %569 : f32 to vector<8x256xf32>
    %571 = arith.mulf %543, %570 : vector<8x256xf32>
    %572 = arith.addf %568, %571 : vector<8x256xf32>
    %c122 = arith.constant 122 : index
    %573 = memref.load %arg2[%c122] : memref<180xf32, #tpu.memory_space<smem>>
    %574 = vector.broadcast %573 : f32 to vector<8x256xf32>
    %575 = arith.mulf %546, %574 : vector<8x256xf32>
    %576 = arith.addf %572, %575 : vector<8x256xf32>
    %c123 = arith.constant 123 : index
    %577 = memref.load %arg2[%c123] : memref<180xf32, #tpu.memory_space<smem>>
    %578 = vector.broadcast %577 : f32 to vector<8x256xf32>
    %579 = arith.mulf %549, %578 : vector<8x256xf32>
    %580 = arith.addf %576, %579 : vector<8x256xf32>
    %581 = arith.addf %503, %580 : vector<8x256xf32>
    %c124 = arith.constant 124 : index
    %582 = memref.load %arg2[%c124] : memref<180xf32, #tpu.memory_space<smem>>
    %583 = vector.broadcast %582 : f32 to vector<8x256xf32>
    %584 = arith.mulf %540, %583 : vector<8x256xf32>
    %c125 = arith.constant 125 : index
    %585 = memref.load %arg2[%c125] : memref<180xf32, #tpu.memory_space<smem>>
    %586 = vector.broadcast %585 : f32 to vector<8x256xf32>
    %587 = arith.mulf %543, %586 : vector<8x256xf32>
    %588 = arith.addf %584, %587 : vector<8x256xf32>
    %c126 = arith.constant 126 : index
    %589 = memref.load %arg2[%c126] : memref<180xf32, #tpu.memory_space<smem>>
    %590 = vector.broadcast %589 : f32 to vector<8x256xf32>
    %591 = arith.mulf %546, %590 : vector<8x256xf32>
    %592 = arith.addf %588, %591 : vector<8x256xf32>
    %c127 = arith.constant 127 : index
    %593 = memref.load %arg2[%c127] : memref<180xf32, #tpu.memory_space<smem>>
    %594 = vector.broadcast %593 : f32 to vector<8x256xf32>
    %595 = arith.mulf %549, %594 : vector<8x256xf32>
    %596 = arith.addf %592, %595 : vector<8x256xf32>
    %597 = arith.addf %519, %596 : vector<8x256xf32>
    %c128 = arith.constant 128 : index
    %598 = memref.load %arg2[%c128] : memref<180xf32, #tpu.memory_space<smem>>
    %599 = vector.broadcast %598 : f32 to vector<8x256xf32>
    %600 = arith.mulf %540, %599 : vector<8x256xf32>
    %c129 = arith.constant 129 : index
    %601 = memref.load %arg2[%c129] : memref<180xf32, #tpu.memory_space<smem>>
    %602 = vector.broadcast %601 : f32 to vector<8x256xf32>
    %603 = arith.mulf %543, %602 : vector<8x256xf32>
    %604 = arith.addf %600, %603 : vector<8x256xf32>
    %c130 = arith.constant 130 : index
    %605 = memref.load %arg2[%c130] : memref<180xf32, #tpu.memory_space<smem>>
    %606 = vector.broadcast %605 : f32 to vector<8x256xf32>
    %607 = arith.mulf %546, %606 : vector<8x256xf32>
    %608 = arith.addf %604, %607 : vector<8x256xf32>
    %c131 = arith.constant 131 : index
    %609 = memref.load %arg2[%c131] : memref<180xf32, #tpu.memory_space<smem>>
    %610 = vector.broadcast %609 : f32 to vector<8x256xf32>
    %611 = arith.mulf %549, %610 : vector<8x256xf32>
    %612 = arith.addf %608, %611 : vector<8x256xf32>
    %613 = arith.addf %535, %612 : vector<8x256xf32>
    %c6_38 = arith.constant 6 : index
    %c0_39 = arith.constant 0 : index
    %c0_40 = arith.constant 0 : index
    %614 = vector.load %arg3[%c6_38, %c0_39, %c0_40] : memref<9x1x256xf32, #tpu.memory_space<vmem>>, vector<1x1x256xf32>
    %615 = vector.shape_cast %614 : vector<1x1x256xf32> to vector<1x256xf32>
    %c241_i32 = arith.constant 241 : i32
    %616 = tpu.dynamic_rotate %118 by %c241_i32 dim 1 : vector<8x256xf32>, i32 -> vector<8x256xf32>
    %617 = vector.broadcast %615 : vector<1x256xf32> to vector<8x256xf32>
    %618 = arith.mulf %616, %617 : vector<8x256xf32>
    %c241_i32_41 = arith.constant 241 : i32
    %619 = tpu.dynamic_rotate %133 by %c241_i32_41 dim 1 : vector<8x256xf32>, i32 -> vector<8x256xf32>
    %620 = vector.broadcast %615 : vector<1x256xf32> to vector<8x256xf32>
    %621 = arith.mulf %619, %620 : vector<8x256xf32>
    %c241_i32_42 = arith.constant 241 : i32
    %622 = tpu.dynamic_rotate %148 by %c241_i32_42 dim 1 : vector<8x256xf32>, i32 -> vector<8x256xf32>
    %623 = vector.broadcast %615 : vector<1x256xf32> to vector<8x256xf32>
    %624 = arith.mulf %622, %623 : vector<8x256xf32>
    %c241_i32_43 = arith.constant 241 : i32
    %625 = tpu.dynamic_rotate %163 by %c241_i32_43 dim 1 : vector<8x256xf32>, i32 -> vector<8x256xf32>
    %626 = vector.broadcast %615 : vector<1x256xf32> to vector<8x256xf32>
    %627 = arith.mulf %625, %626 : vector<8x256xf32>
    %c132 = arith.constant 132 : index
    %628 = memref.load %arg2[%c132] : memref<180xf32, #tpu.memory_space<smem>>
    %629 = vector.broadcast %628 : f32 to vector<8x256xf32>
    %630 = arith.mulf %618, %629 : vector<8x256xf32>
    %c133 = arith.constant 133 : index
    %631 = memref.load %arg2[%c133] : memref<180xf32, #tpu.memory_space<smem>>
    %632 = vector.broadcast %631 : f32 to vector<8x256xf32>
    %633 = arith.mulf %621, %632 : vector<8x256xf32>
    %634 = arith.addf %630, %633 : vector<8x256xf32>
    %c134 = arith.constant 134 : index
    %635 = memref.load %arg2[%c134] : memref<180xf32, #tpu.memory_space<smem>>
    %636 = vector.broadcast %635 : f32 to vector<8x256xf32>
    %637 = arith.mulf %624, %636 : vector<8x256xf32>
    %638 = arith.addf %634, %637 : vector<8x256xf32>
    %c135 = arith.constant 135 : index
    %639 = memref.load %arg2[%c135] : memref<180xf32, #tpu.memory_space<smem>>
    %640 = vector.broadcast %639 : f32 to vector<8x256xf32>
    %641 = arith.mulf %627, %640 : vector<8x256xf32>
    %642 = arith.addf %638, %641 : vector<8x256xf32>
    %643 = arith.addf %565, %642 : vector<8x256xf32>
    %c136 = arith.constant 136 : index
    %644 = memref.load %arg2[%c136] : memref<180xf32, #tpu.memory_space<smem>>
    %645 = vector.broadcast %644 : f32 to vector<8x256xf32>
    %646 = arith.mulf %618, %645 : vector<8x256xf32>
    %c137 = arith.constant 137 : index
    %647 = memref.load %arg2[%c137] : memref<180xf32, #tpu.memory_space<smem>>
    %648 = vector.broadcast %647 : f32 to vector<8x256xf32>
    %649 = arith.mulf %621, %648 : vector<8x256xf32>
    %650 = arith.addf %646, %649 : vector<8x256xf32>
    %c138 = arith.constant 138 : index
    %651 = memref.load %arg2[%c138] : memref<180xf32, #tpu.memory_space<smem>>
    %652 = vector.broadcast %651 : f32 to vector<8x256xf32>
    %653 = arith.mulf %624, %652 : vector<8x256xf32>
    %654 = arith.addf %650, %653 : vector<8x256xf32>
    %c139 = arith.constant 139 : index
    %655 = memref.load %arg2[%c139] : memref<180xf32, #tpu.memory_space<smem>>
    %656 = vector.broadcast %655 : f32 to vector<8x256xf32>
    %657 = arith.mulf %627, %656 : vector<8x256xf32>
    %658 = arith.addf %654, %657 : vector<8x256xf32>
    %659 = arith.addf %581, %658 : vector<8x256xf32>
    %c140 = arith.constant 140 : index
    %660 = memref.load %arg2[%c140] : memref<180xf32, #tpu.memory_space<smem>>
    %661 = vector.broadcast %660 : f32 to vector<8x256xf32>
    %662 = arith.mulf %618, %661 : vector<8x256xf32>
    %c141 = arith.constant 141 : index
    %663 = memref.load %arg2[%c141] : memref<180xf32, #tpu.memory_space<smem>>
    %664 = vector.broadcast %663 : f32 to vector<8x256xf32>
    %665 = arith.mulf %621, %664 : vector<8x256xf32>
    %666 = arith.addf %662, %665 : vector<8x256xf32>
    %c142 = arith.constant 142 : index
    %667 = memref.load %arg2[%c142] : memref<180xf32, #tpu.memory_space<smem>>
    %668 = vector.broadcast %667 : f32 to vector<8x256xf32>
    %669 = arith.mulf %624, %668 : vector<8x256xf32>
    %670 = arith.addf %666, %669 : vector<8x256xf32>
    %c143 = arith.constant 143 : index
    %671 = memref.load %arg2[%c143] : memref<180xf32, #tpu.memory_space<smem>>
    %672 = vector.broadcast %671 : f32 to vector<8x256xf32>
    %673 = arith.mulf %627, %672 : vector<8x256xf32>
    %674 = arith.addf %670, %673 : vector<8x256xf32>
    %675 = arith.addf %597, %674 : vector<8x256xf32>
    %c144 = arith.constant 144 : index
    %676 = memref.load %arg2[%c144] : memref<180xf32, #tpu.memory_space<smem>>
    %677 = vector.broadcast %676 : f32 to vector<8x256xf32>
    %678 = arith.mulf %618, %677 : vector<8x256xf32>
    %c145 = arith.constant 145 : index
    %679 = memref.load %arg2[%c145] : memref<180xf32, #tpu.memory_space<smem>>
    %680 = vector.broadcast %679 : f32 to vector<8x256xf32>
    %681 = arith.mulf %621, %680 : vector<8x256xf32>
    %682 = arith.addf %678, %681 : vector<8x256xf32>
    %c146 = arith.constant 146 : index
    %683 = memref.load %arg2[%c146] : memref<180xf32, #tpu.memory_space<smem>>
    %684 = vector.broadcast %683 : f32 to vector<8x256xf32>
    %685 = arith.mulf %624, %684 : vector<8x256xf32>
    %686 = arith.addf %682, %685 : vector<8x256xf32>
    %c147 = arith.constant 147 : index
    %687 = memref.load %arg2[%c147] : memref<180xf32, #tpu.memory_space<smem>>
    %688 = vector.broadcast %687 : f32 to vector<8x256xf32>
    %689 = arith.mulf %627, %688 : vector<8x256xf32>
    %690 = arith.addf %686, %689 : vector<8x256xf32>
    %691 = arith.addf %613, %690 : vector<8x256xf32>
    %c7_44 = arith.constant 7 : index
    %c0_45 = arith.constant 0 : index
    %c0_46 = arith.constant 0 : index
    %692 = vector.load %arg3[%c7_44, %c0_45, %c0_46] : memref<9x1x256xf32, #tpu.memory_space<vmem>>, vector<1x1x256xf32>
    %693 = vector.shape_cast %692 : vector<1x1x256xf32> to vector<1x256xf32>
    %c240_i32 = arith.constant 240 : i32
    %694 = tpu.dynamic_rotate %118 by %c240_i32 dim 1 : vector<8x256xf32>, i32 -> vector<8x256xf32>
    %695 = vector.broadcast %693 : vector<1x256xf32> to vector<8x256xf32>
    %696 = arith.mulf %694, %695 : vector<8x256xf32>
    %c240_i32_47 = arith.constant 240 : i32
    %697 = tpu.dynamic_rotate %133 by %c240_i32_47 dim 1 : vector<8x256xf32>, i32 -> vector<8x256xf32>
    %698 = vector.broadcast %693 : vector<1x256xf32> to vector<8x256xf32>
    %699 = arith.mulf %697, %698 : vector<8x256xf32>
    %c240_i32_48 = arith.constant 240 : i32
    %700 = tpu.dynamic_rotate %148 by %c240_i32_48 dim 1 : vector<8x256xf32>, i32 -> vector<8x256xf32>
    %701 = vector.broadcast %693 : vector<1x256xf32> to vector<8x256xf32>
    %702 = arith.mulf %700, %701 : vector<8x256xf32>
    %c240_i32_49 = arith.constant 240 : i32
    %703 = tpu.dynamic_rotate %163 by %c240_i32_49 dim 1 : vector<8x256xf32>, i32 -> vector<8x256xf32>
    %704 = vector.broadcast %693 : vector<1x256xf32> to vector<8x256xf32>
    %705 = arith.mulf %703, %704 : vector<8x256xf32>
    %c148 = arith.constant 148 : index
    %706 = memref.load %arg2[%c148] : memref<180xf32, #tpu.memory_space<smem>>
    %707 = vector.broadcast %706 : f32 to vector<8x256xf32>
    %708 = arith.mulf %696, %707 : vector<8x256xf32>
    %c149 = arith.constant 149 : index
    %709 = memref.load %arg2[%c149] : memref<180xf32, #tpu.memory_space<smem>>
    %710 = vector.broadcast %709 : f32 to vector<8x256xf32>
    %711 = arith.mulf %699, %710 : vector<8x256xf32>
    %712 = arith.addf %708, %711 : vector<8x256xf32>
    %c150 = arith.constant 150 : index
    %713 = memref.load %arg2[%c150] : memref<180xf32, #tpu.memory_space<smem>>
    %714 = vector.broadcast %713 : f32 to vector<8x256xf32>
    %715 = arith.mulf %702, %714 : vector<8x256xf32>
    %716 = arith.addf %712, %715 : vector<8x256xf32>
    %c151 = arith.constant 151 : index
    %717 = memref.load %arg2[%c151] : memref<180xf32, #tpu.memory_space<smem>>
    %718 = vector.broadcast %717 : f32 to vector<8x256xf32>
    %719 = arith.mulf %705, %718 : vector<8x256xf32>
    %720 = arith.addf %716, %719 : vector<8x256xf32>
    %721 = arith.addf %643, %720 : vector<8x256xf32>
    %c152 = arith.constant 152 : index
    %722 = memref.load %arg2[%c152] : memref<180xf32, #tpu.memory_space<smem>>
    %723 = vector.broadcast %722 : f32 to vector<8x256xf32>
    %724 = arith.mulf %696, %723 : vector<8x256xf32>
    %c153 = arith.constant 153 : index
    %725 = memref.load %arg2[%c153] : memref<180xf32, #tpu.memory_space<smem>>
    %726 = vector.broadcast %725 : f32 to vector<8x256xf32>
    %727 = arith.mulf %699, %726 : vector<8x256xf32>
    %728 = arith.addf %724, %727 : vector<8x256xf32>
    %c154 = arith.constant 154 : index
    %729 = memref.load %arg2[%c154] : memref<180xf32, #tpu.memory_space<smem>>
    %730 = vector.broadcast %729 : f32 to vector<8x256xf32>
    %731 = arith.mulf %702, %730 : vector<8x256xf32>
    %732 = arith.addf %728, %731 : vector<8x256xf32>
    %c155 = arith.constant 155 : index
    %733 = memref.load %arg2[%c155] : memref<180xf32, #tpu.memory_space<smem>>
    %734 = vector.broadcast %733 : f32 to vector<8x256xf32>
    %735 = arith.mulf %705, %734 : vector<8x256xf32>
    %736 = arith.addf %732, %735 : vector<8x256xf32>
    %737 = arith.addf %659, %736 : vector<8x256xf32>
    %c156 = arith.constant 156 : index
    %738 = memref.load %arg2[%c156] : memref<180xf32, #tpu.memory_space<smem>>
    %739 = vector.broadcast %738 : f32 to vector<8x256xf32>
    %740 = arith.mulf %696, %739 : vector<8x256xf32>
    %c157 = arith.constant 157 : index
    %741 = memref.load %arg2[%c157] : memref<180xf32, #tpu.memory_space<smem>>
    %742 = vector.broadcast %741 : f32 to vector<8x256xf32>
    %743 = arith.mulf %699, %742 : vector<8x256xf32>
    %744 = arith.addf %740, %743 : vector<8x256xf32>
    %c158 = arith.constant 158 : index
    %745 = memref.load %arg2[%c158] : memref<180xf32, #tpu.memory_space<smem>>
    %746 = vector.broadcast %745 : f32 to vector<8x256xf32>
    %747 = arith.mulf %702, %746 : vector<8x256xf32>
    %748 = arith.addf %744, %747 : vector<8x256xf32>
    %c159 = arith.constant 159 : index
    %749 = memref.load %arg2[%c159] : memref<180xf32, #tpu.memory_space<smem>>
    %750 = vector.broadcast %749 : f32 to vector<8x256xf32>
    %751 = arith.mulf %705, %750 : vector<8x256xf32>
    %752 = arith.addf %748, %751 : vector<8x256xf32>
    %753 = arith.addf %675, %752 : vector<8x256xf32>
    %c160 = arith.constant 160 : index
    %754 = memref.load %arg2[%c160] : memref<180xf32, #tpu.memory_space<smem>>
    %755 = vector.broadcast %754 : f32 to vector<8x256xf32>
    %756 = arith.mulf %696, %755 : vector<8x256xf32>
    %c161 = arith.constant 161 : index
    %757 = memref.load %arg2[%c161] : memref<180xf32, #tpu.memory_space<smem>>
    %758 = vector.broadcast %757 : f32 to vector<8x256xf32>
    %759 = arith.mulf %699, %758 : vector<8x256xf32>
    %760 = arith.addf %756, %759 : vector<8x256xf32>
    %c162 = arith.constant 162 : index
    %761 = memref.load %arg2[%c162] : memref<180xf32, #tpu.memory_space<smem>>
    %762 = vector.broadcast %761 : f32 to vector<8x256xf32>
    %763 = arith.mulf %702, %762 : vector<8x256xf32>
    %764 = arith.addf %760, %763 : vector<8x256xf32>
    %c163 = arith.constant 163 : index
    %765 = memref.load %arg2[%c163] : memref<180xf32, #tpu.memory_space<smem>>
    %766 = vector.broadcast %765 : f32 to vector<8x256xf32>
    %767 = arith.mulf %705, %766 : vector<8x256xf32>
    %768 = arith.addf %764, %767 : vector<8x256xf32>
    %769 = arith.addf %691, %768 : vector<8x256xf32>
    %c8_50 = arith.constant 8 : index
    %c0_51 = arith.constant 0 : index
    %c0_52 = arith.constant 0 : index
    %770 = vector.load %arg3[%c8_50, %c0_51, %c0_52] : memref<9x1x256xf32, #tpu.memory_space<vmem>>, vector<1x1x256xf32>
    %771 = vector.shape_cast %770 : vector<1x1x256xf32> to vector<1x256xf32>
    %c239_i32 = arith.constant 239 : i32
    %772 = tpu.dynamic_rotate %118 by %c239_i32 dim 1 : vector<8x256xf32>, i32 -> vector<8x256xf32>
    %773 = vector.broadcast %771 : vector<1x256xf32> to vector<8x256xf32>
    %774 = arith.mulf %772, %773 : vector<8x256xf32>
    %c239_i32_53 = arith.constant 239 : i32
    %775 = tpu.dynamic_rotate %133 by %c239_i32_53 dim 1 : vector<8x256xf32>, i32 -> vector<8x256xf32>
    %776 = vector.broadcast %771 : vector<1x256xf32> to vector<8x256xf32>
    %777 = arith.mulf %775, %776 : vector<8x256xf32>
    %c239_i32_54 = arith.constant 239 : i32
    %778 = tpu.dynamic_rotate %148 by %c239_i32_54 dim 1 : vector<8x256xf32>, i32 -> vector<8x256xf32>
    %779 = vector.broadcast %771 : vector<1x256xf32> to vector<8x256xf32>
    %780 = arith.mulf %778, %779 : vector<8x256xf32>
    %c239_i32_55 = arith.constant 239 : i32
    %781 = tpu.dynamic_rotate %163 by %c239_i32_55 dim 1 : vector<8x256xf32>, i32 -> vector<8x256xf32>
    %782 = vector.broadcast %771 : vector<1x256xf32> to vector<8x256xf32>
    %783 = arith.mulf %781, %782 : vector<8x256xf32>
    %c164 = arith.constant 164 : index
    %784 = memref.load %arg2[%c164] : memref<180xf32, #tpu.memory_space<smem>>
    %785 = vector.broadcast %784 : f32 to vector<8x256xf32>
    %786 = arith.mulf %774, %785 : vector<8x256xf32>
    %c165 = arith.constant 165 : index
    %787 = memref.load %arg2[%c165] : memref<180xf32, #tpu.memory_space<smem>>
    %788 = vector.broadcast %787 : f32 to vector<8x256xf32>
    %789 = arith.mulf %777, %788 : vector<8x256xf32>
    %790 = arith.addf %786, %789 : vector<8x256xf32>
    %c166 = arith.constant 166 : index
    %791 = memref.load %arg2[%c166] : memref<180xf32, #tpu.memory_space<smem>>
    %792 = vector.broadcast %791 : f32 to vector<8x256xf32>
    %793 = arith.mulf %780, %792 : vector<8x256xf32>
    %794 = arith.addf %790, %793 : vector<8x256xf32>
    %c167 = arith.constant 167 : index
    %795 = memref.load %arg2[%c167] : memref<180xf32, #tpu.memory_space<smem>>
    %796 = vector.broadcast %795 : f32 to vector<8x256xf32>
    %797 = arith.mulf %783, %796 : vector<8x256xf32>
    %798 = arith.addf %794, %797 : vector<8x256xf32>
    %799 = arith.addf %721, %798 : vector<8x256xf32>
    %c168 = arith.constant 168 : index
    %800 = memref.load %arg2[%c168] : memref<180xf32, #tpu.memory_space<smem>>
    %801 = vector.broadcast %800 : f32 to vector<8x256xf32>
    %802 = arith.mulf %774, %801 : vector<8x256xf32>
    %c169 = arith.constant 169 : index
    %803 = memref.load %arg2[%c169] : memref<180xf32, #tpu.memory_space<smem>>
    %804 = vector.broadcast %803 : f32 to vector<8x256xf32>
    %805 = arith.mulf %777, %804 : vector<8x256xf32>
    %806 = arith.addf %802, %805 : vector<8x256xf32>
    %c170 = arith.constant 170 : index
    %807 = memref.load %arg2[%c170] : memref<180xf32, #tpu.memory_space<smem>>
    %808 = vector.broadcast %807 : f32 to vector<8x256xf32>
    %809 = arith.mulf %780, %808 : vector<8x256xf32>
    %810 = arith.addf %806, %809 : vector<8x256xf32>
    %c171 = arith.constant 171 : index
    %811 = memref.load %arg2[%c171] : memref<180xf32, #tpu.memory_space<smem>>
    %812 = vector.broadcast %811 : f32 to vector<8x256xf32>
    %813 = arith.mulf %783, %812 : vector<8x256xf32>
    %814 = arith.addf %810, %813 : vector<8x256xf32>
    %815 = arith.addf %737, %814 : vector<8x256xf32>
    %c172 = arith.constant 172 : index
    %816 = memref.load %arg2[%c172] : memref<180xf32, #tpu.memory_space<smem>>
    %817 = vector.broadcast %816 : f32 to vector<8x256xf32>
    %818 = arith.mulf %774, %817 : vector<8x256xf32>
    %c173 = arith.constant 173 : index
    %819 = memref.load %arg2[%c173] : memref<180xf32, #tpu.memory_space<smem>>
    %820 = vector.broadcast %819 : f32 to vector<8x256xf32>
    %821 = arith.mulf %777, %820 : vector<8x256xf32>
    %822 = arith.addf %818, %821 : vector<8x256xf32>
    %c174 = arith.constant 174 : index
    %823 = memref.load %arg2[%c174] : memref<180xf32, #tpu.memory_space<smem>>
    %824 = vector.broadcast %823 : f32 to vector<8x256xf32>
    %825 = arith.mulf %780, %824 : vector<8x256xf32>
    %826 = arith.addf %822, %825 : vector<8x256xf32>
    %c175 = arith.constant 175 : index
    %827 = memref.load %arg2[%c175] : memref<180xf32, #tpu.memory_space<smem>>
    %828 = vector.broadcast %827 : f32 to vector<8x256xf32>
    %829 = arith.mulf %783, %828 : vector<8x256xf32>
    %830 = arith.addf %826, %829 : vector<8x256xf32>
    %831 = arith.addf %753, %830 : vector<8x256xf32>
    %c176 = arith.constant 176 : index
    %832 = memref.load %arg2[%c176] : memref<180xf32, #tpu.memory_space<smem>>
    %833 = vector.broadcast %832 : f32 to vector<8x256xf32>
    %834 = arith.mulf %774, %833 : vector<8x256xf32>
    %c177 = arith.constant 177 : index
    %835 = memref.load %arg2[%c177] : memref<180xf32, #tpu.memory_space<smem>>
    %836 = vector.broadcast %835 : f32 to vector<8x256xf32>
    %837 = arith.mulf %777, %836 : vector<8x256xf32>
    %838 = arith.addf %834, %837 : vector<8x256xf32>
    %c178 = arith.constant 178 : index
    %839 = memref.load %arg2[%c178] : memref<180xf32, #tpu.memory_space<smem>>
    %840 = vector.broadcast %839 : f32 to vector<8x256xf32>
    %841 = arith.mulf %780, %840 : vector<8x256xf32>
    %842 = arith.addf %838, %841 : vector<8x256xf32>
    %c179 = arith.constant 179 : index
    %843 = memref.load %arg2[%c179] : memref<180xf32, #tpu.memory_space<smem>>
    %844 = vector.broadcast %843 : f32 to vector<8x256xf32>
    %845 = arith.mulf %783, %844 : vector<8x256xf32>
    %846 = arith.addf %842, %845 : vector<8x256xf32>
    %847 = arith.addf %769, %846 : vector<8x256xf32>
    %848 = arith.index_cast %1 : i32 to index
    %c0_56 = arith.constant 0 : index
    %849 = vector.load %arg4[%848, %c0_56] : memref<8x1024xf32, #tpu.memory_space<vmem>>, vector<8x256xf32>
    tpu.vector_store %arg4[%848, %c0_56], %799 {strides = array<i32>} : memref<8x1024xf32, #tpu.memory_space<vmem>>, vector<8x256xf32>,
    %850 = arith.index_cast %1 : i32 to index
    %c256 = arith.constant 256 : index
    %851 = vector.load %arg4[%850, %c256] : memref<8x1024xf32, #tpu.memory_space<vmem>>, vector<8x256xf32>
    tpu.vector_store %arg4[%850, %c256], %815 {strides = array<i32>} : memref<8x1024xf32, #tpu.memory_space<vmem>>, vector<8x256xf32>,
    %852 = arith.index_cast %1 : i32 to index
    %c512 = arith.constant 512 : index
    %853 = vector.load %arg4[%852, %c512] : memref<8x1024xf32, #tpu.memory_space<vmem>>, vector<8x256xf32>
    tpu.vector_store %arg4[%852, %c512], %831 {strides = array<i32>} : memref<8x1024xf32, #tpu.memory_space<vmem>>, vector<8x256xf32>,
    %854 = arith.index_cast %1 : i32 to index
    %c768 = arith.constant 768 : index
    %855 = vector.load %arg4[%854, %c768] : memref<8x1024xf32, #tpu.memory_space<vmem>>, vector<8x256xf32>
    tpu.vector_store %arg4[%854, %c768], %847 {strides = array<i32>} : memref<8x1024xf32, #tpu.memory_space<vmem>>, vector<8x256xf32>,
    %c1_i32_57 = arith.constant 1 : i32
    return
  }
  func.func @transform_0(%arg0: i32) -> (i32, i32) {
    %c0_i32 = arith.constant 0 : i32
    %c0_i32_0 = arith.constant 0 : i32
    return %arg0, %c0_i32 : i32, i32
  }
  func.func @transform_1(%arg0: i32) -> i32 {
    %c0_i32 = arith.constant 0 : i32
    %c0_i32_0 = arith.constant 0 : i32
    return %c0_i32 : i32
  }
  func.func @transform_2(%arg0: i32) -> (i32, i32, i32) {
    %c0_i32 = arith.constant 0 : i32
    %c0_i32_0 = arith.constant 0 : i32
    %c0_i32_1 = arith.constant 0 : i32
    %c0_i32_2 = arith.constant 0 : i32
    return %c0_i32, %c0_i32_0, %c0_i32_1 : i32, i32, i32
  }
  func.func @transform_3(%arg0: i32) -> (i32, i32) {
    %c0_i32 = arith.constant 0 : i32
    %c0_i32_0 = arith.constant 0 : i32
    return %arg0, %c0_i32 : i32, i32
  }
}

</mosaic_0001>

<bundles_post_ra>
// kernel: tpu_custom_call.1
= control target key start
LH: loop header
LB: loop body
LE: loop exit
PB: predicated region body
PF: predicated region fallthrough
CT: control target
= control target key end

     0   :  { %s3522_s0 = inlined_call_operand.hbm [shape: f32[8,1024], index: 0, kind: input, shape index: {}]   ;;  %s3523_s1 = inlined_call_operand.hbm [shape: f32[180], index: 1, kind: input, shape index: {}]   ;;  %s3524_s2 = inlined_call_operand.hbm [shape: f32[9,1,256], index: 2, kind: input, shape index: {}]   ;;  %s3525_s3 = inlined_call_operand.hbm [shape: f32[8,1024], index: 3, kind: output, shape index: {}]  }
   0x1   :  { %3653 = sst [smem:[#allocation108_spill]] %s3525_s3 }
   0x2   :  { %8 = vsyncpa [#allocation3], 0 }
   0x3   :  { %9 = vsyncpa [#allocation5], 0 }
   0x4   :  { %10 = vsyncpa [#allocation8], 0 }
   0x5   :  { %11 = vsyncpa [#allocation4], 0  ;;  %s1768_s12 = smov [#allocation2]   ;;  %s1769_s14 = smov [#allocation7]  }
   0x6   :  { %s18_s13 = sshll.u32 %s1768_s12, 4  ;;  %s35_s15 = sshll.u32 %s1769_s14, 4  ;;  %s19_s13 = int_to_ptr.vmem [resolvable:$true] %s18_s13  ;;  %s36_s15 = int_to_ptr.vmem [resolvable:$true] %s35_s15 }
   0x7   :  { %s1700_s16 = scalar_lea.vmem %s19_s13, 1024  ;;  %p1705_p1 = scmp.lt.s32.totalorder %s19_s13, %s19_s13 }
   0x8   :  { %p1701_p0 = scmp.ne.s32.totalorder %s19_s13, %s1700_s16  ;;  %p1706_p2 = scmp.lt.s32.totalorder %s1700_s16, %s1700_s16 }
   0xa   :  { %p1707_p3 = por %p1706_p2, %p1705_p1 }
   0xc   :  { %p1708_p4 = pnand %p1707_p3, %p1701_p0 }
   0xe   :  { %1711 = shalt.err (!%p1708_p4)
}
   0xf   :  { %21 = dma.hbm_to_vmem [thread:$0]  %s3522_s0, 1024, %s19_s13, [#allocation3]  }
  0x10   :  { %s1770_s19 = smov [#allocation6]   ;;  %s1728_s22 = scalar_lea.vmem %s36_s15, 288 }
  0x11   :  { %29 = dma.hbm_to_smem %s3523_s1, 32, %s1770_s19, [#allocation5]  }
  0x12   :  { %p1729_p5 = scmp.ne.s32.totalorder %s36_s15, %s1728_s22  ;;  %p1733_p6 = scmp.lt.s32.totalorder %s36_s15, %s36_s15 }
  0x13   :  { %p1734_p7 = scmp.lt.s32.totalorder %s1728_s22, %s1728_s22 }
  0x15   :  { %p1735_p8 = por %p1734_p7, %p1733_p6 }
  0x17   :  { %p1736_p9 = pnand %p1735_p8, %p1729_p5 }
  0x19   :  { %1739 = shalt.err (!%p1736_p9)
}
  0x1a   :  { %s1771_s23 = smov 32   ;;  %s1772_s24 = smov 2  }
  0x1b   :  { %41 = dma.hbm_to_vmem [thread:$0]  %s3524_s2, 288, %s36_s15, [#allocation8], %s1771_s23, %s1771_s23, %s1772_s24  }
  0x1c   :  { %1760 = dma.done.wait [#allocation3], 1024  }
  0x1d   :  { %1761 = vsyncadd [#allocation3], 4294966272 }
  0x1e   :  { %1762 = dma.done.wait [#allocation5], 32  }
  0x1f   :  { %1763 = vsyncadd [#allocation5], 4294967264 }
  0x20   :  { %1764 = dma.done.wait [#allocation8], 288  }
  0x21   :  { %1765 = vsyncadd [#allocation8], 4294967008 }
  0x22   :  { %51 = sfence }
  0x23   :  { %v1811_v0 = vld [vmem:[#allocation2] sm:$0xff]  ;;  %v1813_v1 = vld [vmem:[#allocation2 + $0x8] sm:$0xff]  ;;  %v1821_v5 = vld [vmem:[#allocation2 + $0x10] sm:$0xff]  ;;  %s1835_s0 = sld [smem:[#allocation6]] }
  0x24   :  { %v1815_v2 = vld [vmem:[#allocation2 + $0x20] sm:$0xff]  ;;  %v63_v3 = vadd.f32 %v1813_v1, %v1811_v0  ;;  %v1819_v4 = vld [vmem:[#allocation2 + $0x28] sm:$0xff]  ;;  %v1823_v6 = vld [vmem:[#allocation2 + $0x18] sm:$0xff]  ;;  %s1837_s1 = sld [smem:[#allocation6 + $0x10]] }
  0x25   :  { %v71_v7 = vadd.f32 %v1819_v4, %v1815_v2  ;;  %v1827_v8 = vld [vmem:[#allocation2 + $0x30] sm:$0xff]  ;;  %v1829_v9 = vld [vmem:[#allocation2 + $0x38] sm:$0xff]  ;;  %v67_v10 = vadd.f32 %v1823_v6, %v1821_v5  ;;  %s1839_s2 = sld [smem:[#allocation6 + $0x4]] }
  0x26   :  { %64 = vadd.xlane.f32.xlu0 %v63_v3  ;;  %v75_v11 = vadd.f32 %v1829_v9, %v1827_v8  ;;  %s1841_s27 = sld [smem:[#allocation6 + $0x11]] }
  0x27   :  { %72 = vadd.xlane.f32.xlu1 %v71_v7  ;;  %s1843_s28 = sld [smem:[#allocation6 + $0x8]] }
  0x28   :  { %s1845_s29 = sld [smem:[#allocation6 + $0x12]] }
  0x29   :  { %s1847_s30 = sld [smem:[#allocation6 + $0xc]]  ;;  %v80_v12 = vstv %s1835_s0 }
  0x2a   :  { %68 = vadd.xlane.f32.xlu0 %v67_v10  ;;  %s1849_s4 = sld [smem:[#allocation6 + $0x13]]  ;;  %v83_v13 = vstv %s1837_s1 }
  0x2b   :  { %76 = vadd.xlane.f32.xlu1 %v75_v11  ;;  %s1851_s5 = sld [smem:[#allocation6 + $0x2]]  ;;  %v98_v14 = vstv %s1839_s2 }
  0x2c   :  { %s1853_s6 = sld [smem:[#allocation6 + $0x6]]  ;;  %v101_v15 = vstv %s1841_s27 }
  0x2d   :  { %s1855_s7 = sld [smem:[#allocation6 + $0xa]]  ;;  %v116_v16 = vstv %s1843_s28 }
  0x2e   :  { %s1857_s8 = sld [smem:[#allocation6 + $0xe]]  ;;  %v119_v17 = vstv %s1845_s29 }
  0x2f   :  { %s1859_s9 = sld [smem:[#allocation6 + $0x1]]  ;;  %v134_v18 = vstv %s1847_s30  ;;  %s1773_s30 = smov 17  }
  0x30   :  { %s1861_s10 = sld [smem:[#allocation6 + $0x5]]  ;;  %v137_v19 = vstv %s1849_s4 }
  0x31   :  { %s1863_s11 = sld [smem:[#allocation6 + $0x9]]  ;;  %v90_v22 = vstv %s1851_s5 }
  0x32   :  { %s1865_s12 = sld [smem:[#allocation6 + $0xd]]  ;;  %v108_v23 = vstv %s1853_s6 }
  0x33   :  { %s1867_s13 = sld [smem:[#allocation6 + $0x3]]  ;;  %v126_v24 = vstv %s1855_s7 }
  0x34   :  { %s1869_s14 = sld [smem:[#allocation6 + $0x7]]  ;;  %v144_v26 = vstv %s1857_s8 }
  0x35   :  { %s1871_s15 = sld [smem:[#allocation6 + $0xb]]  ;;  %v86_v28 = vstv %s1859_s9 }
  0x36   :  { %s1873_s16 = sld [smem:[#allocation6 + $0xf]]  ;;  %v104_v29 = vstv %s1861_s10 }
  0x37   :  { %s1875_s17 = sld [smem:[#allocation6 + $0x14]]  ;;  %v122_v34 = vstv %s1863_s11 }
  0x38   :  { %s1877_s18 = sld [smem:[#allocation6 + $0x15]]  ;;  %v140_v35 = vstv %s1865_s12 }
  0x39   :  { %s1883_s19 = sld [smem:[#allocation6 + $0x16]]  ;;  %v94_v37 = vstv %s1867_s13 }
  0x3a   :  { %s1889_s20 = sld [smem:[#allocation6 + $0x17]]  ;;  %v112_v38 = vstv %s1869_s14 }
  0x3b   :  { %s1894_s21 = sld [smem:[#allocation6 + $0x18]]  ;;  %v130_v41 = vstv %s1871_s15 }
  0x3c   :  { %s1899_s22 = sld [smem:[#allocation6 + $0x19]]  ;;  %v148_v42 = vstv %s1873_s16  ;;  %s1774_s16 = smov 16  }
  0x3d   :  { %s1901_s23 = sld [smem:[#allocation6 + $0x1a]]  ;;  %v160_v3 = vstv %s1875_s17 }
  0x3e   :  { %s1907_s24 = sld [smem:[#allocation6 + $0x1b]]  ;;  %v164_v7 = vstv %s1877_s18 }
  0x3f   :  { %s1911_s25 = sld [smem:[#allocation6 + $0x1c]]  ;;  %v170_v10 = vstv %s1883_s19 }
  0x40   :  { %s1913_s26 = sld [smem:[#allocation6 + $0x1d]] }
  0x41   :  { %s1915_s0 = sld [smem:[#allocation6 + $0x1e]] }
  0x42   :  { %s1917_s1 = sld [smem:[#allocation6 + $0x1f]] }
  0x43   :  { %s1922_s2 = sld [smem:[#allocation6 + $0x20]] }
  0x44   :  { %s1936_s27 = sld [smem:[#allocation6 + $0x21]] }
  0x45   :  { %s1948_s28 = sld [smem:[#allocation6 + $0x22]] }
  0x46   :  { %s1953_s29 = sld [smem:[#allocation6 + $0x23]] }
  0x47   :  { %s1974_s4 = sld [smem:[#allocation6 + $0x64]] }
  0x48   :  { %s1980_s5 = sld [smem:[#allocation6 + $0x65]] }
  0x49   :  { %s1987_s6 = sld [smem:[#allocation6 + $0x66]] }
  0x4a   :  { %s1991_s7 = sld [smem:[#allocation6 + $0x67]] }
  0x4b   :  { %s1996_s8 = sld [smem:[#allocation6 + $0x68]] }
  0x4c   :  { %s1998_s9 = sld [smem:[#allocation6 + $0x69]] }
  0x4d   :  { %s2006_s10 = sld [smem:[#allocation6 + $0x6a]] }
  0x4e   :  { %s2008_s11 = sld [smem:[#allocation6 + $0x6b]] }
  0x4f   :  { %s2014_s12 = sld [smem:[#allocation6 + $0x6c]] }
  0x50   :  { %s2016_s13 = sld [smem:[#allocation6 + $0x6d]] }
  0x51   :  { %s2021_s14 = sld [smem:[#allocation6 + $0x6e]] }
  0x52   :  { %s2023_s15 = sld [smem:[#allocation6 + $0x6f]] }
  0x53   :  { %s2028_s17 = sld [smem:[#allocation6 + $0x70]] }
  0x54   :  { %s2030_s18 = sld [smem:[#allocation6 + $0x71]] }
  0x55   :  { %s2034_s19 = sld [smem:[#allocation6 + $0x72]] }
  0x56   :  { %s2070_s3 = sld [smem:[#allocation6 + $0x27]] }
  0x5c   :  { %3666 = sst [smem:[#allocation26_spill]] %s2070_s3 }
  0x5d   :  { %s2089_s3 = sld [smem:[#allocation6 + $0x40]] }
  0x63   :  { %3673 = sst [smem:[#allocation33_spill]] %s2089_s3 }
  0x64   :  { %s2107_s3 = sld [smem:[#allocation6 + $0x3a]] }
  0x6a   :  { %3679 = sst [smem:[#allocation39_spill]] %s2107_s3 }
  0x6b   :  { %s2133_s3 = sld [smem:[#allocation6 + $0x50]] }
  0x71   :  { %3689 = sst [smem:[#allocation49_spill]] %s2133_s3 }
  0x72   :  { %s2152_s3 = sld [smem:[#allocation6 + $0x4e]] }
  0x78   :  { %3697 = sst [smem:[#allocation56_spill]] %s2152_s3 }
  0x79   :  { %s2169_s3 = sld [smem:[#allocation6 + $0x55]] }
  0x7f   :  { %3703 = sst [smem:[#allocation62_spill]] %s2169_s3 }
  0x80   :  { %s2183_s3 = sld [smem:[#allocation6 + $0x4b]] }
  0x86   :  { %3707 = sst [smem:[#allocation66_spill]] %s2183_s3 }
  0x87   :  { %s2195_s3 = sld [smem:[#allocation6 + $0x5a]] }
  0x8d   :  { %3711 = sst [smem:[#allocation70_spill]] %s2195_s3 }
  0xaf   :  { %v65_v20 = vpop.xlane.xlu0 %64 }
  0xb0   :  { %v66_v21 = vmul.f32 0.00390625, %v65_v20  ;;  %v73_v25 = vpop.xlane.xlu1 %72 }
  0xb1   :  { %v74_v27 = vmul.f32 0.00390625, %v73_v25  ;;  %v208_v25 = vstv %s1913_s26  ;;  %s2051_s26 = sld [smem:[#allocation6 + $0x29]] }
  0xb2   :  { %v81_v30 = vmul.f32 %v80_v12, %v66_v21  ;;  %v99_v31 = vmul.f32 %v98_v14, %v66_v21  ;;  %v117_v32 = vmul.f32 %v116_v16, %v66_v21  ;;  %v135_v33 = vmul.f32 %v134_v18, %v66_v21 }
  0xb3   :  { %v69_v36 = vpop.xlane.xlu0 %68  ;;  %v91_v39 = vmul.f32 %v90_v22, %v74_v27  ;;  %v109_v40 = vmul.f32 %v108_v23, %v74_v27  ;;  %v127_v44 = vmul.f32 %v126_v24, %v74_v27  ;;  %v145_v45 = vmul.f32 %v144_v26, %v74_v27 }
  0xb4   :  { %v77_v43 = vpop.xlane.xlu1 %76  ;;  %v70_v46 = vmul.f32 0.00390625, %v69_v36  ;;  %v84_v48 = vadd.f32 %v83_v13, %v81_v30  ;;  %v102_v49 = vadd.f32 %v101_v15, %v99_v31  ;;  %v120_v50 = vadd.f32 %v119_v17, %v117_v32 }
  0xb5   :  { %v78_v47 = vmul.f32 0.00390625, %v77_v43  ;;  %v138_v51 = vadd.f32 %v137_v19, %v135_v33  ;;  %v176_v15 = vstv %s1889_s20  ;;  %v182_v16 = vstv %s1894_s21  ;;  %s2036_s20 = sld [smem:[#allocation6 + $0x73]] }
  0xb6   :  { %v87_v52 = vmul.f32 %v86_v28, %v70_v46  ;;  %v105_v53 = vmul.f32 %v104_v29, %v70_v46  ;;  %v123_v54 = vmul.f32 %v122_v34, %v70_v46  ;;  %v141_v55 = vmul.f32 %v140_v35, %v70_v46  ;;  %s2039_s21 = sld [smem:[#allocation6 + $0x24]] }
  0xb7   :  { %v95_v56 = vmul.f32 %v94_v37, %v78_v47  ;;  %v113_v57 = vmul.f32 %v112_v38, %v78_v47  ;;  %v131_v58 = vmul.f32 %v130_v41, %v78_v47  ;;  %v149_v59 = vmul.f32 %v148_v42, %v78_v47  ;;  %3659 = sst [smem:[#allocation19_spill]] %s2051_s26 }
  0xb8   :  { %v88_v60 = vadd.f32 %v87_v52, %v84_v48  ;;  %v106_v61 = vadd.f32 %v105_v53, %v102_v49  ;;  %v124_v62 = vadd.f32 %v123_v54, %v120_v50  ;;  %v142_v63 = vadd.f32 %v141_v55, %v138_v51 }
  0xb9   :  { %v186_v17 = vstv %s1899_s22  ;;  %v192_v18 = vstv %s1901_s23  ;;  %v198_v23 = vstv %s1907_s24  ;;  %v204_v24 = vstv %s1911_s25  ;;  %s2041_s22 = sld [smem:[#allocation6 + $0x28]] }
  0xba   :  { %v92_v11 = vadd.f32 %v91_v39, %v88_v60  ;;  %v110_v12 = vadd.f32 %v109_v40, %v106_v61  ;;  %v128_v13 = vadd.f32 %v127_v44, %v124_v62  ;;  %v146_v14 = vadd.f32 %v145_v45, %v142_v63  ;;  %s2044_s23 = sld [smem:[#allocation6 + $0x2c]] }
  0xbb   :  { %v214_v26 = vstv %s1915_s0  ;;  %v226_v36 = vstv %s1922_s2  ;;  %v230_v55 = vstv %s1936_s27  ;;  %s2046_s24 = sld [smem:[#allocation6 + $0x30]] }
  0xbc   :  { %v96_v19 = vadd.f32 %v95_v56, %v92_v11  ;;  %v114_v20 = vadd.f32 %v113_v57, %v110_v12  ;;  %v132_v21 = vadd.f32 %v131_v58, %v128_v13  ;;  %v150_v22 = vadd.f32 %v149_v59, %v146_v14  ;;  %3654 = sst [smem:[#allocation14_spill]] %s2039_s21 }
  0xbd   :  { %v236_v58 = vstv %s1948_s28  ;;  %v242_v14 = vstv %s1953_s29  ;;  %s2049_s25 = sld [smem:[#allocation6 + $0x25]] }
  0xbe   :  { %v151_v27 = vmul.f32 %v96_v19, %v1811_v0  ;;  %v152_v28 = vmul.f32 %v96_v19, %v1813_v1  ;;  %v153_v29 = vmul.f32 %v114_v20, %v1821_v5  ;;  %v154_v30 = vmul.f32 %v114_v20, %v1823_v6  ;;  %s2054_s0 = sld [smem:[#allocation6 + $0x2d]] }
  0xbf   :  { %v155_v31 = vmul.f32 %v132_v21, %v1815_v2  ;;  %v1940_v32 = vmul.f32 %v132_v21, %v1819_v4  ;;  %v1943_v33 = vmul.f32 %v150_v22, %v1827_v8  ;;  %v1946_v34 = vmul.f32 %v150_v22, %v1829_v9  ;;  %3655 = sst [smem:[#allocation15_spill]] %s2041_s22 }
  0xc0   :  { %v161_v0 = vmul.f32 %v160_v3, %v151_v27  ;;  %v162_v1 = vmul.f32 %v160_v3, %v152_v28  ;;  %v165_v5 = vmul.f32 %v164_v7, %v153_v29  ;;  %v166_v35 = vmul.f32 %v164_v7, %v154_v30  ;;  %3656 = sst [smem:[#allocation16_spill]] %s2044_s23 }
  0xc1   :  { %v220_v6 = vstv %s1917_s1  ;;  %v171_v37 = vmul.f32 %v170_v10, %v155_v31  ;;  %v172_v2 = vmul.f32 %v170_v10, %v1940_v32  ;;  %v183_v39 = vmul.f32 %v182_v16, %v151_v27  ;;  %3657 = sst [smem:[#allocation17_spill]] %s2046_s24 }
  0xc2   :  { %v167_v38 = vadd.f32 %v165_v5, %v161_v0  ;;  %v168_v4 = vadd.f32 %v166_v35, %v162_v1  ;;  %v184_v40 = vmul.f32 %v182_v16, %v152_v28  ;;  %v177_v8 = vmul.f32 %v176_v15, %v1943_v33  ;;  %s2056_s1 = sld [smem:[#allocation6 + $0x31]] }
  0xc3   :  { %v178_v9 = vmul.f32 %v176_v15, %v1946_v34  ;;  %v187_v41 = vmul.f32 %v186_v17, %v153_v29  ;;  %v188_v42 = vmul.f32 %v186_v17, %v154_v30  ;;  %v193_v45 = vmul.f32 %v192_v18, %v155_v31  ;;  %3658 = sst [smem:[#allocation18_spill]] %s2049_s25 }
  0xc4   :  { %v173_v43 = vadd.f32 %v171_v37, %v167_v38  ;;  %v174_v44 = vadd.f32 %v172_v2, %v168_v4  ;;  %v194_v46 = vmul.f32 %v192_v18, %v1940_v32  ;;  %v205_v49 = vmul.f32 %v204_v24, %v151_v27  ;;  %3660 = sst [smem:[#allocation20_spill]] %s2054_s0  ;;  %v247_v37 = vld [vmem:[#allocation7] sm:$0x3] }
  0xc5   :  { %v189_v47 = vadd.f32 %v187_v41, %v183_v39  ;;  %v190_v48 = vadd.f32 %v188_v42, %v184_v40  ;;  %v206_v50 = vmul.f32 %v204_v24, %v152_v28  ;;  %v209_v53 = vmul.f32 %v208_v25, %v153_v29  ;;  %s2059_s2 = sld [smem:[#allocation6 + $0x26]] }
  0xc6   :  { %v1958_v51 = vadd.f32 %v177_v8, %v173_v43  ;;  %v1960_v52 = vadd.f32 %v178_v9, %v174_v44  ;;  %v210_v54 = vmul.f32 %v208_v25, %v154_v30  ;;  %v199_v57 = vmul.f32 %v198_v23, %v1943_v33  ;;  %s2061_s27 = sld [smem:[#allocation6 + $0x2a]] }
  0xc7   :  { %v195_v56 = vadd.f32 %v193_v45, %v189_v47  ;;  %v196_v59 = vadd.f32 %v194_v46, %v190_v48  ;;  %v211_v60 = vadd.f32 %v209_v53, %v205_v49  ;;  %v215_v61 = vmul.f32 %v214_v26, %v155_v31  ;;  %s2064_s28 = sld [smem:[#allocation6 + $0x2e]] }
  0xc8   :  { %250 = vrot.lane.b32.xlu1 %v1960_v52, %s1773_s30  ;;  %v212_v63 = vadd.f32 %v210_v54, %v206_v50  ;;  %v221_v3 = vmul.f32 %v220_v6, %v1943_v33  ;;  %v227_v7 = vmul.f32 %v226_v36, %v151_v27  ;;  %248 = vrot.lane.b32.xlu0 %v1958_v51, %s1773_s30  ;;  %3661 = sst [smem:[#allocation21_spill]] %s2056_s1  ;;  %v813_v0 = vstv %s1980_s5  ;;  %s3714_s5 = smov 113  }
  0xc9   :  { %v1969_v62 = vadd.f32 %v199_v57, %v195_v56  ;;  %v217_v10 = vadd.f32 %v215_v61, %v211_v60  ;;  %v228_v11 = vmul.f32 %v226_v36, %v152_v28  ;;  %v231_v12 = vmul.f32 %v230_v55, %v153_v29  ;;  %s2066_s29 = sld [smem:[#allocation6 + $0x32]] }
  0xca   :  { %v232_v13 = vmul.f32 %v230_v55, %v154_v30  ;;  %v200_v15 = vmul.f32 %v198_v23, %v1946_v34  ;;  %v216_v16 = vmul.f32 %v214_v26, %v1940_v32  ;;  %v237_v19 = vmul.f32 %v236_v58, %v155_v31  ;;  %s2072_s0 = sld [smem:[#allocation6 + $0x2b]] }
  0xcb   :  { %v1983_v17 = vadd.f32 %v221_v3, %v217_v10  ;;  %v233_v18 = vadd.f32 %v231_v12, %v227_v7  ;;  %v243_v24 = vmul.f32 %v242_v14, %v1943_v33  ;;  %v222_v25 = vmul.f32 %v220_v6, %v1946_v34  ;;  %3662 = sst [smem:[#allocation22_spill]] %s2059_s2  ;;  %v383_v7 = vld [vmem:[#allocation7 + $0x2] sm:$0x3] }
  0xcc   :  { %270 = vrot.lane.b32.xlu1 %v1969_v62, %s1773_s30  ;;  %v1989_v20 = vadd.f32 %v200_v15, %v196_v59  ;;  %v218_v21 = vadd.f32 %v216_v16, %v212_v63  ;;  %v234_v22 = vadd.f32 %v232_v13, %v228_v11  ;;  %v238_v26 = vmul.f32 %v236_v58, %v1940_v32  ;;  %3663 = sst [smem:[#allocation23_spill]] %s2061_s27 }
  0xcd   :  { %v239_v23 = vadd.f32 %v237_v19, %v233_v18  ;;  %278 = vrot.lane.b32.xlu0 %v1983_v17, %s1773_s30  ;;  %v244_v30 = vmul.f32 %v242_v14, %v1946_v34  ;;  %3664 = sst [smem:[#allocation24_spill]] %s2064_s28  ;;  %v252_v32 = vlaneseq  ;;  %v809_v34 = vstv %s1974_s4  ;;  %s3597_s4 = smov 112  }
  0xce   :  { %v2010_v28 = vadd.f32 %v222_v25, %v218_v21  ;;  %v240_v29 = vadd.f32 %v238_v26, %v234_v22  ;;  %s2075_s1 = sld [smem:[#allocation6 + $0x2f]]  ;;  %v819_v1 = vstv %s1987_s6  ;;  %v825_v35 = vstv %s1991_s7 }
  0xcf   :  { %v2002_v27 = vadd.f32 %v243_v24, %v239_v23  ;;  %3665 = sst [smem:[#allocation25_spill]] %s2066_s29  ;;  %v259_v33 = vshrl.u32 %v252_v32, 7  ;;  %v833_v6 = vstv %s1996_s8  ;;  %v837_v36 = vstv %s1998_s9 }
  0xd0   :  { %272 = vrot.lane.b32.xlu1 %v1989_v20, %s1773_s30  ;;  %v2025_v31 = vadd.f32 %v244_v30, %v240_v29  ;;  %3667 = sst [smem:[#allocation27_spill]] %s2072_s0  ;;  %v843_v2 = vstv %s2006_s10  ;;  %v849_v38 = vstv %s2008_s11  ;;  %v857_v4 = vstv %s2014_s12 }
  0xd1   :  { %286 = vrot.lane.b32.xlu0 %v2002_v27, %s1773_s30  ;;  %s2077_s2 = sld [smem:[#allocation6 + $0x33]]  ;;  %v2202_v5 = vsub.s32 0, %v259_v33  ;;  %v861_v39 = vstv %s2016_s13  ;;  %v2217_v40 = vsub.s32 1, %v259_v33  ;;  %v867_v8 = vstv %s2021_s14 }
  0xd2   :  { %s2081_s28 = sld [smem:[#allocation6 + $0x34]]  ;;  %v873_v9 = vstv %s2023_s15  ;;  %v881_v41 = vstv %s2028_s17  ;;  %v2224_v42 = vand.u32 127, %v252_v32  ;;  %v885_v43 = vstv %s2030_s18  ;;  %s3804_s18 = smov 111  }
  0xd3   :  { %s2083_s29 = sld [smem:[#allocation6 + $0x38]]  ;;  %3715 = vst [vmem:[#allocation73_spill] sm:$0xff] %v2217_v40  ;;  %v891_v44 = vstv %s2034_s19  ;;  %v897_v45 = vstv %s2036_s20  ;;  %v2234_v46 = vrot.slane %v247_v37, %v2202_v5  ;;  %v295_v47 = vstv %s2039_s21 }
  0xd4   :  { %280 = vrot.lane.b32.xlu1 %v2010_v28, %s1773_s30  ;;  %3668 = sst [smem:[#allocation28_spill]] %s2075_s1  ;;  %s1776_s1 = smov 1   ;;  %v317_v48 = vstv %s2041_s22  ;;  %v339_v49 = vstv %s2044_s23  ;;  %v361_v50 = vstv %s2046_s24  ;;  %v811_v54 = vmul.f32 %v809_v34, %v1960_v52 }
  0xd5   :  { %384 = vrot.lane.b32.xlu0 %v1958_v51, %s1774_s16  ;;  %s2087_s27 = sld [smem:[#allocation6 + $0x3c]]  ;;  %v299_v53 = vstv %s2049_s25  ;;  %v815_v55 = vmul.f32 %v813_v0, %v1989_v20  ;;  %v2252_v56 = vrot.slane %v247_v37, %v2217_v40  ;;  %v321_v57 = vstv %s2051_s26 }
  0xd6   :  { %s2121_s0 = sld [smem:[#allocation6 + $0x3f]]  ;;  %v814_v10 = vmul.f32 %v813_v0, %v1969_v62  ;;  %v2271_v11 = vmul.f32 %v819_v1, %v1983_v17  ;;  %v835_v12 = vmul.f32 %v833_v6, %v1960_v52  ;;  %v839_v13 = vmul.f32 %v837_v36, %v1989_v20 }
  0xd7   :  { %3669 = sst [smem:[#allocation29_spill]] %s2077_s2  ;;  %v817_v14 = vadd.f32 %v815_v55, %v811_v54  ;;  %v821_v15 = vmul.f32 %v819_v1, %v2010_v28  ;;  %v2281_v16 = vmul.f32 %v825_v35, %v2002_v27  ;;  %v827_v18 = vmul.f32 %v825_v35, %v2025_v31 }
  0xd8   :  { %288 = vrot.lane.b32.xlu1 %v2025_v31, %s1773_s30  ;;  %s3545_s30 = smov 15   ;;  %3670 = sst [smem:[#allocation30_spill]] %s2081_s28  ;;  %v2287_v19 = vrot.slane %v383_v7, %v2202_v5  ;;  %v838_v21 = vmul.f32 %v837_v36, %v1969_v62  ;;  %v859_v22 = vmul.f32 %v857_v4, %v1960_v52  ;;  %v863_v23 = vmul.f32 %v861_v39, %v1989_v20 }
  0xd9   :  { %404 = vrot.lane.b32.xlu0 %v1969_v62, %s1774_s16  ;;  %3671 = sst [smem:[#allocation31_spill]] %s2083_s29  ;;  %v2299_v24 = vrot.slane %v383_v7, %v2217_v40  ;;  %v844_v25 = vmul.f32 %v843_v2, %v1983_v17  ;;  %v883_v26 = vmul.f32 %v881_v41, %v1960_v52  ;;  %v887_v29 = vmul.f32 %v885_v43, %v1989_v20 }
  0xda   :  { %s2095_s2 = sld [smem:[#allocation6 + $0x39]]  ;;  %v841_v32 = vadd.f32 %v839_v13, %v835_v12  ;;  %v810_v33 = vmul.f32 %v809_v34, %v1958_v51  ;;  %v834_v0 = vmul.f32 %v833_v6, %v1958_v51  ;;  %v823_v1 = vadd.f32 %v821_v15, %v817_v14 }
  0xdb   :  { %3672 = sst [smem:[#allocation32_spill]] %s2087_s27  ;;  %v845_v35 = vmul.f32 %v843_v2, %v2010_v28  ;;  %v862_v36 = vmul.f32 %v861_v39, %v1969_v62  ;;  %v858_v37 = vmul.f32 %v857_v4, %v1958_v51  ;;  %v850_v34 = vmul.f32 %v849_v38, %v2002_v27 }
  0xdc   :  { %386 = vrot.lane.b32.xlu1 %v1960_v52, %s1774_s16  ;;  %s2099_s28 = sld [smem:[#allocation6 + $0x3d]]  ;;  %v865_v6 = vadd.f32 %v863_v23, %v859_v22  ;;  %v886_v2 = vmul.f32 %v885_v43, %v1969_v62  ;;  %v882_v39 = vmul.f32 %v881_v41, %v1958_v51  ;;  %v851_v55 = vmul.f32 %v849_v38, %v2025_v31 }
  0xdd   :  { %412 = vrot.lane.b32.xlu0 %v1983_v17, %s1774_s16  ;;  %s2101_s29 = sld [smem:[#allocation6 + $0x41]]  ;;  %v889_v7 = vadd.f32 %v887_v29, %v883_v26  ;;  %v847_v43 = vadd.f32 %v845_v35, %v841_v32  ;;  %v869_v41 = vmul.f32 %v867_v8, %v2010_v28  ;;  %v816_v12 = vadd.f32 %v814_v10, %v810_v33 }
  0xde   :  { %s2105_s27 = sld [smem:[#allocation6 + $0x36]]  ;;  %v840_v13 = vadd.f32 %v838_v21, %v834_v0  ;;  %v2364_v38 = vadd.f32 %v827_v18, %v823_v1  ;;  %v893_v15 = vmul.f32 %v891_v44, %v2010_v28  ;;  %v864_v22 = vadd.f32 %v862_v36, %v858_v37 }
  0xdf   :  { %3684 = sst [smem:[#allocation44_spill]] %s2121_s0  ;;  %s3692_s0 = smov 15   ;;  %v868_v10 = vmul.f32 %v867_v8, %v1983_v17  ;;  %v871_v21 = vadd.f32 %v869_v41, %v865_v6  ;;  %v888_v18 = vadd.f32 %v886_v2, %v882_v39  ;;  %v874_v29 = vmul.f32 %v873_v9, %v2002_v27 }
  0xe0   :  { %406 = vrot.lane.b32.xlu1 %v1989_v20, %s1774_s16  ;;  %3675 = sst [smem:[#allocation35_spill]] %s2095_s2  ;;  %3744 = vst [vmem:[#allocation89_spill] sm:$0xff] %v2364_v38  ;;  %v875_v32 = vmul.f32 %v873_v9, %v2025_v31  ;;  %v895_v33 = vadd.f32 %v893_v15, %v889_v7  ;;  %v2390_v8 = vadd.f32 %v851_v55, %v847_v43  ;;  %vm254_vm0 = vcmp.lt.s32.totalorder %v2224_v42, 17 }
  0xe1   :  { %420 = vrot.lane.b32.xlu0 %v2002_v27, %s1774_s16  ;;  %s2113_s2 = sld [smem:[#allocation6 + $0x42]]  ;;  %v892_v0 = vmul.f32 %v891_v44, %v1983_v17  ;;  %v822_v1 = vadd.f32 %v2271_v11, %v816_v12  ;;  %v846_v35 = vadd.f32 %v844_v25, %v840_v13  ;;  %v899_v37 = vmul.f32 %v897_v45, %v2025_v31  ;;  %v1189_v12 = vld [vmem:[#allocation7 + $0xe] sm:$0x3] }
  0xe2   :  { %3676 = sst [smem:[#allocation36_spill]] %s2099_s28  ;;  %3752 = vst [vmem:[#allocation93_spill] sm:$0xff] %v2390_v8  ;;  %v870_v6 = vadd.f32 %v868_v10, %v864_v22  ;;  %v2408_v44 = vadd.f32 %v875_v32, %v871_v21  ;;  %v898_v11 = vmul.f32 %v897_v45, %v2002_v27  ;;  %v525_v21 = vld [vmem:[#allocation7 + $0x4] sm:$0x3]  ;;  %v2584_v32 = vrot.slane %v1189_v12, %v2217_v40 }
  0xe3   :  { %3677 = sst [smem:[#allocation37_spill]] %s2101_s29  ;;  %v894_v25 = vadd.f32 %v892_v0, %v888_v18  ;;  %v2418_v43 = vadd.f32 %v899_v37, %v895_v33  ;;  %v2427_v45 = vadd.f32 %v2281_v16, %v822_v1  ;;  %v2429_v13 = vadd.f32 %v850_v34, %v846_v35  ;;  %v667_v0 = vld [vmem:[#allocation7 + $0x6] sm:$0x3]  ;;  %v905_v34 = vld [vmem:[#allocation7 + $0xa] sm:$0x3] }
  0xe4   :  { %414 = vrot.lane.b32.xlu1 %v2010_v28, %s1774_s16  ;;  %3678 = sst [smem:[#allocation38_spill]] %s2105_s27  ;;  %3761 = vst [vmem:[#allocation96_spill] sm:$0xff] %v2408_v44  ;;  %v2436_v18 = vadd.f32 %v874_v29, %v870_v6  ;;  %v2456_v37 = vrot.slane %v525_v21, %v2202_v5  ;;  %v2505_v35 = vrot.slane %v667_v0, %v2217_v40  ;;  %3827 = vst [vmem:[#allocation107_spill] sm:$0xff] %v2584_v32 }
  0xe5   :  { %526 = vrot.lane.b32.xlu0 %v1958_v51, %s3545_s30  ;;  %s2116_s28 = sld [smem:[#allocation6 + $0x37]]  ;;  %3766 = vst [vmem:[#allocation98_spill] sm:$0xff] %v2418_v43  ;;  %3772 = vst [vmem:[#allocation100_spill] sm:$0xff] %v2427_v45  ;;  %v2445_v33 = vadd.f32 %v898_v11, %v894_v25  ;;  %v2473_v11 = vrot.slane %v525_v21, %v2217_v40  ;;  %v1047_v25 = vld [vmem:[#allocation7 + $0xc] sm:$0x3]  ;;  %v2537_v21 = vrot.slane %v905_v34, %v2217_v40 }
  0xe6   :  { %s2118_s29 = sld [smem:[#allocation6 + $0x3b]]  ;;  %3774 = vst [vmem:[#allocation101_spill] sm:$0xff] %v2429_v13  ;;  %3778 = vst [vmem:[#allocation102_spill] sm:$0xff] %v2436_v18  ;;  %v2547_v10 = vrot.slane %v1047_v25, %v2202_v5  ;;  %v2550_v22 = vrot.slane %v1047_v25, %v2217_v40  ;;  %vm388_vm1 = vcmp.lt.s32.totalorder %v2224_v42, 16  ;;  %vm530_vm2 = vcmp.lt.s32.totalorder %v2224_v42, 15 }
  0xe7   :  { %3681 = sst [smem:[#allocation41_spill]] %s2113_s2  ;;  %3782 = vst [vmem:[#allocation103_spill] sm:$0xff] %v2445_v33  ;;  %vm672_vm3 = vcmp.lt.s32.totalorder %v2224_v42, 1  ;;  %vm910_vm4 = vcmp.lt.s32.totalorder %v2224_v42, 127  ;;  %vm1052_vm5 = vcmp.lt.s32.totalorder %v2224_v42, 113  ;;  %vm1194_vm6 = vcmp.lt.s32.totalorder %v2224_v42, 112 }
  0xe8   :  { %422 = vrot.lane.b32.xlu1 %v2025_v31, %s1774_s16  ;;  %s2093_s16 = sld [smem:[#allocation6 + $0x35]]  ;;  %vm1336_vm7 = vcmp.lt.s32.totalorder %v2224_v42, 111 }
  0xe9   :  { %546 = vrot.lane.b32.xlu0 %v1969_v62, %s3545_s30  ;;  %s2123_s27 = sld [smem:[#allocation6 + $0x43]] }
  0xea   :  { %s2131_s2 = sld [smem:[#allocation6 + $0x4c]] }
  0xeb   :  { %3682 = sst [smem:[#allocation42_spill]] %s2116_s28 }
  0xec   :  { %528 = vrot.lane.b32.xlu1 %v1960_v52, %s3545_s30  ;;  %3683 = sst [smem:[#allocation43_spill]] %s2118_s29 }
  0xed   :  { %554 = vrot.lane.b32.xlu0 %v1983_v17, %s3545_s30  ;;  %s2136_s29 = sld [smem:[#allocation6 + $0x45]] }
  0xee   :  { %3674 = sst [smem:[#allocation34_spill]] %s2093_s16 }
  0xef   :  { %s2111_s16 = sld [smem:[#allocation6 + $0x3e]] }
  0xf0   :  { %548 = vrot.lane.b32.xlu1 %v1989_v20, %s3545_s30  ;;  %3685 = sst [smem:[#allocation45_spill]] %s2123_s27 }
  0xf1   :  { %562 = vrot.lane.b32.xlu0 %v2002_v27, %s3545_s30  ;;  %3688 = sst [smem:[#allocation48_spill]] %s2131_s2 }
  0xf2   :  { %s2138_s28 = sld [smem:[#allocation6 + $0x49]] }
  0xf3   :  { %3690 = sst [smem:[#allocation50_spill]] %s2136_s29 }
  0xf4   :  { %556 = vrot.lane.b32.xlu1 %v2010_v28, %s3545_s30  ;;  %s2126_s30 = sld [smem:[#allocation6 + $0x44]] }
  0xf5   :  { %3680 = sst [smem:[#allocation40_spill]] %s2111_s16  ;;  %670 = vrot.lane.b32.xlu0 %v1960_v52, %s1776_s1 }
  0xf6   :  { %s2128_s16 = sld [smem:[#allocation6 + $0x48]] }
  0xf7   :  { %s2142_s27 = sld [smem:[#allocation6 + $0x4d]] }
  0xf8   :  { %668 = vrot.lane.b32.xlu1 %v1958_v51, %s1776_s1  ;;  %3691 = sst [smem:[#allocation51_spill]] %s2138_s28  ;;  %s3575_s28 = smov 127  }
  0xf9   :  { %690 = vrot.lane.b32.xlu0 %v1989_v20, %s1776_s1  ;;  %s2149_s2 = sld [smem:[#allocation6 + $0x4a]] }
  0xfa   :  { %3686 = sst [smem:[#allocation46_spill]] %s2126_s30 }
  0xfb   :  { %s2144_s30 = sld [smem:[#allocation6 + $0x51]] }
  0xfc   :  { %3687 = sst [smem:[#allocation47_spill]] %s2128_s16  ;;  %688 = vrot.lane.b32.xlu1 %v1969_v62, %s1776_s1 }
  0xfd   :  { %696 = vrot.lane.b32.xlu0 %v1983_v17, %s1776_s1  ;;  %3693 = sst [smem:[#allocation52_spill]] %s2142_s27 }
  0xfe   :  { %s2147_s16 = sld [smem:[#allocation6 + $0x46]] }
  0xff   :  { %3696 = sst [smem:[#allocation55_spill]] %s2149_s2 }
 0x100   :  { %564 = vrot.lane.b32.xlu1 %v2025_v31, %s3692_s0  ;;  %s2154_s29 = sld [smem:[#allocation6 + $0x52]] }
 0x101   :  { %3694 = sst [smem:[#allocation53_spill]] %s2144_s30  ;;  %704 = vrot.lane.b32.xlu0 %v2002_v27, %s1776_s1 }
 0x102   :  { %s2158_s0 = sld [smem:[#allocation6 + $0x54]] }
 0x103   :  { %s2160_s27 = sld [smem:[#allocation6 + $0x58]] }
 0x104   :  { %3695 = sst [smem:[#allocation54_spill]] %s2147_s16  ;;  %698 = vrot.lane.b32.xlu1 %v2010_v28, %s1776_s1 }
 0x105   :  { %906 = vrot.lane.b32.xlu0 %v1958_v51, %s3575_s28  ;;  %s2163_s30 = sld [smem:[#allocation6 + $0x5c]] }
 0x106   :  { %3698 = sst [smem:[#allocation57_spill]] %s2154_s29 }
 0x107   :  { %s2165_s16 = sld [smem:[#allocation6 + $0x60]] }
 0x108   :  { %3699 = sst [smem:[#allocation58_spill]] %s2158_s0  ;;  %706 = vrot.lane.b32.xlu1 %v2025_v31, %s1776_s1 }
 0x109   :  { %3700 = sst [smem:[#allocation59_spill]] %s2160_s27  ;;  %926 = vrot.lane.b32.xlu0 %v1969_v62, %s3575_s28 }
 0x10a   :  { %s2171_s29 = sld [smem:[#allocation6 + $0x59]] }
 0x10b   :  { %3701 = sst [smem:[#allocation60_spill]] %s2163_s30 }
 0x10c   :  { %908 = vrot.lane.b32.xlu1 %v1960_v52, %s3575_s28  ;;  %s2175_s27 = sld [smem:[#allocation6 + $0x5d]] }
 0x10d   :  { %3702 = sst [smem:[#allocation61_spill]] %s2165_s16  ;;  %934 = vrot.lane.b32.xlu0 %v1983_v17, %s3575_s28 }
 0x10e   :  { %s2177_s1 = sld [smem:[#allocation6 + $0x61]] }
 0x10f   :  { %s2181_s16 = sld [smem:[#allocation6 + $0x47]] }
 0x110   :  { %3704 = sst [smem:[#allocation63_spill]] %s2171_s29  ;;  %928 = vrot.lane.b32.xlu1 %v1989_v20, %s3575_s28 }
 0x111   :  { %s2187_s29 = sld [smem:[#allocation6 + $0x4f]] }
 0x112   :  { %s2189_s30 = sld [smem:[#allocation6 + $0x53]] }
 0x113   :  { %s2219_s6 = sld [smem:[#allocation6 + $0x57]] }
 0x114   :  { %3705 = sst [smem:[#allocation64_spill]] %s2177_s1  ;;  %s3573_s1 = smov 113   ;;  %936 = vrot.lane.b32.xlu1 %v2010_v28, %s3575_s28 }
 0x115   :  { %3706 = sst [smem:[#allocation65_spill]] %s2181_s16  ;;  %1048 = vrot.lane.b32.xlu0 %v1958_v51, %s3573_s1 }
 0x116   :  { %s2193_s16 = sld [smem:[#allocation6 + $0x56]] }
 0x117   :  { %3708 = sst [smem:[#allocation67_spill]] %s2187_s29  ;;  %s3726_s29 = smov 127  }
 0x118   :  { %3709 = sst [smem:[#allocation68_spill]] %s2189_s30  ;;  %1050 = vrot.lane.b32.xlu1 %v1960_v52, %s3714_s5 }
 0x119   :  { %s2204_s30 = sld [smem:[#allocation6 + $0x5e]]  ;;  %1068 = vrot.lane.b32.xlu0 %v1969_v62, %s3714_s5 }
 0x11a   :  { %s2209_s1 = sld [smem:[#allocation6 + $0x62]] }
 0x11b   :  { %3716 = sst [smem:[#allocation74_spill]] %s2219_s6 }
 0x11c   :  { %3710 = sst [smem:[#allocation69_spill]] %s2193_s16  ;;  %1070 = vrot.lane.b32.xlu1 %v1989_v20, %s3714_s5 }
 0x11d   :  { %s2226_s7 = sld [smem:[#allocation6 + $0x5b]]  ;;  %942 = vrot.lane.b32.xlu0 %v2002_v27, %s3726_s29 }
 0x11e   :  { %s3718_s9 = sld [smem:[#allocation20_spill]] }
 0x11f   :  { %3712 = sst [smem:[#allocation71_spill]] %s2204_s30 }
 0x120   :  { %3713 = sst [smem:[#allocation72_spill]] %s2209_s1  ;;  %944 = vrot.lane.b32.xlu1 %v2025_v31, %s3726_s29 }
 0x121   :  { %s3719_s28 = sld [smem:[#allocation21_spill]]  ;;  %1076 = vrot.lane.b32.xlu0 %v1983_v17, %s3714_s5 }
 0x122   :  { %s3720_s6 = sld [smem:[#allocation22_spill]] }
 0x123   :  { %3717 = sst [smem:[#allocation75_spill]] %s2226_s7 }
 0x124   :  { %s3721_s1 = sld [smem:[#allocation23_spill]]  ;;  %v343_v58 = vstv %s3718_s9  ;;  %1078 = vrot.lane.b32.xlu1 %v2010_v28, %s3714_s5 }
 0x125   :  { %s3722_s30 = sld [smem:[#allocation24_spill]]  ;;  %1190 = vrot.lane.b32.xlu0 %v1958_v51, %s3597_s4 }
 0x126   :  { %s3723_s3 = sld [smem:[#allocation25_spill]] }
 0x127   :  { %s2239_s7 = sld [smem:[#allocation6 + $0x5f]]  ;;  %v365_v59 = vstv %s3719_s28 }
 0x128   :  { %s2243_s16 = sld [smem:[#allocation6 + $0x63]]  ;;  %v305_v60 = vstv %s3720_s6  ;;  %1192 = vrot.lane.b32.xlu1 %v1960_v52, %s3597_s4 }
 0x129   :  { %s2257_s23 = sld [smem:[#allocation6 + $0x74]]  ;;  %1210 = vrot.lane.b32.xlu0 %v1969_v62, %s3597_s4 }
 0x12a   :  { %v327_v61 = vstv %s3721_s1  ;;  %s2263_s25 = sld [smem:[#allocation6 + $0x78]] }
 0x12b   :  { %v349_v63 = vstv %s3722_s30  ;;  %s2267_s24 = sld [smem:[#allocation6 + $0x7c]] }
 0x12c   :  { %v371_v3 = vstv %s3723_s3  ;;  %s2277_s3 = sld [smem:[#allocation6 + $0x80]] }
 0x12d   :  { %3724 = sst [smem:[#allocation76_spill]] %s2239_s7  ;;  %1084 = vrot.lane.b32.xlu0 %v2002_v27, %s3714_s5 }
 0x12e   :  { %3725 = sst [smem:[#allocation77_spill]] %s2243_s16 }
 0x12f   :  { %3727 = sst [smem:[#allocation78_spill]] %s2257_s23 }
 0x130   :  { %3728 = sst [smem:[#allocation79_spill]] %s2263_s25 }
 0x131   :  { %3729 = sst [smem:[#allocation80_spill]] %s2267_s24 }
 0x132   :  { %3730 = sst [smem:[#allocation81_spill]] %s2277_s3 }
 0x133   :  { %s3731_s30 = sld [smem:[#allocation26_spill]] }
 0x134   :  { %s2289_s1 = sld [smem:[#allocation6 + $0x75]] }
 0x135   :  { %s2301_s6 = sld [smem:[#allocation6 + $0x79]] }
 0x136   :  { %s2315_s28 = sld [smem:[#allocation6 + $0x7d]] }
 0x137   :  { %s3734_s9 = sld [smem:[#allocation27_spill]] }
 0x138   :  { %s3735_s26 = sld [smem:[#allocation28_spill]] }
 0x139   :  { %v311_v30 = vstv %s3731_s30  ;;  %s2323_s22 = sld [smem:[#allocation6 + $0x81]]  ;;  %s3767_s30 = smov 112  }
 0x13a   :  { %s2336_s8 = sld [smem:[#allocation6 + $0x76]]  ;;  %1212 = vrot.lane.b32.xlu1 %v1989_v20, %s3767_s30  ;;  %1218 = vrot.lane.b32.xlu0 %v1983_v17, %s3767_s30  ;;  %v249_v1 = vpop.permute.xlu0 %248 }
 0x13b   :  { %3732 = sst [smem:[#allocation82_spill]] %s2301_s6 }
 0x13c   :  { %3733 = sst [smem:[#allocation83_spill]] %s2315_s28 }
 0x13d   :  { %v333_v4 = vstv %s3734_s9  ;;  %s2349_s12 = sld [smem:[#allocation6 + $0x7a]] }
 0x13e   :  { %v355_v54 = vstv %s3735_s26  ;;  %s2356_s13 = sld [smem:[#allocation6 + $0x7e]]  ;;  %1086 = vrot.lane.b32.xlu1 %v2025_v31, %s3714_s5 }
 0x13f   :  { %3736 = sst [smem:[#allocation84_spill]] %s2323_s22 }
 0x140   :  { %3737 = sst [smem:[#allocation85_spill]] %s2336_s8 }
 0x141   :  { %s2362_s17 = sld [smem:[#allocation6 + $0x82]] }
 0x142   :  { %s2372_s26 = sld [smem:[#allocation6 + $0x84]]  ;;  %1220 = vrot.lane.b32.xlu1 %v2010_v28, %s3767_s30 }
 0x143   :  { %3740 = sst [smem:[#allocation86_spill]] %s2349_s12 }
 0x144   :  { %3741 = sst [smem:[#allocation87_spill]] %s2356_s13  ;;  %s3614_s13 = smov 111  }
 0x145   :  { %s2378_s29 = sld [smem:[#allocation6 + $0x88]]  ;;  %1332 = vrot.lane.b32.xlu0 %v1958_v51, %s3614_s13  ;;  %v2489_v51 = vrot.slane %v667_v0, %v2202_v5 }
 0x146   :  { %s2388_s14 = sld [smem:[#allocation6 + $0x8c]]  ;;  %1334 = vrot.lane.b32.xlu1 %v1960_v52, %s3804_s18  ;;  %v251_v52 = vpop.permute.xlu1 %250 }
 0x147   :  { %3743 = sst [smem:[#allocation88_spill]] %s2362_s17  ;;  %v256_v16 = vsel %vm254_vm0, %v251_v52, %v249_v1 }
 0x148   :  { %3746 = sst [smem:[#allocation90_spill]] %s2372_s26  ;;  %v268_v41 = vmul.f32 %v2234_v46, %v256_v16  ;;  %v279_v16 = vpop.permute.xlu0 %278 }
 0x149   :  { %s2424_s20 = sld [smem:[#allocation6 + $0x8d]]  ;;  %1352 = vrot.lane.b32.xlu0 %v1969_v62, %s3804_s18  ;;  %v2521_v62 = vrot.slane %v905_v34, %v2202_v5  ;;  %v255_v34 = vsel %vm254_vm0, %v249_v1, %v251_v52  ;;  %v2581_v52 = vrot.slane %v1189_v12, %v2202_v5 }
 0x14a   :  { %s2443_s22 = sld [smem:[#allocation6 + $0x77]]  ;;  %1354 = vrot.lane.b32.xlu1 %v1989_v20, %s3804_s18  ;;  %v271_v20 = vpop.permute.xlu1 %270  ;;  %v269_v15 = vmul.f32 %v2252_v56, %v255_v34  ;;  %v296_v1 = vmul.f32 %v295_v47, %v268_v41  ;;  %v318_v25 = vmul.f32 %v317_v48, %v268_v41 }
 0x14b   :  { %3748 = sst [smem:[#allocation91_spill]] %s2378_s29  ;;  %3826 = vst [vmem:[#allocation106_spill] sm:$0xff] %v2581_v52 }
 0x14c   :  { %3750 = sst [smem:[#allocation92_spill]] %s2388_s14  ;;  %v297_v29 = vmul.f32 %v295_v47, %v269_v15  ;;  %v319_v7 = vmul.f32 %v317_v48, %v269_v15  ;;  %v287_v34 = vpop.permute.xlu0 %286  ;;  %v362_v48 = vmul.f32 %v361_v50, %v268_v41 }
 0x14d   :  { %s2398_s29 = sld [smem:[#allocation6 + $0x90]]  ;;  %1226 = vrot.lane.b32.xlu0 %v2002_v27, %s3767_s30 }
 0x14e   :  { %s2406_s14 = sld [smem:[#allocation6 + $0x85]]  ;;  %1228 = vrot.lane.b32.xlu1 %v2025_v31, %s3767_s30  ;;  %v273_v6 = vpop.permute.xlu1 %272 }
 0x14f   :  { %3770 = sst [smem:[#allocation99_spill]] %s2424_s20  ;;  %v274_v0 = vsel %vm254_vm0, %v271_v20, %v273_v6 }
 0x150   :  { %s2451_s26 = sld [smem:[#allocation6 + $0x7b]]  ;;  %v277_v12 = vmul.f32 %v274_v0, %v2252_v56 }
 0x151   :  { %s3786_s11 = sld [smem:[#allocation60_spill]]  ;;  %1360 = vrot.lane.b32.xlu0 %v1983_v17, %s3804_s18  ;;  %v340_v17 = vmul.f32 %v339_v49, %v268_v41 }
 0x152   :  { %s2461_s19 = sld [smem:[#allocation6 + $0x7f]]  ;;  %1362 = vrot.lane.b32.xlu1 %v2010_v28, %s3804_s18  ;;  %v323_v2 = vmul.f32 %v321_v57, %v277_v12  ;;  %v281_v9 = vpop.permute.xlu1 %280  ;;  %v345_v36 = vmul.f32 %v343_v58, %v277_v12  ;;  %v367_v41 = vmul.f32 %v365_v59, %v277_v12 }
 0x153   :  { %3756 = sst [smem:[#allocation94_spill]] %s2398_s29 }
 0x154   :  { %3759 = sst [smem:[#allocation95_spill]] %s2406_s14  ;;  %v325_v26 = vadd.f32 %v323_v2, %v319_v7 }
 0x155   :  { %s2416_s29 = sld [smem:[#allocation6 + $0x89]]  ;;  %1368 = vrot.lane.b32.xlu0 %v2002_v27, %s3804_s18  ;;  %v275_v27 = vsel %vm254_vm0, %v273_v6, %v271_v20  ;;  %v341_v6 = vmul.f32 %v339_v49, %v269_v15  ;;  %v363_v20 = vmul.f32 %v361_v50, %v269_v15 }
 0x156   :  { %s2468_s5 = sld [smem:[#allocation6 + $0x83]]  ;;  %v276_v47 = vmul.f32 %v275_v27, %v2234_v46  ;;  %v301_v27 = vmul.f32 %v299_v53, %v277_v12  ;;  %1370 = vrot.lane.b32.xlu1 %v2025_v31, %s3804_s18  ;;  %v289_v2 = vpop.permute.xlu1 %288 }
 0x157   :  { %s3792_s10 = sld [smem:[#allocation64_spill]]  ;;  %v347_v23 = vadd.f32 %v345_v36, %v341_v6 }
 0x158   :  { %3787 = sst [smem:[#allocation60_spill]] %s2461_s19  ;;  %v300_v39 = vmul.f32 %v299_v53, %v276_v47  ;;  %v322_v0 = vmul.f32 %v321_v57, %v276_v47  ;;  %v344_v28 = vmul.f32 %v343_v58, %v276_v47  ;;  %v366_v49 = vmul.f32 %v365_v59, %v276_v47  ;;  %v385_v53 = vpop.permute.xlu0 %384 }
 0x159   :  { %s3793_s4 = sld [smem:[#allocation65_spill]]  ;;  %v303_v15 = vadd.f32 %v301_v27, %v297_v29  ;;  %v369_v58 = vadd.f32 %v367_v41, %v363_v20  ;;  %v282_v47 = vsel %vm254_vm0, %v279_v16, %v281_v9  ;;  %v283_v59 = vsel %vm254_vm0, %v281_v9, %v279_v16 }
 0x15a   :  { %s2478_s2 = sld [smem:[#allocation6 + $0x86]]  ;;  %v302_v50 = vadd.f32 %v300_v39, %v296_v1  ;;  %v324_v55 = vadd.f32 %v322_v0, %v318_v25  ;;  %v346_v57 = vadd.f32 %v344_v28, %v340_v17  ;;  %v368_v14 = vadd.f32 %v366_v49, %v362_v48  ;;  %v387_v28 = vpop.permute.xlu1 %386 }
 0x15b   :  { %3764 = sst [smem:[#allocation97_spill]] %s2416_s29  ;;  %v284_v39 = vmul.f32 %v283_v59, %v2234_v46  ;;  %v285_v7 = vmul.f32 %v282_v47, %v2252_v56  ;;  %v290_v29 = vsel %vm254_vm0, %v287_v34, %v289_v2  ;;  %v291_v9 = vsel %vm254_vm0, %v289_v2, %v287_v34 }
 0x15c   :  { %s2434_s29 = sld [smem:[#allocation6 + $0x91]]  ;;  %v292_v25 = vmul.f32 %v291_v9, %v2234_v46  ;;  %v293_v1 = vmul.f32 %v290_v29, %v2252_v56  ;;  %v405_v16 = vpop.permute.xlu0 %404 }
 0x15d   :  { %3791 = sst [smem:[#allocation104_spill]] %s2468_s5  ;;  %v306_v6 = vmul.f32 %v305_v60, %v284_v39  ;;  %v307_v48 = vmul.f32 %v305_v60, %v285_v7  ;;  %v328_v20 = vmul.f32 %v327_v61, %v284_v39  ;;  %v329_v27 = vmul.f32 %v327_v61, %v285_v7 }
 0x15e   :  { %s2484_s19 = sld [smem:[#allocation6 + $0x8a]]  ;;  %v350_v0 = vmul.f32 %v349_v63, %v284_v39  ;;  %v351_v34 = vmul.f32 %v349_v63, %v285_v7  ;;  %v372_v46 = vmul.f32 %v371_v3, %v284_v39  ;;  %v373_v56 = vmul.f32 %v371_v3, %v285_v7 }
 0x15f   :  { %s2494_s21 = sld [smem:[#allocation6 + $0x8e]]  ;;  %v308_v60 = vadd.f32 %v306_v6, %v302_v50  ;;  %v309_v61 = vadd.f32 %v307_v48, %v303_v15  ;;  %v330_v49 = vadd.f32 %v328_v20, %v324_v55  ;;  %v331_v41 = vadd.f32 %v329_v27, %v325_v26 }
 0x160   :  { %s2500_s12 = sld [smem:[#allocation6 + $0x92]]  ;;  %v352_v63 = vadd.f32 %v350_v0, %v346_v57  ;;  %v353_v47 = vadd.f32 %v351_v34, %v347_v23  ;;  %v374_v59 = vadd.f32 %v372_v46, %v368_v14  ;;  %v375_v2 = vadd.f32 %v373_v56, %v369_v58  ;;  %v413_v39 = vpop.permute.xlu0 %412  ;;  %v407_v23 = vpop.permute.xlu1 %406 }
 0x161   :  { %s2510_s8 = sld [smem:[#allocation6 + $0x94]]  ;;  %v312_v3 = vmul.f32 %v311_v30, %v292_v25  ;;  %v313_v7 = vmul.f32 %v311_v30, %v293_v1  ;;  %v334_v29 = vmul.f32 %v333_v4, %v292_v25  ;;  %v335_v50 = vmul.f32 %v333_v4, %v293_v1 }
 0x162   :  { %s2516_s9 = sld [smem:[#allocation6 + $0x98]]  ;;  %v356_v15 = vmul.f32 %v355_v54, %v292_v25  ;;  %v357_v55 = vmul.f32 %v355_v54, %v293_v1  ;;  %v390_v0 = vsel %vm388_vm1, %v387_v28, %v385_v53  ;;  %v408_v34 = vsel %vm388_vm1, %v405_v16, %v407_v23 }
 0x163   :  { %s3807_s20 = sld [smem:[#allocation84_spill]]  ;;  %v2699_v14 = vadd.f32 %v312_v3, %v308_v60  ;;  %v2701_v58 = vadd.f32 %v313_v7, %v309_v61  ;;  %v2703_v48 = vadd.f32 %v334_v29, %v330_v49  ;;  %v2705_v30 = vadd.f32 %v335_v50, %v331_v41 }
 0x164   :  { %s3808_s5 = sld [smem:[#allocation85_spill]]  ;;  %v2707_v20 = vadd.f32 %v356_v15, %v352_v63  ;;  %v2709_v4 = vadd.f32 %v357_v55, %v353_v47  ;;  %v409_v46 = vsel %vm388_vm1, %v407_v23, %v405_v16  ;;  %v402_v56 = vmul.f32 %v2287_v19, %v390_v0 }
 0x165   :  { %3803 = sst [smem:[#allocation64_spill]] %s2494_s21  ;;  %v410_v61 = vmul.f32 %v409_v46, %v2287_v19  ;;  %v411_v49 = vmul.f32 %v408_v34, %v2299_v24  ;;  %v3954_v8 = vstv %s3793_s4 }
 0x166   :  { %s2526_s0 = sld [smem:[#allocation6 + $0x9c]] }
 0x167   :  { %3805 = sst [smem:[#allocation65_spill]] %s2510_s8 }
 0x168   :  { %3806 = sst [smem:[#allocation105_spill]] %s2516_s9 }
 0x169   :  { %s2532_s16 = sld [smem:[#allocation6 + $0xa0]] }
 0x16a   :  { %s3814_s7 = sld [smem:[#allocation90_spill]] }
 0x16b   :  { %s3815_s15 = sld [smem:[#allocation91_spill]] }
 0x16c   :  { %3812 = sst [smem:[#allocation84_spill]] %s2526_s0 }
 0x16d   :  { %s3816_s25 = sld [smem:[#allocation92_spill]] }
 0x16e   :  { %s3817_s24 = sld [smem:[#allocation94_spill]] }
 0x16f   :  { %3813 = sst [smem:[#allocation85_spill]] %s2532_s16 }
 0x170   :  { %s3819_s3 = sld [smem:[#allocation97_spill]] }
 0x171   :  { %s2542_s6 = sld [smem:[#allocation6 + $0x95]] }
 0x172   :  { %s2564_s13 = sld [smem:[#allocation6 + $0x99]] }
 0x173   :  { %s2590_s14 = sld [smem:[#allocation6 + $0x9d]] }
 0x174   :  { %s2599_s21 = sld [smem:[#allocation6 + $0xa1]] }
 0x175   :  { %s2609_s16 = sld [smem:[#allocation6 + $0x87]] }
 0x176   :  { %s2619_s8 = sld [smem:[#allocation6 + $0x8b]] }
 0x177   :  { %3820 = sst [smem:[#allocation90_spill]] %s2542_s6 }
 0x178   :  { %s2679_s23 = sld [smem:[#allocation6 + $0x8f]] }
 0x179   :  { %s3843_s28 = sld [smem:[#allocation29_spill]] }
 0x17a   :  { %s2681_s0 = sld [smem:[#allocation6 + $0x93]] }
 0x17b   :  { %3832 = sst [smem:[#allocation91_spill]] %s2609_s16 }
 0x17c   :  { %3835 = sst [smem:[#allocation92_spill]] %s2619_s8 }
 0x17d   :  { %s3846_s6 = sld [smem:[#allocation30_spill]] }
 0x17e   :  { %s3847_s9 = sld [smem:[#allocation31_spill]] }
 0x17f   :  { %v3844_v26 = vstv %s3843_s28  ;;  %s3848_s18 = sld [smem:[#allocation32_spill]] }
 0x180   :  { %v378_v9 = vmul.f32 %v3844_v26, %v292_v25  ;;  %v3845_v6 = vmov %v3844_v26  ;;  %v421_v25 = vpop.permute.xlu0 %420  ;;  %s3849_s17 = sld [smem:[#allocation33_spill]] }
 0x181   :  { %v379_v57 = vmul.f32 %v3845_v6, %v293_v1  ;;  %v389_v1 = vsel %vm388_vm1, %v385_v53, %v387_v28  ;;  %s3850_s30 = sld [smem:[#allocation34_spill]]  ;;  %v415_v53 = vpop.permute.xlu1 %414 }
 0x182   :  { %v2711_v27 = vadd.f32 %v378_v9, %v374_v59  ;;  %v403_v60 = vmul.f32 %v2299_v24, %v389_v1  ;;  %s3851_s28 = sld [smem:[#allocation35_spill]]  ;;  %v416_v28 = vsel %vm388_vm1, %v413_v39, %v415_v53  ;;  %v417_v16 = vsel %vm388_vm1, %v415_v53, %v413_v39 }
 0x183   :  { %v2713_v54 = vadd.f32 %v379_v57, %v375_v2  ;;  %s3852_s8 = sld [smem:[#allocation36_spill]]  ;;  %v3853_v47 = vstv %s3846_s6 }
 0x184   :  { %v430_v59 = vmul.f32 %v3853_v47, %v402_v56  ;;  %v3854_v2 = vmov %v3853_v47  ;;  %s3855_s16 = sld [smem:[#allocation37_spill]]  ;;  %v3856_v7 = vstv %s3847_s9  ;;  %v527_v55 = vpop.permute.xlu0 %526 }
 0x185   :  { %v431_v3 = vmul.f32 %v3854_v2, %v403_v60  ;;  %v454_v29 = vmul.f32 %v3856_v7, %v402_v56  ;;  %v3857_v50 = vmov %v3856_v7  ;;  %v3858_v26 = vstv %s3848_s18  ;;  %v423_v7 = vpop.permute.xlu1 %422  ;;  %s3870_s6 = sld [smem:[#allocation38_spill]] }
 0x186   :  { %v455_v15 = vmul.f32 %v3857_v50, %v403_v60  ;;  %v478_v9 = vmul.f32 %v3858_v26, %v402_v56  ;;  %v3859_v6 = vmov %v3858_v26  ;;  %v3860_v39 = vstv %s3849_s17  ;;  %s3871_s9 = sld [smem:[#allocation39_spill]] }
 0x187   :  { %v479_v57 = vmul.f32 %v3859_v6, %v403_v60  ;;  %v502_v23 = vmul.f32 %v3860_v39, %v402_v56  ;;  %v3861_v1 = vmov %v3860_v39  ;;  %v3862_v34 = vstv %s3850_s30  ;;  %s3872_s18 = sld [smem:[#allocation40_spill]] }
 0x188   :  { %v503_v0 = vmul.f32 %v3861_v1, %v403_v60  ;;  %v434_v46 = vmul.f32 %v3862_v34, %v410_v61  ;;  %v3863_v53 = vmov %v3862_v34  ;;  %v3864_v63 = vstv %s3851_s28  ;;  %v2766_v34 = vpop.permute.xlu0 %546  ;;  %s3880_s17 = sld [smem:[#allocation43_spill]] }
 0x189   :  { %v435_v47 = vmul.f32 %v3863_v53, %v411_v49  ;;  %v458_v2 = vmul.f32 %v3864_v63, %v410_v61  ;;  %v3865_v41 = vmov %v3864_v63  ;;  %v3866_v17 = vstv %s3852_s8  ;;  %s3878_s8 = sld [smem:[#allocation42_spill]] }
 0x18a   :  { %v459_v12 = vmul.f32 %v3865_v41, %v411_v49  ;;  %v482_v50 = vmul.f32 %v3866_v17, %v410_v61  ;;  %v3867_v36 = vmov %v3866_v17  ;;  %v3868_v26 = vstv %s3855_s16  ;;  %s3873_s16 = sld [smem:[#allocation41_spill]] }
 0x18b   :  { %v483_v31 = vmul.f32 %v3867_v36, %v411_v49  ;;  %v506_v40 = vmul.f32 %v3868_v26, %v410_v61  ;;  %v3869_v6 = vmov %v3868_v26  ;;  %v436_v56 = vadd.f32 %v434_v46, %v430_v59  ;;  %v529_v59 = vpop.permute.xlu1 %528  ;;  %s3884_s30 = sld [smem:[#allocation44_spill]] }
 0x18c   :  { %v507_v32 = vmul.f32 %v3869_v6, %v411_v49  ;;  %v437_v39 = vadd.f32 %v435_v47, %v431_v3  ;;  %v460_v60 = vadd.f32 %v458_v2, %v454_v29  ;;  %v461_v1 = vadd.f32 %v459_v12, %v455_v15  ;;  %s3885_s28 = sld [smem:[#allocation45_spill]] }
 0x18d   :  { %v484_v63 = vadd.f32 %v482_v50, %v478_v9  ;;  %v485_v41 = vadd.f32 %v483_v31, %v479_v57  ;;  %v508_v53 = vadd.f32 %v506_v40, %v502_v23  ;;  %v418_v36 = vmul.f32 %v417_v16, %v2287_v19  ;;  %s3963_s4 = sld [smem:[#allocation70_spill]] }
 0x18e   :  { %v509_v17 = vadd.f32 %v507_v32, %v503_v0  ;;  %v419_v61 = vmul.f32 %v416_v28, %v2299_v24  ;;  %v424_v12 = vsel %vm388_vm1, %v421_v25, %v423_v7  ;;  %v425_v49 = vsel %vm388_vm1, %v423_v7, %v421_v25  ;;  %v555_v0 = vpop.permute.xlu0 %554 }
 0x18f   :  { %v426_v3 = vmul.f32 %v425_v49, %v2287_v19  ;;  %v427_v40 = vmul.f32 %v424_v12, %v2299_v24  ;;  %v531_v32 = vsel %vm530_vm2, %v527_v55, %v529_v59  ;;  %v532_v31 = vsel %vm530_vm2, %v529_v59, %v527_v55  ;;  %v549_v59 = vpop.permute.xlu1 %548 }
 0x190   :  { %v3874_v16 = vstv %s3870_s6  ;;  %v3876_v9 = vstv %s3871_s9  ;;  %v3879_v19 = vstv %s3872_s18  ;;  %v3882_v2 = vstv %s3873_s16  ;;  %s3894_s6 = sld [smem:[#allocation46_spill]] }
 0x191   :  { %v440_v28 = vmul.f32 %v3874_v16, %v418_v36  ;;  %v3875_v29 = vmov %v3874_v16  ;;  %v464_v57 = vmul.f32 %v3876_v9, %v418_v36  ;;  %v3877_v23 = vmov %v3876_v9  ;;  %s3895_s9 = sld [smem:[#allocation47_spill]] }
 0x192   :  { %v441_v15 = vmul.f32 %v3875_v29, %v419_v61  ;;  %v465_v25 = vmul.f32 %v3877_v23, %v419_v61  ;;  %v488_v24 = vmul.f32 %v3879_v19, %v418_v36  ;;  %v3881_v46 = vmov %v3879_v19  ;;  %s3896_s18 = sld [smem:[#allocation48_spill]] }
 0x193   :  { %v489_v47 = vmul.f32 %v3881_v46, %v419_v61  ;;  %v512_v7 = vmul.f32 %v3882_v2, %v418_v36  ;;  %v3883_v55 = vmov %v3882_v2  ;;  %v442_v26 = vadd.f32 %v440_v28, %v436_v56  ;;  %s3897_s16 = sld [smem:[#allocation49_spill]] }
 0x194   :  { %v513_v50 = vmul.f32 %v3883_v55, %v419_v61  ;;  %v443_v6 = vadd.f32 %v441_v15, %v437_v39  ;;  %v466_v12 = vadd.f32 %v464_v57, %v460_v60  ;;  %v467_v49 = vadd.f32 %v465_v25, %v461_v1  ;;  %v2804_v55 = vpop.permute.xlu0 %562 }
 0x195   :  { %v490_v16 = vadd.f32 %v488_v24, %v484_v63  ;;  %v491_v29 = vadd.f32 %v489_v47, %v485_v41  ;;  %v514_v9 = vadd.f32 %v512_v7, %v508_v53  ;;  %v3886_v19 = vstv %s3878_s8  ;;  %v557_v24 = vpop.permute.xlu1 %556  ;;  %s3898_s8 = sld [smem:[#allocation50_spill]] }
 0x196   :  { %v515_v23 = vadd.f32 %v513_v50, %v509_v17  ;;  %v446_v52 = vmul.f32 %v3886_v19, %v426_v3  ;;  %v3887_v46 = vmov %v3886_v19  ;;  %v3888_v36 = vstv %s3880_s17  ;;  %s3899_s17 = sld [smem:[#allocation51_spill]] }
 0x197   :  { %v447_v43 = vmul.f32 %v3887_v46, %v427_v40  ;;  %v470_v2 = vmul.f32 %v3888_v36, %v426_v3  ;;  %v3889_v33 = vmov %v3888_v36  ;;  %v3890_v56 = vstv %s3884_s30  ;;  %s3900_s30 = sld [smem:[#allocation52_spill]] }
 0x198   :  { %v471_v61 = vmul.f32 %v3889_v33, %v427_v40  ;;  %v494_v39 = vmul.f32 %v3890_v56, %v426_v3  ;;  %v3891_v28 = vmov %v3890_v56  ;;  %v3892_v1 = vstv %s3885_s28  ;;  %s3903_s28 = sld [smem:[#allocation53_spill]] }
 0x199   :  { %v495_v60 = vmul.f32 %v3891_v28, %v427_v40  ;;  %v518_v15 = vmul.f32 %v3892_v1, %v426_v3  ;;  %v3893_v63 = vmov %v3892_v1  ;;  %v448_v53 = vadd.f32 %v446_v52, %v442_v26  ;;  %v671_v52 = vpop.permute.xlu0 %670 }
 0x19a   :  { %v519_v41 = vmul.f32 %v3893_v63, %v427_v40  ;;  %v449_v17 = vadd.f32 %v447_v43, %v443_v6  ;;  %v472_v57 = vadd.f32 %v470_v2, %v466_v12  ;;  %v473_v25 = vadd.f32 %v471_v61, %v467_v49 }
 0x19b   :  { %v496_v47 = vadd.f32 %v494_v39, %v490_v16  ;;  %v497_v7 = vadd.f32 %v495_v60, %v491_v29  ;;  %v520_v50 = vadd.f32 %v518_v15, %v514_v9  ;;  %v2816_v33 = vadd.f32 %v448_v53, %v2699_v14 }
 0x19c   :  { %v521_v19 = vadd.f32 %v519_v41, %v515_v23  ;;  %v2819_v46 = vadd.f32 %v449_v17, %v2701_v58  ;;  %v2822_v3 = vadd.f32 %v472_v57, %v2703_v48  ;;  %v2825_v43 = vadd.f32 %v473_v25, %v2705_v30 }
 0x19d   :  { %v2828_v40 = vadd.f32 %v496_v47, %v2707_v20  ;;  %v2831_v14 = vadd.f32 %v497_v7, %v2709_v4  ;;  %v2834_v58 = vadd.f32 %v520_v50, %v2711_v27  ;;  %v544_v30 = vmul.f32 %v2456_v37, %v532_v31  ;;  %v669_v27 = vpop.permute.xlu1 %668 }
 0x19e   :  { %v2837_v48 = vadd.f32 %v521_v19, %v2713_v54  ;;  %v545_v26 = vmul.f32 %v2473_v11, %v531_v32  ;;  %v550_v20 = vsel %vm530_vm2, %v2766_v34, %v549_v59  ;;  %v551_v4 = vsel %vm530_vm2, %v549_v59, %v2766_v34 }
 0x19f   :  { %v552_v54 = vmul.f32 %v551_v4, %v2456_v37  ;;  %v553_v31 = vmul.f32 %v550_v20, %v2473_v11  ;;  %v558_v32 = vsel %vm530_vm2, %v555_v0, %v557_v24  ;;  %v559_v6 = vsel %vm530_vm2, %v557_v24, %v555_v0  ;;  %v691_v24 = vpop.permute.xlu0 %690 }
 0x1a0   :  { %v3901_v12 = vstv %s3894_s6  ;;  %v3904_v59 = vstv %s3895_s9  ;;  %v3906_v36 = vstv %s3896_s18  ;;  %v3908_v39 = vstv %s3897_s16  ;;  %s3918_s6 = sld [smem:[#allocation54_spill]] }
 0x1a1   :  { %v572_v49 = vmul.f32 %v3901_v12, %v544_v30  ;;  %v3902_v16 = vmov %v3901_v12  ;;  %v596_v29 = vmul.f32 %v3904_v59, %v544_v30  ;;  %v3905_v9 = vmov %v3904_v59  ;;  %v689_v47 = vpop.permute.xlu1 %688  ;;  %s3919_s9 = sld [smem:[#allocation55_spill]] }
 0x1a2   :  { %v573_v34 = vmul.f32 %v3902_v16, %v545_v26  ;;  %v597_v23 = vmul.f32 %v3905_v9, %v545_v26  ;;  %v620_v2 = vmul.f32 %v3906_v36, %v544_v30  ;;  %v3907_v61 = vmov %v3906_v36  ;;  %s3920_s18 = sld [smem:[#allocation56_spill]] }
 0x1a3   :  { %v621_v56 = vmul.f32 %v3907_v61, %v545_v26  ;;  %v644_v28 = vmul.f32 %v3908_v39, %v544_v30  ;;  %v3909_v60 = vmov %v3908_v39  ;;  %v3910_v0 = vstv %s3898_s8  ;;  %s3921_s16 = sld [smem:[#allocation57_spill]] }
 0x1a4   :  { %v645_v1 = vmul.f32 %v3909_v60, %v545_v26  ;;  %v576_v15 = vmul.f32 %v3910_v0, %v552_v54  ;;  %v3911_v63 = vmov %v3910_v0  ;;  %v3912_v53 = vstv %s3899_s17  ;;  %s3926_s8 = sld [smem:[#allocation58_spill]] }
 0x1a5   :  { %v577_v41 = vmul.f32 %v3911_v63, %v553_v31  ;;  %v600_v17 = vmul.f32 %v3912_v53, %v552_v54  ;;  %v3913_v57 = vmov %v3912_v53  ;;  %v3914_v7 = vstv %s3900_s30  ;;  %s3928_s17 = sld [smem:[#allocation59_spill]] }
 0x1a6   :  { %v601_v25 = vmul.f32 %v3913_v57, %v553_v31  ;;  %v624_v50 = vmul.f32 %v3914_v7, %v552_v54  ;;  %v3915_v19 = vmov %v3914_v7  ;;  %v3916_v4 = vstv %s3903_s28  ;;  %s3932_s30 = sld [smem:[#allocation61_spill]] }
 0x1a7   :  { %v625_v20 = vmul.f32 %v3915_v19, %v553_v31  ;;  %v648_v12 = vmul.f32 %v3916_v4, %v552_v54  ;;  %v3917_v16 = vmov %v3916_v4  ;;  %v578_v59 = vadd.f32 %v576_v15, %v572_v49  ;;  %s3937_s28 = sld [smem:[#allocation62_spill]] }
 0x1a8   :  { %v649_v30 = vmul.f32 %v3917_v16, %v553_v31  ;;  %v579_v26 = vadd.f32 %v577_v41, %v573_v34  ;;  %v602_v9 = vadd.f32 %v600_v17, %v596_v29  ;;  %v603_v36 = vadd.f32 %v601_v25, %v597_v23  ;;  %v565_v34 = vpop.permute.xlu1 %564 }
 0x1a9   :  { %v626_v61 = vadd.f32 %v624_v50, %v620_v2  ;;  %v627_v39 = vadd.f32 %v625_v20, %v621_v56  ;;  %v650_v60 = vadd.f32 %v648_v12, %v644_v28  ;;  %v560_v63 = vmul.f32 %v559_v6, %v2456_v37 }
 0x1aa   :  { %v651_v0 = vadd.f32 %v649_v30, %v645_v1  ;;  %v561_v54 = vmul.f32 %v558_v32, %v2473_v11  ;;  %v673_v31 = vsel %vm672_vm3, %v669_v27, %v671_v52  ;;  %v674_v49 = vsel %vm672_vm3, %v671_v52, %v669_v27  ;;  %v697_v27 = vpop.permute.xlu0 %696 }
 0x1ab   :  { %v686_v29 = vmul.f32 %v2489_v51, %v674_v49  ;;  %v687_v23 = vmul.f32 %v2505_v35, %v673_v31  ;;  %v692_v2 = vsel %vm672_vm3, %v689_v47, %v691_v24  ;;  %v693_v6 = vsel %vm672_vm3, %v691_v24, %v689_v47 }
 0x1ac   :  { %v3922_v56 = vstv %s3918_s6  ;;  %v3924_v15 = vstv %s3919_s9  ;;  %v3927_v17 = vstv %s3920_s18  ;;  %v3930_v50 = vstv %s3921_s16  ;;  %v699_v30 = vpop.permute.xlu1 %698  ;;  %s3940_s6 = sld [smem:[#allocation63_spill]] }
 0x1ad   :  { %v582_v32 = vmul.f32 %v3922_v56, %v560_v63  ;;  %v3923_v28 = vmov %v3922_v56  ;;  %v606_v41 = vmul.f32 %v3924_v15, %v560_v63  ;;  %v3925_v53 = vmov %v3924_v15  ;;  %s3952_s9 = sld [smem:[#allocation67_spill]] }
 0x1ae   :  { %v583_v1 = vmul.f32 %v3923_v28, %v561_v54  ;;  %v607_v52 = vmul.f32 %v3925_v53, %v561_v54  ;;  %v630_v57 = vmul.f32 %v3927_v17, %v560_v63  ;;  %v3929_v25 = vmov %v3927_v17  ;;  %s3953_s18 = sld [smem:[#allocation68_spill]] }
 0x1af   :  { %v631_v7 = vmul.f32 %v3929_v25, %v561_v54  ;;  %v654_v24 = vmul.f32 %v3930_v50, %v560_v63  ;;  %v3931_v47 = vmov %v3930_v50  ;;  %v584_v20 = vadd.f32 %v582_v32, %v578_v59  ;;  %s3965_s16 = sld [smem:[#allocation72_spill]] }
 0x1b0   :  { %v655_v19 = vmul.f32 %v3931_v47, %v561_v54  ;;  %v585_v4 = vadd.f32 %v583_v1, %v579_v26  ;;  %v608_v12 = vadd.f32 %v606_v41, %v602_v9  ;;  %v609_v16 = vadd.f32 %v607_v52, %v603_v36  ;;  %v705_v41 = vpop.permute.xlu0 %704 }
 0x1b1   :  { %v632_v31 = vadd.f32 %v630_v57, %v626_v61  ;;  %v633_v49 = vadd.f32 %v631_v7, %v627_v39  ;;  %v656_v56 = vadd.f32 %v654_v24, %v650_v60  ;;  %v3933_v15 = vstv %s3926_s8  ;;  %s3972_s8 = sld [smem:[#allocation74_spill]] }
 0x1b2   :  { %v657_v28 = vadd.f32 %v655_v19, %v651_v0  ;;  %v714_v53 = vmul.f32 %v3933_v15, %v686_v29  ;;  %v3934_v17 = vmov %v3933_v15  ;;  %v3935_v44 = vstv %s3928_s17  ;;  %s3975_s17 = sld [smem:[#allocation75_spill]] }
 0x1b3   :  { %v715_v25 = vmul.f32 %v3934_v17, %v687_v23  ;;  %v738_v63 = vmul.f32 %v3935_v44, %v686_v29  ;;  %v3936_v50 = vmov %v3935_v44  ;;  %v3938_v47 = vstv %s3786_s11  ;;  %s3948_s11 = sld [smem:[#allocation66_spill]] }
 0x1b4   :  { %v739_v54 = vmul.f32 %v3936_v50, %v687_v23  ;;  %v762_v59 = vmul.f32 %v3938_v47, %v686_v29  ;;  %v3939_v26 = vmov %v3938_v47  ;;  %v3941_v36 = vstv %s3932_s30  ;;  %s3014_s30 = sld [smem:[#allocation6 + $0x96]] }
 0x1b5   :  { %v763_v9 = vmul.f32 %v3939_v26, %v687_v23  ;;  %v786_v61 = vmul.f32 %v3941_v36, %v686_v29  ;;  %v3942_v39 = vmov %v3941_v36  ;;  %v694_v0 = vmul.f32 %v693_v6, %v2489_v51  ;;  %v707_v29 = vpop.permute.xlu1 %706 }
 0x1b6   :  { %v787_v60 = vmul.f32 %v3942_v39, %v687_v23  ;;  %v695_v44 = vmul.f32 %v692_v2, %v2505_v35  ;;  %v566_v32 = vsel %vm530_vm2, %v2804_v55, %v565_v34  ;;  %v567_v1 = vsel %vm530_vm2, %v565_v34, %v2804_v55 }
 0x1b7   :  { %v568_v23 = vmul.f32 %v567_v1, %v2456_v37  ;;  %v569_v52 = vmul.f32 %v566_v32, %v2473_v11  ;;  %v700_v6 = vsel %vm672_vm3, %v697_v27, %v699_v30  ;;  %v701_v2 = vsel %vm672_vm3, %v699_v30, %v697_v27 }
 0x1b8   :  { %v3943_v57 = vstv %s3937_s28  ;;  %v3945_v15 = vstv %s3940_s6  ;;  %v3947_v37 = vstv %s2175_s27  ;;  %v3950_v26 = vstv %s3792_s10  ;;  %s3962_s27 = sld [smem:[#allocation69_spill]] }
 0x1b9   :  { %v718_v7 = vmul.f32 %v3943_v57, %v694_v0  ;;  %v3944_v24 = vmov %v3943_v57  ;;  %v742_v17 = vmul.f32 %v3945_v15, %v694_v0  ;;  %v3946_v50 = vmov %v3945_v15  ;;  %s3964_s10 = sld [smem:[#allocation71_spill]] }
 0x1ba   :  { %v719_v19 = vmul.f32 %v3944_v24, %v695_v44  ;;  %v743_v55 = vmul.f32 %v3946_v50, %v695_v44  ;;  %v766_v11 = vmul.f32 %v3947_v37, %v694_v0  ;;  %v3949_v34 = vmov %v3947_v37  ;;  %v909_v24 = vpop.permute.xlu1 %908  ;;  %s3976_s28 = sld [smem:[#allocation76_spill]] }
 0x1bb   :  { %v767_v47 = vmul.f32 %v3949_v34, %v695_v44  ;;  %v790_v27 = vmul.f32 %v3950_v26, %v694_v0  ;;  %v3951_v30 = vmov %v3950_v26  ;;  %v720_v39 = vadd.f32 %v718_v7, %v714_v53  ;;  %s3977_s6 = sld [smem:[#allocation77_spill]] }
 0x1bc   :  { %v791_v36 = vmul.f32 %v3951_v30, %v695_v44  ;;  %v721_v32 = vadd.f32 %v719_v19, %v715_v25  ;;  %v744_v1 = vadd.f32 %v742_v17, %v738_v63  ;;  %v745_v57 = vadd.f32 %v743_v55, %v739_v54  ;;  %v907_v30 = vpop.permute.xlu0 %906 }
 0x1bd   :  { %v768_v15 = vadd.f32 %v766_v11, %v762_v59  ;;  %v769_v50 = vadd.f32 %v767_v47, %v763_v9  ;;  %v792_v18 = vadd.f32 %v790_v27, %v786_v61  ;;  %v588_v13 = vmul.f32 %v3954_v8, %v568_v23 }
 0x1be   :  { %v793_v37 = vadd.f32 %v791_v36, %v787_v60  ;;  %v3955_v34 = vmov %v3954_v8  ;;  %v3956_v0 = vstv %s3948_s11  ;;  %v3958_v53 = vstv %s3952_s9  ;;  %s3016_s11 = sld [smem:[#allocation6 + $0x9a]] }
 0x1bf   :  { %v589_v38 = vmul.f32 %v3955_v34, %v569_v52  ;;  %v612_v26 = vmul.f32 %v3956_v0, %v568_v23  ;;  %v3957_v45 = vmov %v3956_v0  ;;  %v636_v7 = vmul.f32 %v3958_v53, %v568_v23  ;;  %s3018_s9 = sld [smem:[#allocation6 + $0x9e]] }
 0x1c0   :  { %v613_v44 = vmul.f32 %v3957_v45, %v569_v52  ;;  %v3959_v25 = vmov %v3958_v53  ;;  %v3960_v63 = vstv %s3953_s18  ;;  %v590_v9 = vadd.f32 %v588_v13, %v584_v20  ;;  %s3028_s18 = sld [smem:[#allocation6 + $0xa2]] }
 0x1c1   :  { %v637_v19 = vmul.f32 %v3959_v25, %v569_v52  ;;  %v660_v54 = vmul.f32 %v3960_v63, %v568_v23  ;;  %v3961_v17 = vmov %v3960_v63  ;;  %v591_v61 = vadd.f32 %v589_v38, %v585_v4  ;;  %v2980_v23 = vpop.permute.xlu1 %928  ;;  %v927_v4 = vpop.permute.xlu0 %926 }
 0x1c2   :  { %v661_v59 = vmul.f32 %v3961_v17, %v569_v52  ;;  %v614_v60 = vadd.f32 %v612_v26, %v608_v12  ;;  %v615_v55 = vadd.f32 %v613_v44, %v609_v16  ;;  %v638_v8 = vadd.f32 %v636_v7, %v632_v31 }
 0x1c3   :  { %v639_v11 = vadd.f32 %v637_v19, %v633_v49  ;;  %v662_v47 = vadd.f32 %v660_v54, %v656_v56  ;;  %v592_v36 = vadd.f32 %v590_v9, %v2816_v33  ;;  %v593_v45 = vadd.f32 %v591_v61, %v2819_v46 }
 0x1c4   :  { %v663_v27 = vadd.f32 %v661_v59, %v657_v28  ;;  %v616_v34 = vadd.f32 %v614_v60, %v2822_v3  ;;  %v617_v0 = vadd.f32 %v615_v55, %v2825_v43  ;;  %v640_v38 = vadd.f32 %v638_v8, %v2828_v40 }
 0x1c5   :  { %v641_v13 = vadd.f32 %v639_v11, %v2831_v14  ;;  %v664_v20 = vadd.f32 %v662_v47, %v2834_v58  ;;  %v702_v46 = vmul.f32 %v701_v2, %v2489_v51  ;;  %v703_v3 = vmul.f32 %v700_v6, %v2505_v35  ;;  %v937_v63 = vpop.permute.xlu1 %936 }
 0x1c6   :  { %v665_v33 = vadd.f32 %v663_v27, %v2837_v48  ;;  %v708_v43 = vsel %vm672_vm3, %v705_v41, %v707_v29  ;;  %v709_v40 = vsel %vm672_vm3, %v707_v29, %v705_v41  ;;  %v911_v48 = vsel %vm910_vm4, %v907_v30, %v909_v24 }
 0x1c7   :  { %v710_v14 = vmul.f32 %v709_v40, %v2489_v51  ;;  %v711_v58 = vmul.f32 %v708_v43, %v2505_v35  ;;  %v912_v12 = vsel %vm910_vm4, %v909_v24, %v907_v30  ;;  %v3966_v16 = vstv %s3962_s27  ;;  %s3986_s27 = sld [smem:[#allocation78_spill]] }
 0x1c8   :  { %v724_v31 = vmul.f32 %v3966_v16, %v702_v46  ;;  %v3967_v49 = vmov %v3966_v16  ;;  %v3968_v28 = vstv %s3963_s4  ;;  %v3970_v41 = vstv %s3964_s10  ;;  %s3987_s4 = sld [smem:[#allocation79_spill]] }
 0x1c9   :  { %v725_v56 = vmul.f32 %v3967_v49, %v703_v3  ;;  %v748_v52 = vmul.f32 %v3968_v28, %v702_v46  ;;  %v3969_v6 = vmov %v3968_v28  ;;  %v772_v29 = vmul.f32 %v3970_v41, %v702_v46  ;;  %s3988_s10 = sld [smem:[#allocation82_spill]] }
 0x1ca   :  { %v749_v2 = vmul.f32 %v3969_v6, %v703_v3  ;;  %v3971_v26 = vmov %v3970_v41  ;;  %v3973_v35 = vstv %s3965_s16  ;;  %v726_v24 = vadd.f32 %v724_v31, %v720_v39  ;;  %s3989_s16 = sld [smem:[#allocation80_spill]] }
 0x1cb   :  { %v773_v51 = vmul.f32 %v3971_v26, %v703_v3  ;;  %v796_v44 = vmul.f32 %v3973_v35, %v702_v46  ;;  %v3974_v53 = vmov %v3973_v35  ;;  %v727_v30 = vadd.f32 %v725_v56, %v721_v32 }
 0x1cc   :  { %v797_v7 = vmul.f32 %v3974_v53, %v703_v3  ;;  %v750_v25 = vadd.f32 %v748_v52, %v744_v1  ;;  %v751_v19 = vadd.f32 %v749_v2, %v745_v57  ;;  %v774_v54 = vadd.f32 %v772_v29, %v768_v15  ;;  %v935_v57 = vpop.permute.xlu0 %934 }
 0x1cd   :  { %v775_v17 = vadd.f32 %v773_v51, %v769_v50  ;;  %v798_v59 = vadd.f32 %v796_v44, %v792_v18  ;;  %v3978_v61 = vstv %s3972_s8  ;;  %v3980_v32 = vstv %s3975_s17  ;;  %s3990_s8 = sld [smem:[#allocation83_spill]] }
 0x1ce   :  { %v799_v9 = vadd.f32 %v797_v7, %v793_v37  ;;  %v730_v60 = vmul.f32 %v3978_v61, %v710_v14  ;;  %v3979_v55 = vmov %v3978_v61  ;;  %v754_v8 = vmul.f32 %v3980_v32, %v710_v14  ;;  %s3991_s17 = sld [smem:[#allocation81_spill]] }
 0x1cf   :  { %v731_v39 = vmul.f32 %v3979_v55, %v711_v58  ;;  %v3981_v1 = vmov %v3980_v32  ;;  %v3982_v47 = vstv %s3976_s28  ;;  %v3984_v50 = vstv %s3977_s6  ;;  %s4008_s28 = sld [smem:[#allocation87_spill]] }
 0x1d0   :  { %v755_v11 = vmul.f32 %v3981_v1, %v711_v58  ;;  %v778_v27 = vmul.f32 %v3982_v47, %v710_v14  ;;  %v3983_v46 = vmov %v3982_v47  ;;  %v802_v18 = vmul.f32 %v3984_v50, %v710_v14  ;;  %s4010_s6 = sld [smem:[#allocation88_spill]] }
 0x1d1   :  { %v779_v15 = vmul.f32 %v3983_v46, %v711_v58  ;;  %v3985_v37 = vmov %v3984_v50  ;;  %v732_v43 = vadd.f32 %v730_v60, %v726_v24  ;;  %v733_v40 = vadd.f32 %v731_v39, %v727_v30 }
 0x1d2   :  { %v803_v3 = vmul.f32 %v3985_v37, %v711_v58  ;;  %v756_v16 = vadd.f32 %v754_v8, %v750_v25  ;;  %v757_v31 = vadd.f32 %v755_v11, %v751_v19  ;;  %v780_v49 = vadd.f32 %v778_v27, %v774_v54  ;;  %v1051_v58 = vpop.permute.xlu1 %1050 }
 0x1d3   :  { %v781_v56 = vadd.f32 %v779_v15, %v775_v17  ;;  %v804_v28 = vadd.f32 %v802_v18, %v798_v59  ;;  %v3039_v6 = vadd.f32 %v732_v43, %v592_v36  ;;  %v3041_v2 = vadd.f32 %v733_v40, %v593_v45  ;;  %v3055_v45 = vld [vmem:[#allocation7 + $0x10] sm:$0x3] }
 0x1d4   :  { %v805_v52 = vadd.f32 %v803_v3, %v799_v9  ;;  %v3043_v41 = vadd.f32 %v756_v16, %v616_v34  ;;  %v3045_v14 = vadd.f32 %v757_v31, %v617_v0  ;;  %v3047_v29 = vadd.f32 %v780_v49, %v640_v38 }
 0x1d5   :  { %v3049_v26 = vadd.f32 %v781_v56, %v641_v13  ;;  %v3051_v51 = vadd.f32 %v804_v28, %v664_v20  ;;  %v924_v34 = vmul.f32 %v2521_v62, %v911_v48  ;;  %v925_v0 = vmul.f32 %v2537_v21, %v912_v12  ;;  %v1049_v20 = vpop.permute.xlu0 %1048 }
 0x1d6   :  { %v3053_v36 = vadd.f32 %v805_v52, %v665_v33  ;;  %v930_v38 = vsel %vm910_vm4, %v927_v4, %v2980_v23  ;;  %v931_v13 = vsel %vm910_vm4, %v2980_v23, %v927_v4  ;;  %v1245_v48 = vstv %s3014_s30  ;;  %v1071_v8 = vpop.permute.xlu1 %1070  ;;  %s3396_s30 = sld [smem:[#allocation6 + $0x97]] }
 0x1d7   :  { %v932_v33 = vmul.f32 %v930_v38, %v2521_v62  ;;  %v933_v35 = vmul.f32 %v931_v13, %v2537_v21  ;;  %v1269_v12 = vstv %s3016_s11  ;;  %v938_v44 = vsel %vm910_vm4, %v935_v57, %v937_v63  ;;  %s3406_s11 = sld [smem:[#allocation6 + $0x9b]] }
 0x1d8   :  { %v1293_v53 = vstv %s3018_s9  ;;  %v1317_v7 = vstv %s3028_s18  ;;  %v3075_v23 = vrot.slane %v3055_v45, %v2202_v5  ;;  %v3992_v4 = vstv %s3986_s27  ;;  %s3355_s27 = sld [smem:[#allocation6 + $0xad]] }
 0x1d9   :  { %v952_v24 = vmul.f32 %v3992_v4, %v924_v34  ;;  %v3993_v30 = vmov %v3992_v4  ;;  %v3994_v19 = vstv %s3987_s4  ;;  %v939_v17 = vsel %vm910_vm4, %v937_v63, %v935_v57  ;;  %v1069_v49 = vpop.permute.xlu0 %1068  ;;  %s3365_s4 = sld [smem:[#allocation6 + $0xb1]] }
 0x1da   :  { %v953_v25 = vmul.f32 %v3993_v30, %v925_v0  ;;  %v976_v54 = vmul.f32 %v3994_v19, %v924_v34  ;;  %v3995_v59 = vmov %v3994_v19  ;;  %v3996_v61 = vstv %s2289_s1  ;;  %s4007_s1 = sld [smem:[#allocation86_spill]] }
 0x1db   :  { %v977_v9 = vmul.f32 %v3995_v59, %v925_v0  ;;  %v956_v60 = vmul.f32 %v3996_v61, %v932_v33  ;;  %v3997_v55 = vmov %v3996_v61  ;;  %v3998_v5 = vstv %s3988_s10  ;;  %s3413_s9 = sld [smem:[#allocation6 + $0x9f]] }
 0x1dc   :  { %v957_v39 = vmul.f32 %v3997_v55, %v933_v35  ;;  %v980_v32 = vmul.f32 %v3998_v5, %v932_v33  ;;  %v3999_v1 = vstv %s3989_s16  ;;  %v4001_v46 = vmov %v3998_v5  ;;  %s3421_s18 = sld [smem:[#allocation6 + $0xa3]] }
 0x1dd   :  { %v1000_v11 = vmul.f32 %v3999_v1, %v924_v34  ;;  %v4000_v47 = vmov %v3999_v1  ;;  %v981_v15 = vmul.f32 %v4001_v46, %v933_v35  ;;  %v4002_v50 = vstv %s3990_s8  ;;  %s3435_s10 = sld [smem:[#allocation6 + $0xa6]] }
 0x1de   :  { %v1001_v27 = vmul.f32 %v4000_v47, %v925_v0  ;;  %v1004_v18 = vmul.f32 %v4002_v50, %v932_v33  ;;  %v4003_v37 = vstv %s3991_s17  ;;  %v4005_v43 = vmov %v4002_v50  ;;  %s3437_s16 = sld [smem:[#allocation6 + $0xaa]] }
 0x1df   :  { %v1024_v63 = vmul.f32 %v4003_v37, %v924_v34  ;;  %v4004_v57 = vmov %v4003_v37  ;;  %v1005_v40 = vmul.f32 %v4005_v43, %v933_v35  ;;  %v4006_v16 = vstv %s3807_s20  ;;  %s4019_s20 = sld [smem:[#allocation95_spill]] }
 0x1e0   :  { %v1025_v3 = vmul.f32 %v4004_v57, %v925_v0  ;;  %v1028_v31 = vmul.f32 %v4006_v16, %v932_v33  ;;  %v958_v56 = vadd.f32 %v956_v60, %v952_v24  ;;  %v959_v28 = vadd.f32 %v957_v39, %v953_v25  ;;  %v945_v39 = vpop.permute.xlu1 %944  ;;  %s3439_s8 = sld [smem:[#allocation6 + $0xae]] }
 0x1e1   :  { %v982_v52 = vadd.f32 %v980_v32, %v976_v54  ;;  %v4009_v38 = vmov %v4006_v16  ;;  %v940_v34 = vmul.f32 %v938_v44, %v2521_v62  ;;  %v941_v0 = vmul.f32 %v939_v17, %v2537_v21  ;;  %s3444_s17 = sld [smem:[#allocation6 + $0xb2]] }
 0x1e2   :  { %v1029_v13 = vmul.f32 %v4009_v38, %v933_v35  ;;  %v1053_v4 = vsel %vm1052_vm5, %v1049_v20, %v1051_v58  ;;  %v1054_v33 = vsel %vm1052_vm5, %v1051_v58, %v1049_v20  ;;  %v983_v30 = vadd.f32 %v981_v15, %v977_v9 }
 0x1e3   :  { %v1006_v24 = vadd.f32 %v1004_v18, %v1000_v11  ;;  %v1066_v25 = vmul.f32 %v2547_v10, %v1053_v4  ;;  %v1067_v19 = vmul.f32 %v2550_v22, %v1054_v33  ;;  %v4011_v54 = vstv %s3808_s5  ;;  %v943_v18 = vpop.permute.xlu0 %942  ;;  %s4024_s5 = sld [smem:[#allocation99_spill]] }
 0x1e4   :  { %v962_v35 = vmul.f32 %v4011_v54, %v940_v34  ;;  %v4012_v59 = vmov %v4011_v54  ;;  %v4013_v44 = vstv %s4007_s1  ;;  %v4015_v5 = vstv %s4008_s28  ;;  %v1079_v54 = vpop.permute.xlu1 %1078  ;;  %s3467_s1 = sld [smem:[#allocation6 + $0xa7]] }
 0x1e5   :  { %v963_v61 = vmul.f32 %v4012_v59, %v941_v0  ;;  %v986_v60 = vmul.f32 %v4013_v44, %v940_v34  ;;  %v4014_v55 = vmov %v4013_v44  ;;  %v1010_v32 = vmul.f32 %v4015_v5, %v940_v34  ;;  %s3469_s28 = sld [smem:[#allocation6 + $0xab]] }
 0x1e6   :  { %v987_v17 = vmul.f32 %v4014_v55, %v941_v0  ;;  %v4016_v1 = vmov %v4015_v5  ;;  %v4017_v58 = vstv %s4010_s6  ;;  %v1007_v46 = vadd.f32 %v1005_v40, %v1001_v27  ;;  %s3475_s6 = sld [smem:[#allocation6 + $0xaf]] }
 0x1e7   :  { %v1011_v47 = vmul.f32 %v4016_v1, %v941_v0  ;;  %v1034_v20 = vmul.f32 %v4017_v58, %v940_v34  ;;  %v4018_v9 = vmov %v4017_v58  ;;  %v1030_v15 = vadd.f32 %v1028_v31, %v1024_v63 }
 0x1e8   :  { %v1035_v11 = vmul.f32 %v4018_v9, %v941_v0  ;;  %v1031_v50 = vadd.f32 %v1029_v13, %v1025_v3  ;;  %v1072_v37 = vsel %vm1052_vm5, %v1069_v49, %v1071_v8  ;;  %v964_v57 = vadd.f32 %v962_v35, %v958_v56 }
 0x1e9   :  { %v965_v43 = vadd.f32 %v963_v61, %v959_v28  ;;  %v988_v16 = vadd.f32 %v986_v60, %v982_v52  ;;  %v1073_v38 = vsel %vm1052_vm5, %v1071_v8, %v1069_v49  ;;  %v989_v34 = vadd.f32 %v987_v17, %v983_v30  ;;  %v4029_v17 = vld [vmem:[#allocation100_spill] sm:$0xff] }
 0x1ea   :  { %v1012_v27 = vadd.f32 %v1010_v32, %v1006_v24  ;;  %v1013_v63 = vadd.f32 %v1011_v47, %v1007_v46  ;;  %v3139_v3 = vadd.f32 %v1034_v20, %v1030_v15  ;;  %v3141_v40 = vadd.f32 %v1035_v11, %v1031_v50  ;;  %v1077_v15 = vpop.permute.xlu0 %1076 }
 0x1eb   :  { %v4020_v31 = vstv %s3814_s7  ;;  %v4022_v13 = vstv %s3815_s15  ;;  %v4025_v49 = vstv %s3816_s25  ;;  %v1074_v30 = vmul.f32 %v1072_v37, %v2547_v10  ;;  %s4064_s25 = sld [smem:[#allocation65_spill]] }
 0x1ec   :  { %v1094_v56 = vmul.f32 %v4020_v31, %v1066_v25  ;;  %v4021_v28 = vmov %v4020_v31  ;;  %v1118_v0 = vmul.f32 %v4022_v13, %v1066_v25  ;;  %v4023_v4 = vmov %v4022_v13  ;;  %v4037_v31 = vld [vmem:[#allocation93_spill] sm:$0xff]  ;;  %s4069_s7 = sld [smem:[#allocation84_spill]] }
 0x1ed   :  { %v1095_v52 = vmul.f32 %v4021_v28, %v1067_v19  ;;  %v1119_v8 = vmul.f32 %v4023_v4, %v1067_v19  ;;  %v1142_v33 = vmul.f32 %v4025_v49, %v1066_v25  ;;  %v1075_v24 = vmul.f32 %v1073_v38, %v2550_v22  ;;  %v4036_v38 = vld [vmem:[#allocation101_spill] sm:$0xff]  ;;  %s3332_s15 = sld [smem:[#allocation6 + $0xac]] }
 0x1ee   :  { %v4026_v35 = vmov %v4025_v49  ;;  %v4027_v61 = vstv %s3817_s24  ;;  %v830_v5 = vadd.f32 %v4029_v17, %v3039_v6  ;;  %v4030_v32 = vstv %s4019_s20  ;;  %v4041_v17 = vld [vmem:[#allocation96_spill] sm:$0xff]  ;;  %s4044_s24 = sld [smem:[#allocation104_spill]] }
 0x1ef   :  { %v1143_v59 = vmul.f32 %v4026_v35, %v1067_v19  ;;  %v1166_v44 = vmul.f32 %v4027_v61, %v1066_v25  ;;  %v4028_v60 = vmov %v4027_v61  ;;  %v1098_v1 = vmul.f32 %v4030_v32, %v1074_v30  ;;  %v4035_v25 = vld [vmem:[#allocation89_spill] sm:$0xff]  ;;  %v4040_v61 = vld [vmem:[#allocation102_spill] sm:$0xff]  ;;  %s3482_s20 = sld [smem:[#allocation6 + $0xb3]] }
 0x1f0   :  { %v1167_v55 = vmul.f32 %v4028_v60, %v1067_v19  ;;  %v4031_v47 = vmov %v4030_v32  ;;  %v4032_v20 = vstv %s3819_s3  ;;  %v4034_v50 = vstv %s4024_s5  ;;  %s4043_s3 = sld [smem:[#allocation60_spill]]  ;;  %s1781_s5 = smov [#allocation9]  }
 0x1f1   :  { %v1099_v58 = vmul.f32 %v4031_v47, %v1075_v24  ;;  %v1122_v9 = vmul.f32 %v4032_v20, %v1074_v30  ;;  %v4033_v11 = vmov %v4032_v20  ;;  %v1146_v37 = vmul.f32 %v4034_v50, %v1074_v30 }
 0x1f2   :  { %v1123_v46 = vmul.f32 %v4033_v11, %v1075_v24  ;;  %v831_v19 = vadd.f32 %v4035_v25, %v3041_v2  ;;  %v854_v6 = vadd.f32 %v4036_v38, %v3043_v41  ;;  %v855_v28 = vadd.f32 %v4037_v31, %v3045_v14 }
 0x1f3   :  { %v4038_v13 = vmov %v4034_v50  ;;  %v4039_v49 = vstv %s2434_s29  ;;  %v878_v60 = vadd.f32 %v4040_v61, %v3047_v29  ;;  %v879_v32 = vadd.f32 %v4041_v17, %v3049_v26  ;;  %v1193_v26 = vpop.permute.xlu1 %1192  ;;  %s4070_s29 = sld [smem:[#allocation85_spill]] }
 0x1f4   :  { %v1147_v4 = vmul.f32 %v4038_v13, %v1075_v24  ;;  %v1170_v35 = vmul.f32 %v4039_v49, %v1074_v30  ;;  %v1100_v47 = vadd.f32 %v1098_v1, %v1094_v56  ;;  %v1101_v20 = vadd.f32 %v1099_v58, %v1095_v52  ;;  %v1191_v1 = vpop.permute.xlu0 %1190 }
 0x1f5   :  { %v1124_v11 = vadd.f32 %v1122_v9, %v1118_v0  ;;  %v4042_v2 = vmov %v4039_v49  ;;  %v1125_v41 = vadd.f32 %v1123_v46, %v1119_v8  ;;  %v1148_v14 = vadd.f32 %v1146_v37, %v1142_v33 }
 0x1f6   :  { %v1171_v50 = vmul.f32 %v4042_v2, %v1075_v24  ;;  %v946_v30 = vsel %vm910_vm4, %v943_v18, %v945_v39  ;;  %v947_v29 = vsel %vm910_vm4, %v945_v39, %v943_v18  ;;  %v1080_v0 = vsel %vm1052_vm5, %v1077_v15, %v1079_v54 }
 0x1f7   :  { %v948_v56 = vmul.f32 %v946_v30, %v2521_v62  ;;  %v949_v52 = vmul.f32 %v947_v29, %v2537_v21  ;;  %v1081_v8 = vsel %vm1052_vm5, %v1079_v54, %v1077_v15  ;;  %v1149_v33 = vadd.f32 %v1147_v4, %v1143_v59  ;;  %v4053_v29 = vld [vmem:[#allocation103_spill] sm:$0xff] }
 0x1f8   :  { %v1172_v24 = vadd.f32 %v1170_v35, %v1166_v44  ;;  %v1082_v58 = vmul.f32 %v1080_v0, %v2547_v10  ;;  %v1083_v39 = vmul.f32 %v1081_v8, %v2550_v22  ;;  %v4045_v18 = vstv %s2443_s22  ;;  %s4055_s22 = sld [smem:[#allocation64_spill]] }
 0x1f9   :  { %v968_v9 = vmul.f32 %v4045_v18, %v948_v56  ;;  %v4046_v46 = vmov %v4045_v18  ;;  %v4047_v37 = vstv %s2451_s26  ;;  %v4049_v31 = vstv %s4043_s3  ;;  %s4066_s26 = sld [smem:[#allocation105_spill]]  ;;  %s1488_s3 = sshll.u32 %s1781_s5, 4  ;;  %s1489_s3 = int_to_ptr.vmem [resolvable:$true] %s1488_s3 }
 0x1fa   :  { %v969_v62 = vmul.f32 %v4046_v46, %v949_v52  ;;  %v992_v25 = vmul.f32 %v4047_v37, %v948_v56  ;;  %v4048_v21 = vmov %v4047_v37  ;;  %v1016_v13 = vmul.f32 %v4049_v31, %v948_v56  ;;  %v1213_v46 = vpop.permute.xlu1 %1212  ;;  %v4054_v37 = vld [vmem:[#allocation98_spill] sm:$0xff]  ;;  %p1745_p11 = scmp.lt.s32.totalorder %s1489_s3, %s1489_s3 }
 0x1fb   :  { %v993_v38 = vmul.f32 %v4048_v21, %v949_v52  ;;  %v4050_v49 = vmov %v4049_v31  ;;  %v4051_v54 = vstv %s4044_s24  ;;  %v970_v4 = vadd.f32 %v968_v9, %v964_v57  ;;  %s1740_s24 = scalar_lea.vmem %s1489_s3, 1024 }
 0x1fc   :  { %v1017_v61 = vmul.f32 %v4050_v49, %v949_v52  ;;  %v1040_v59 = vmul.f32 %v4051_v54, %v948_v56  ;;  %v4052_v44 = vmov %v4051_v54  ;;  %v971_v35 = vadd.f32 %v969_v62, %v965_v43  ;;  %p1741_p10 = scmp.ne.s32.totalorder %s1489_s3, %s1740_s24  ;;  %p1746_p12 = scmp.lt.s32.totalorder %s1740_s24, %s1740_s24 }
 0x1fd   :  { %v1041_v15 = vmul.f32 %v4052_v44, %v949_v52  ;;  %v994_v17 = vadd.f32 %v992_v25, %v988_v16  ;;  %v995_v2 = vadd.f32 %v993_v38, %v989_v34  ;;  %v1173_v30 = vadd.f32 %v1171_v50, %v1167_v55 }
 0x1fe   :  { %v902_v0 = vadd.f32 %v4053_v29, %v3051_v51  ;;  %v1018_v8 = vadd.f32 %v1016_v13, %v1012_v27  ;;  %v1019_v18 = vadd.f32 %v1017_v61, %v1013_v63  ;;  %v903_v56 = vadd.f32 %v4054_v37, %v3053_v36  ;;  %v1211_v63 = vpop.permute.xlu0 %1210  ;;  %p1747_p13 = por %p1746_p12, %p1745_p11 }
 0x1ff   :  { %v1042_v57 = vadd.f32 %v1040_v59, %v3139_v3  ;;  %v1195_v43 = vsel %vm1194_vm6, %v1191_v1, %v1193_v26  ;;  %v1196_v16 = vsel %vm1194_vm6, %v1193_v26, %v1191_v1  ;;  %v3227_v51 = vadd.f32 %v970_v4, %v830_v5 }
 0x200   :  { %v3229_v34 = vadd.f32 %v971_v35, %v831_v19  ;;  %v3231_v27 = vadd.f32 %v994_v17, %v854_v6  ;;  %v1043_v36 = vadd.f32 %v1041_v15, %v3141_v40  ;;  %v3234_v55 = vadd.f32 %v995_v2, %v855_v28  ;;  %v4065_v15 = vld [vmem:[#allocation106_spill] sm:$0xff]  ;;  %v4067_v35 = vld [vmem:[#allocation107_spill] sm:$0xff]  ;;  %p1748_p0 = pnand %p1747_p13, %p1741_p10 }
 0x201   :  { %v4056_v3 = vstv %s2478_s2  ;;  %v4058_v62 = vstv %s2484_s19  ;;  %v3242_v26 = vadd.f32 %v1018_v8, %v878_v60  ;;  %v3244_v5 = vadd.f32 %v1019_v18, %v879_v32  ;;  %v1087_v32 = vpop.permute.xlu1 %1086  ;;  %s4068_s2 = sld [smem:[#allocation90_spill]] }
 0x202   :  { %v1104_v50 = vmul.f32 %v4056_v3, %v1082_v58  ;;  %v4057_v52 = vmov %v4056_v3  ;;  %v1128_v25 = vmul.f32 %v4058_v62, %v1082_v58  ;;  %v4059_v1 = vmov %v4058_v62  ;;  %s3335_s19 = sld [smem:[#allocation6 + $0xb0]] }
 0x203   :  { %v1105_v9 = vmul.f32 %v4057_v52, %v1083_v39  ;;  %v1129_v19 = vmul.f32 %v4059_v1, %v1083_v39  ;;  %v4060_v21 = vstv %s4055_s22  ;;  %v3250_v38 = vadd.f32 %v1042_v57, %v902_v0 }
 0x204   :  { %v1152_v6 = vmul.f32 %v4060_v21, %v1082_v58  ;;  %v4061_v40 = vmov %v4060_v21  ;;  %v4062_v28 = vstv %s2500_s12  ;;  %v3258_v54 = vadd.f32 %v1043_v36, %v903_v56  ;;  %s4086_s12 = sld [smem:[#allocation91_spill]] }
 0x205   :  { %v1153_v31 = vmul.f32 %v4061_v40, %v1083_v39  ;;  %v1176_v13 = vmul.f32 %v4062_v28, %v1082_v58  ;;  %v4063_v49 = vmov %v4062_v28  ;;  %v1106_v59 = vadd.f32 %v1104_v50, %v1100_v47 }
 0x206   :  { %v1177_v61 = vmul.f32 %v4063_v49, %v1083_v39  ;;  %v1107_v44 = vadd.f32 %v1105_v9, %v1101_v20  ;;  %v1130_v60 = vadd.f32 %v1128_v25, %v1124_v11  ;;  %v1208_v4 = vmul.f32 %v4065_v15, %v1195_v43  ;;  %v1085_v11 = vpop.permute.xlu0 %1084 }
 0x207   :  { %v1209_v17 = vmul.f32 %v4067_v35, %v1196_v16  ;;  %v1214_v2 = vsel %vm1194_vm6, %v1211_v63, %v1213_v46  ;;  %v1215_v58 = vsel %vm1194_vm6, %v1213_v46, %v1211_v63  ;;  %v1131_v47 = vadd.f32 %v1129_v19, %v1125_v41 }
 0x208   :  { %v1154_v20 = vadd.f32 %v1152_v6, %v1148_v14  ;;  %v1216_v39 = vmul.f32 %v1214_v2, %v4065_v15  ;;  %v1217_v29 = vmul.f32 %v1215_v58, %v4067_v35  ;;  %v1155_v0 = vadd.f32 %v1153_v31, %v1149_v33  ;;  %v1221_v31 = vpop.permute.xlu1 %1220 }
 0x209   :  { %v1178_v8 = vadd.f32 %v1176_v13, %v1172_v24  ;;  %v1179_v18 = vadd.f32 %v1177_v61, %v1173_v30  ;;  %v1088_v46 = vsel %vm1052_vm5, %v1085_v11, %v1087_v32  ;;  %v4071_v41 = vstv %s4064_s25 }
 0x20a   :  { %v1236_v14 = vmul.f32 %v4071_v41, %v1208_v4  ;;  %v4072_v37 = vmov %v4071_v41  ;;  %v4073_v57 = vstv %s4066_s26  ;;  %v1089_v16 = vsel %vm1052_vm5, %v1087_v32, %v1085_v11 }
 0x20b   :  { %v1237_v56 = vmul.f32 %v4072_v37, %v1209_v17  ;;  %v1260_v43 = vmul.f32 %v4073_v57, %v1208_v4  ;;  %v4074_v36 = vstv %s4068_s2  ;;  %v4076_v63 = vstv %s2564_s13  ;;  %s4087_s13 = sld [smem:[#allocation92_spill]] }
 0x20c   :  { %v1240_v33 = vmul.f32 %v4074_v36, %v1216_v39  ;;  %v4075_v24 = vmov %v4074_v36  ;;  %v1264_v3 = vmul.f32 %v4076_v63, %v1216_v39  ;;  %v4077_v50 = vmov %v4076_v63  ;;  %v1219_v63 = vpop.permute.xlu0 %1218 }
 0x20d   :  { %v1241_v30 = vmul.f32 %v4075_v24, %v1217_v29  ;;  %v1265_v52 = vmul.f32 %v4077_v50, %v1217_v29  ;;  %v4078_v9 = vmov %v4073_v57  ;;  %v4079_v25 = vstv %s4069_s7 }
 0x20e   :  { %v1261_v62 = vmul.f32 %v4078_v9, %v1209_v17  ;;  %v1284_v1 = vmul.f32 %v4079_v25, %v1208_v4  ;;  %v4080_v19 = vstv %s2590_s14  ;;  %v4082_v28 = vmov %v4079_v25  ;;  %s3304_s14 = sld [smem:[#allocation6 + $0xa4]] }
 0x20f   :  { %v1288_v21 = vmul.f32 %v4080_v19, %v1216_v39  ;;  %v4081_v6 = vmov %v4080_v19  ;;  %v1285_v13 = vmul.f32 %v4082_v28, %v1209_v17  ;;  %v4083_v49 = vstv %s4070_s29 }
 0x210   :  { %v1289_v40 = vmul.f32 %v4081_v6, %v1217_v29  ;;  %v1308_v61 = vmul.f32 %v4083_v49, %v1208_v4  ;;  %v4084_v32 = vmov %v4083_v49  ;;  %v4085_v58 = vstv %s2599_s21  ;;  %s3322_s21 = sld [smem:[#allocation6 + $0xa8]] }
 0x211   :  { %v1309_v2 = vmul.f32 %v4084_v32, %v1209_v17  ;;  %v1312_v11 = vmul.f32 %v4085_v58, %v1216_v39  ;;  %v1242_v41 = vadd.f32 %v1240_v33, %v1236_v14  ;;  %v1243_v37 = vadd.f32 %v1241_v30, %v1237_v56 }
 0x212   :  { %v1266_v57 = vadd.f32 %v1264_v3, %v1260_v43  ;;  %v4088_v36 = vmov %v4085_v58  ;;  %v1267_v50 = vadd.f32 %v1265_v52, %v1261_v62  ;;  %v1090_v4 = vmul.f32 %v1088_v46, %v2547_v10 }
 0x213   :  { %v1313_v24 = vmul.f32 %v4088_v36, %v1217_v29  ;;  %v1091_v17 = vmul.f32 %v1089_v16, %v2550_v22  ;;  %v1222_v39 = vsel %vm1194_vm6, %v1219_v63, %v1221_v31  ;;  %v1290_v14 = vadd.f32 %v1288_v21, %v1284_v1 }
 0x214   :  { %v1291_v56 = vadd.f32 %v1289_v40, %v1285_v13  ;;  %v1223_v29 = vsel %vm1194_vm6, %v1221_v31, %v1219_v63  ;;  %v1224_v43 = vmul.f32 %v1222_v39, %v4065_v15  ;;  %v4089_v33 = vstv %s4086_s12  ;;  %v1335_v31 = vpop.permute.xlu1 %1334 }
 0x215   :  { %v1110_v30 = vmul.f32 %v4089_v33, %v1090_v4  ;;  %v4090_v3 = vmov %v4089_v33  ;;  %v4091_v10 = vstv %s4087_s13  ;;  %v4093_v16 = vstv %s2679_s23  ;;  %s3337_s23 = sld [smem:[#allocation6 + $0xa5]] }
 0x216   :  { %v1111_v52 = vmul.f32 %v4090_v3, %v1091_v17  ;;  %v1134_v46 = vmul.f32 %v4091_v10, %v1090_v4  ;;  %v4092_v9 = vmov %v4091_v10  ;;  %v1158_v62 = vmul.f32 %v4093_v16, %v1090_v4 }
 0x217   :  { %v1135_v22 = vmul.f32 %v4092_v9, %v1091_v17  ;;  %v4094_v25 = vmov %v4093_v16  ;;  %v4095_v19 = vstv %s2681_s0  ;;  %v1112_v28 = vadd.f32 %v1110_v30, %v1106_v59  ;;  %s3343_s0 = sld [smem:[#allocation6 + $0xa9]] }
 0x218   :  { %v1159_v1 = vmul.f32 %v4094_v25, %v1091_v17  ;;  %v1182_v21 = vmul.f32 %v4095_v19, %v1090_v4  ;;  %v4096_v6 = vmov %v4095_v19  ;;  %v1113_v13 = vadd.f32 %v1111_v52, %v1107_v44 }
 0x219   :  { %v1183_v40 = vmul.f32 %v4096_v6, %v1091_v17  ;;  %v1136_v49 = vadd.f32 %v1134_v46, %v1130_v60  ;;  %v1225_v32 = vmul.f32 %v1223_v29, %v4067_v35  ;;  %v1314_v58 = vadd.f32 %v1312_v11, %v1308_v61  ;;  %v1333_v17 = vpop.permute.xlu0 %1332  ;;  %v4097_v60 = vld [vmem:[#allocation73_spill] sm:$0xff] }
 0x21a   :  { %v1315_v36 = vadd.f32 %v1313_v24, %v1309_v2  ;;  %v1137_v63 = vadd.f32 %v1135_v22, %v1131_v47  ;;  %v1160_v4 = vadd.f32 %v1158_v62, %v1154_v20  ;;  %v1161_v39 = vadd.f32 %v1159_v1, %v1155_v0  ;;  %v1355_v24 = vpop.permute.xlu1 %1354 }
 0x21b   :  { %v1184_v59 = vadd.f32 %v1182_v21, %v1178_v8  ;;  %v1185_v44 = vadd.f32 %v1183_v40, %v1179_v18  ;;  %v3341_v29 = vrot.slane %v3055_v45, %v4097_v60  ;;  %v3346_v61 = vadd.f32 %v1112_v28, %v3227_v51 }
 0x21c   :  { %v3349_v47 = vadd.f32 %v1113_v13, %v3229_v34  ;;  %v3352_v20 = vadd.f32 %v1136_v49, %v3231_v27  ;;  %v1377_v0 = vstv %s3304_s14  ;;  %v1246_v8 = vmul.f32 %v1245_v48, %v1224_v43 }
 0x21d   :  { %v1247_v45 = vmul.f32 %v1245_v48, %v1225_v32  ;;  %v1270_v18 = vmul.f32 %v1269_v12, %v1224_v43  ;;  %v1271_v51 = vmul.f32 %v1269_v12, %v1225_v32  ;;  %v3368_v34 = vadd.f32 %v1137_v63, %v3234_v55 }
 0x21e   :  { %v3371_v27 = vadd.f32 %v1160_v4, %v3242_v26  ;;  %v1294_v2 = vmul.f32 %v1293_v53, %v1224_v43  ;;  %v1295_v11 = vmul.f32 %v1293_v53, %v1225_v32  ;;  %v3378_v48 = vadd.f32 %v1161_v39, %v3244_v5  ;;  %v1353_v5 = vpop.permute.xlu0 %1352  ;;  %v1229_v62 = vpop.permute.xlu1 %1228 }
 0x21f   :  { %v3381_v12 = vadd.f32 %v1184_v59, %v3250_v38  ;;  %v3384_v33 = vadd.f32 %v1185_v44, %v3258_v54  ;;  %v1318_v55 = vmul.f32 %v1317_v7, %v1224_v43  ;;  %v3388_v26 = vadd.f32 %v1246_v8, %v1242_v41 }
 0x220   :  { %v3390_v30 = vadd.f32 %v1247_v45, %v1243_v37  ;;  %v3392_v53 = vadd.f32 %v1270_v18, %v1266_v57  ;;  %v1319_v3 = vmul.f32 %v1317_v7, %v1225_v32  ;;  %v3398_v52 = vadd.f32 %v1271_v51, %v1267_v50 }
 0x221   :  { %v3400_v38 = vadd.f32 %v1294_v2, %v1290_v14  ;;  %v3402_v54 = vadd.f32 %v1295_v11, %v1291_v56  ;;  %v1337_v41 = vsel %vm1336_vm7, %v1333_v17, %v1335_v31  ;;  %v1401_v37 = vstv %s3322_s21 }
 0x222   :  { %v1425_v57 = vstv %s3332_s15  ;;  %v1338_v7 = vsel %vm1336_vm7, %v1335_v31, %v1333_v17  ;;  %v1350_v50 = vmul.f32 %v3075_v23, %v1337_v41  ;;  %v3415_v14 = vadd.f32 %v1318_v55, %v1314_v58  ;;  %v1227_v31 = vpop.permute.xlu0 %1226 }
 0x223   :  { %v1449_v56 = vstv %s3335_s19  ;;  %v1351_v43 = vmul.f32 %v3341_v29, %v1338_v7  ;;  %v1356_v10 = vsel %vm1336_vm7, %v1353_v5, %v1355_v24  ;;  %v3423_v46 = vadd.f32 %v1319_v3, %v1315_v36 }
 0x224   :  { %v1381_v9 = vstv %s3337_s23  ;;  %v1405_v22 = vstv %s3343_s0  ;;  %v1429_v16 = vstv %s3355_s27  ;;  %v1378_v25 = vmul.f32 %v1377_v0, %v1350_v50 }
 0x225   :  { %v1402_v1 = vmul.f32 %v1401_v37, %v1350_v50  ;;  %v1426_v19 = vmul.f32 %v1425_v57, %v1350_v50  ;;  %v1453_v21 = vstv %s3365_s4  ;;  %v1379_v6 = vmul.f32 %v1377_v0, %v1351_v43 }
 0x226   :  { %v1450_v40 = vmul.f32 %v1449_v56, %v1350_v50  ;;  %v1357_v28 = vsel %vm1336_vm7, %v1355_v24, %v1353_v5  ;;  %v1358_v13 = vmul.f32 %v1356_v10, %v3075_v23  ;;  %v1403_v49 = vmul.f32 %v1401_v37, %v1351_v43  ;;  %v1361_v10 = vpop.permute.xlu0 %1360 }
 0x227   :  { %v1427_v32 = vmul.f32 %v1425_v57, %v1351_v43  ;;  %v1359_v58 = vmul.f32 %v1357_v28, %v3341_v29  ;;  %v1230_v36 = vsel %vm1194_vm6, %v1227_v31, %v1229_v62  ;;  %v1451_v8 = vmul.f32 %v1449_v56, %v1351_v43  ;;  %v1363_v57 = vpop.permute.xlu1 %1362 }
 0x228   :  { %v1382_v63 = vmul.f32 %v1381_v9, %v1358_v13  ;;  %v1406_v4 = vmul.f32 %v1405_v22, %v1358_v13  ;;  %v1430_v17 = vmul.f32 %v1429_v16, %v1358_v13  ;;  %v1454_v39 = vmul.f32 %v1453_v21, %v1358_v13 }
 0x229   :  { %v1383_v59 = vmul.f32 %v1381_v9, %v1359_v58  ;;  %v1407_v44 = vmul.f32 %v1405_v22, %v1359_v58  ;;  %v1431_v60 = vmul.f32 %v1429_v16, %v1359_v58  ;;  %v1455_v0 = vmul.f32 %v1453_v21, %v1359_v58 }
 0x22a   :  { %v1251_v45 = vstv %s3396_s30  ;;  %v1275_v18 = vstv %s3406_s11  ;;  %v1299_v51 = vstv %s3413_s9  ;;  %v3446_v2 = vadd.f32 %v1382_v63, %v1378_v25 }
 0x22b   :  { %v3448_v11 = vadd.f32 %v1406_v4, %v1402_v1  ;;  %v3450_v24 = vadd.f32 %v1430_v17, %v1426_v19  ;;  %v1323_v55 = vstv %s3421_s18  ;;  %v3453_v3 = vadd.f32 %v1383_v59, %v1379_v6  ;;  %v1369_v4 = vpop.permute.xlu0 %1368 }
 0x22c   :  { %v3455_v5 = vadd.f32 %v1454_v39, %v1450_v40  ;;  %v1231_v41 = vsel %vm1194_vm6, %v1229_v62, %v1227_v31  ;;  %v1232_v37 = vmul.f32 %v1230_v36, %v4065_v15  ;;  %v3460_v7 = vadd.f32 %v1407_v44, %v1403_v49 }
 0x22d   :  { %v3462_v50 = vadd.f32 %v1431_v60, %v1427_v32  ;;  %v3464_v56 = vadd.f32 %v1455_v0, %v1451_v8  ;;  %v1233_v43 = vmul.f32 %v1231_v41, %v4067_v35  ;;  %v1364_v49 = vsel %vm1336_vm7, %v1361_v10, %v1363_v57 }
 0x22e   :  { %v1252_v9 = vmul.f32 %v1251_v45, %v1232_v37  ;;  %v1276_v22 = vmul.f32 %v1275_v18, %v1232_v37  ;;  %v1300_v16 = vmul.f32 %v1299_v51, %v1232_v37  ;;  %v1324_v25 = vmul.f32 %v1323_v55, %v1232_v37 }
 0x22f   :  { %v1253_v62 = vmul.f32 %v1251_v45, %v1233_v43  ;;  %v1277_v15 = vmul.f32 %v1275_v18, %v1233_v43  ;;  %v1301_v1 = vmul.f32 %v1299_v51, %v1233_v43  ;;  %v1325_v19 = vmul.f32 %v1323_v55, %v1233_v43 }
 0x230   :  { %v1254_v21 = vadd.f32 %v1252_v9, %v3388_v26  ;;  %v1278_v35 = vadd.f32 %v1276_v22, %v3392_v53  ;;  %v1302_v6 = vadd.f32 %v1300_v16, %v3400_v38  ;;  %v1326_v40 = vadd.f32 %v1324_v25, %v3415_v14  ;;  %v1371_v38 = vpop.permute.xlu1 %1370 }
 0x231   :  { %v1255_v31 = vadd.f32 %v1253_v62, %v3390_v30  ;;  %v1279_v28 = vadd.f32 %v1277_v15, %v3398_v52  ;;  %v1303_v13 = vadd.f32 %v1301_v1, %v3402_v54  ;;  %v1387_v26 = vstv %s3435_s10 }
 0x232   :  { %v1411_v32 = vstv %s3437_s16  ;;  %v1435_v53 = vstv %s3439_s8  ;;  %v1459_v58 = vstv %s3444_s17  ;;  %v1256_v14 = vadd.f32 %v1254_v21, %v3346_v61 }
 0x233   :  { %v1280_v36 = vadd.f32 %v1278_v35, %v3352_v20  ;;  %v1304_v30 = vadd.f32 %v1302_v6, %v3371_v27  ;;  %v1327_v52 = vadd.f32 %v1325_v19, %v3423_v46  ;;  %v1257_v54 = vadd.f32 %v1255_v31, %v3349_v47 }
 0x234   :  { %v1328_v63 = vadd.f32 %v1326_v40, %v3381_v12  ;;  %v1365_v17 = vsel %vm1336_vm7, %v1363_v57, %v1361_v10  ;;  %v1366_v39 = vmul.f32 %v1364_v49, %v3075_v23  ;;  %v1281_v61 = vadd.f32 %v1279_v28, %v3368_v34 }
 0x235   :  { %v1305_v20 = vadd.f32 %v1303_v13, %v3378_v48  ;;  %v1367_v27 = vmul.f32 %v1365_v17, %v3341_v29  ;;  %v1372_v47 = vsel %vm1336_vm7, %v1369_v4, %v1371_v38  ;;  %v1329_v18 = vadd.f32 %v1327_v52, %v3384_v33 }
 0x236   :  { %v1388_v12 = vmul.f32 %v1387_v26, %v1366_v39  ;;  %v1412_v46 = vmul.f32 %v1411_v32, %v1366_v39  ;;  %v1436_v59 = vmul.f32 %v1435_v53, %v1366_v39  ;;  %v1460_v44 = vmul.f32 %v1459_v58, %v1366_v39 }
 0x237   :  { %v1389_v60 = vmul.f32 %v1387_v26, %v1367_v27  ;;  %v1413_v0 = vmul.f32 %v1411_v32, %v1367_v27  ;;  %v1437_v8 = vmul.f32 %v1435_v53, %v1367_v27  ;;  %v1461_v45 = vmul.f32 %v1459_v58, %v1367_v27 }
 0x238   :  { %v1393_v51 = vstv %s3467_s1  ;;  %v1417_v34 = vstv %s3469_s28  ;;  %v1441_v55 = vstv %s3475_s6  ;;  %v1390_v48 = vadd.f32 %v1388_v12, %v3446_v2 }
 0x239   :  { %v1414_v41 = vadd.f32 %v1412_v46, %v3448_v11  ;;  %v1438_v37 = vadd.f32 %v1436_v59, %v3450_v24  ;;  %v1465_v57 = vstv %s3482_s20  ;;  %v1391_v43 = vadd.f32 %v1389_v60, %v3453_v3 }
 0x23a   :  { %v1462_v10 = vadd.f32 %v1460_v44, %v3455_v5  ;;  %v1373_v9 = vsel %vm1336_vm7, %v1371_v38, %v1369_v4  ;;  %v1374_v22 = vmul.f32 %v1372_v47, %v3075_v23  ;;  %v1415_v33 = vadd.f32 %v1413_v0, %v3460_v7 }
 0x23b   :  { %v1439_v16 = vadd.f32 %v1437_v8, %v3462_v50  ;;  %v1463_v2 = vadd.f32 %v1461_v45, %v3464_v56  ;;  %v1375_v11 = vmul.f32 %v1373_v9, %v3341_v29 }
 0x23c   :  { %v1394_v25 = vmul.f32 %v1393_v51, %v1374_v22  ;;  %v1418_v24 = vmul.f32 %v1417_v34, %v1374_v22  ;;  %v1442_v62 = vmul.f32 %v1441_v55, %v1374_v22  ;;  %v1466_v15 = vmul.f32 %v1465_v57, %v1374_v22 }
 0x23d   :  { %v1395_v3 = vmul.f32 %v1393_v51, %v1375_v11  ;;  %v1419_v1 = vmul.f32 %v1417_v34, %v1375_v11  ;;  %v1443_v5 = vmul.f32 %v1441_v55, %v1375_v11  ;;  %v1467_v19 = vmul.f32 %v1465_v57, %v1375_v11 }
 0x23e   :  { %v1396_v42 = vadd.f32 %v1394_v25, %v1390_v48  ;;  %v1420_v21 = vadd.f32 %v1418_v24, %v1414_v41  ;;  %v1444_v35 = vadd.f32 %v1442_v62, %v1438_v37  ;;  %v1468_v23 = vadd.f32 %v1466_v15, %v1462_v10 }
 0x23f   :  { %v1397_v7 = vadd.f32 %v1395_v3, %v1391_v43  ;;  %v1421_v50 = vadd.f32 %v1419_v1, %v1415_v33  ;;  %v1445_v6 = vadd.f32 %v1443_v5, %v1439_v16  ;;  %v1469_v56 = vadd.f32 %v1467_v19, %v1463_v2 }
 0x240   :  { %v1398_v40 = vadd.f32 %v1396_v42, %v1256_v14  ;;  %v1422_v29 = vadd.f32 %v1420_v21, %v1280_v36  ;;  %v1446_v31 = vadd.f32 %v1444_v35, %v1304_v30  ;;  %v1470_v28 = vadd.f32 %v1468_v23, %v1328_v63 }
 0x241   :  { %v1399_v13 = vadd.f32 %v1397_v7, %v1257_v54  ;;  %v1423_v49 = vadd.f32 %v1421_v50, %v1281_v61  ;;  %v1447_v26 = vadd.f32 %v1445_v6, %v1305_v20  ;;  %v1471_v32 = vadd.f32 %v1469_v56, %v1329_v18 }
 0x242   :  { %1474 = vst [vmem:[#allocation9] sm:$0xff] %v1398_v40  ;;  %1476 = vst [vmem:[#allocation9 + $0x10] sm:$0xff] %v1422_v29 }
 0x243   :  { %1478 = vst [vmem:[#allocation9 + $0x20] sm:$0xff] %v1446_v31  ;;  %1480 = vst [vmem:[#allocation9 + $0x30] sm:$0xff] %v1470_v28 }
 0x244   :  { %1475 = vst [vmem:[#allocation9 + $0x8] sm:$0xff] %v1399_v13  ;;  %1477 = vst [vmem:[#allocation9 + $0x18] sm:$0xff] %v1423_v49 }
 0x245   :  { %1479 = vst [vmem:[#allocation9 + $0x28] sm:$0xff] %v1447_v26  ;;  %1481 = vst [vmem:[#allocation9 + $0x38] sm:$0xff] %v1471_v32 }
 0x246   :  { %1751 = shalt.err (!%p1748_p0)
}
 0x247   :  { %s4098_s26 = sld [smem:[#allocation108_spill]] }
 0x24d   :  { %1491 = dma.vmem_to_hbm [thread:$0]  %s1489_s3, 1024, %s4098_s26, [#allocation4]  }
 0x24e   :  { %1766 = dma.done.wait [#allocation4], 1024  }
 0x24f   :  { %1767 = vsyncadd [#allocation4], 4294966272 }
 0x250   :  { %1495 = vsyncpa [#allocation3], 1 }
 0x251   :  { %1496 = vsyncpa [#allocation8], 1 }
 0x252   :  { %1497 = vsyncpa [#allocation4], 1 }
 0x253   :  { %1498 = vsyncpa [#allocation5], 1 }

</bundles_post_ra>
